<compile_context>
chip_gen: v7x
topology: tpu7x:2x2x1
jax: 0.10.0
libtpu: 0.0.40
codegen_flags: <defaults>
</compile_context>

<pallas_src>
from functools import lru_cache

import jax
import jax.numpy as jnp
from jax.experimental import pallas as pl
from jax.experimental.pallas import tpu as pltpu


def _round_up(x, m):
    return ((x + m - 1) // m) * m


# --------------------------------------------------------------------------
# One-time capability / hardware probes (never in the per-call hot path).
# --------------------------------------------------------------------------
@lru_cache(maxsize=None)
def _weight_pipeline_mode():
    """Probe once whether single-buffered (pl.Buffered(1)) grid-invariant
    operands are supported by this JAX build; otherwise fall back to the
    default (double-buffered) pipeline mode."""
    try:
        def _copy(x_ref, o_ref):
            o_ref[...] = x_ref[...]

        probe = pl.pallas_call(
            _copy,
            out_shape=jax.ShapeDtypeStruct((16, 128), jnp.float32),
            grid=(2,),
            in_specs=[pl.BlockSpec((8, 128), lambda i: (0, 0),
                                   pipeline_mode=pl.Buffered(1))],
            out_specs=pl.BlockSpec((8, 128), lambda i: (i, 0)),
        )
        jax.block_until_ready(probe(jnp.zeros((8, 128), jnp.float32)))
        return pl.Buffered(1)
    except Exception:
        return None


@lru_cache(maxsize=None)
def _tensorcores_per_chip():
    """v7x has 2 TensorCores per chip; v5e/v6e have 1."""
    try:
        kind = jax.devices()[0].device_kind.lower()
        if "v7" in kind:
            return 2
    except Exception:
        pass
    return 1


def _pick_block_b(batch):
    """Batch-tile heuristic: biggest tile (amortize ~0.35us/step overhead) on
    single-TC chips, an even >=2-step grid on multi-TC chips (megacore)."""
    if batch <= 256:
        return max(8, _round_up(batch, 8))          # single small tile
    if _tensorcores_per_chip() > 1:
        # >= 2 steps so dimension_semantics=("parallel",) feeds both TCs.
        return min(512, max(128, _round_up(pl.cdiv(batch, 2), 128)))
    # Single TensorCore: one big (<=512-row) tile.
    return min(512, _round_up(batch, 8))


# --------------------------------------------------------------------------
# Kernel body: fused 2-layer MLP tile.
# --------------------------------------------------------------------------
def _prediction_kernel(x_ref, w1_ref, b1_ref, w2_ref, b2_ref, o_ref):
    # In-kernel cast of the f32 activation tile to the MXU operand dtype
    # (no separate wrapper-side cast op / HBM round trip).
    x = x_ref[...].astype(w1_ref.dtype)
    h = jnp.dot(x, w1_ref[...], preferred_element_type=jnp.float32)   # MXU, f32 acc
    h = jnp.tanh(h + b1_ref[...])                                     # f32 VPU + EUP
    y = jnp.dot(h.astype(w2_ref.dtype), w2_ref[...],
                preferred_element_type=jnp.float32) + b2_ref[...]
    o_ref[...] = y.astype(o_ref.dtype)


# --------------------------------------------------------------------------
# Factory: pre-cast constant weights once, return a jitted forward over x.
# --------------------------------------------------------------------------
def make_prediction_fn(w1, b1, w2, b2, *, param_dtype=jnp.bfloat16,
                       out_dtype=None, block_b=None):
    """Returns jitted `forward(x) = tanh(x @ w1 + b1) @ w2 + b2`.

    w1: (D_in, D_h), b1: (1, D_h), w2: (D_h, D_out), b2: (1, D_out)
    (weights stored pre-transposed as (in, out) -> same math as nn.Linear).
    """
    D_in, D_h = w1.shape
    D_out = w2.shape[1]

    # Constant weights: cast ONCE, outside the per-call path.
    w1_c = jnp.asarray(w1).astype(param_dtype)
    w2_c = jnp.asarray(w2).astype(param_dtype)
    b1_c = jnp.asarray(b1).reshape(1, D_h).astype(jnp.float32)
    b2_c = jnp.asarray(b2).reshape(1, D_out).astype(jnp.float32)

    wmode = _weight_pipeline_mode()     # resolved once (cached probe)

    def _wspec(shape):
        if wmode is None:
            return pl.BlockSpec(shape, lambda i: (0, 0))
        return pl.BlockSpec(shape, lambda i: (0, 0), pipeline_mode=wmode)

    def _forward(x):
        B = x.shape[0]
        odt = out_dtype if out_dtype is not None else x.dtype
        blk = block_b if block_b is not None else _pick_block_b(B)
        grid = (pl.cdiv(B, blk),)       # no jnp.pad: Pallas masks the tail

        x_isz = jnp.dtype(x.dtype).itemsize
        p_isz = jnp.dtype(param_dtype).itemsize
        o_isz = jnp.dtype(odt).itemsize
        w_bufs = 1 if wmode is not None else 2

        # VMEM budget: x / out tiles double-buffered, weights resident.
        needed = (2 * blk * D_in * x_isz
                  + 2 * blk * D_out * o_isz
                  + w_bufs * ((D_in * D_h + D_h * D_out) * p_isz
                              + (D_h + D_out) * 4))
        vmem_limit = int(min(max(needed + (8 << 20), 16 << 20), 64 << 20))

        cost = pl.CostEstimate(
            flops=2 * B * (D_in * D_h + D_h * D_out),
            transcendentals=B * D_h,
            bytes_accessed=(B * D_in * x_isz
                            + (D_in * D_h + D_h * D_out) * p_isz
                            + (D_h + D_out) * 4
                            + B * D_out * o_isz),
        )

        return pl.pallas_call(
            _prediction_kernel,
            out_shape=jax.ShapeDtypeStruct((B, D_out), odt),
            grid_spec=pltpu.PrefetchScalarGridSpec(
                num_scalar_prefetch=0,
                grid=grid,
                in_specs=[
                    pl.BlockSpec((blk, D_in), lambda i: (i, 0)),   # x tile (f32)
                    _wspec((D_in, D_h)),                           # W1 resident
                    _wspec((1, D_h)),                              # b1
                    _wspec((D_h, D_out)),                          # W2 resident
                    _wspec((1, D_out)),                            # b2
                ],
                out_specs=pl.BlockSpec((blk, D_out), lambda i: (i, 0)),
            ),
            compiler_params=pltpu.CompilerParams(
                dimension_semantics=("parallel",),
                vmem_limit_bytes=vmem_limit,
            ),
            cost_estimate=cost,
        )(x, w1_c, b1_c, w2_c, b2_c)

    return jax.jit(_forward)


def prediction_forward(x, w1, b1, w2, b2, **kwargs):
    """Convenience one-shot wrapper (prefer make_prediction_fn for repeated
    calls so weights are cast once and the jitted fn is reused)."""
    return make_prediction_fn(w1, b1, w2, b2, **kwargs)(x)


def reference_forward(x, w1, b1, w2, b2, compute_dtype=jnp.bfloat16):
    """Pure-JAX reference with the same mixed-precision policy as the kernel."""
    xc = x.astype(compute_dtype)
    h = jnp.tanh(jnp.dot(xc, w1.astype(compute_dtype),
                         preferred_element_type=jnp.float32)
                 + b1.astype(jnp.float32))
    y = (jnp.dot(h.astype(compute_dtype), w2.astype(compute_dtype),
                 preferred_element_type=jnp.float32)
         + b2.astype(jnp.float32))
    return y.astype(x.dtype)


if __name__ == "__main__":
    # Module dims from the DATA_DIM == 12288 branch: rep_dim = 512,
    # two Linear(512, 512) layers with a Tanh in between.
    rep_dim = 512
    batch = 512

    key = jax.random.PRNGKey(0)
    kx, kw1, kb1, kw2, kb2 = jax.random.split(key, 5)

    bound = 1.0 / (rep_dim ** 0.5)   # PyTorch-Linear-like uniform init scale
    x = jax.random.normal(kx, (batch, rep_dim), dtype=jnp.float32)
    w1 = jax.random.uniform(kw1, (rep_dim, rep_dim), jnp.float32, -bound, bound)
    b1 = jax.random.uniform(kb1, (1, rep_dim), jnp.float32, -bound, bound)
    w2 = jax.random.uniform(kw2, (rep_dim, rep_dim), jnp.float32, -bound, bound)
    b2 = jax.random.uniform(kb2, (1, rep_dim), jnp.float32, -bound, bound)

    # Weights cast once; forward is a jitted closure over x.
    forward = make_prediction_fn(w1, b1, w2, b2)
    y = jax.block_until_ready(forward(x))

    y_ref = reference_forward(x, w1, b1, w2, b2)
    assert y.shape == (batch, rep_dim)
    assert jnp.allclose(y, y_ref, atol=2e-2, rtol=2e-2), "mismatch vs reference"

    print("KERNEL_OK")
</pallas_src>

<mosaic_0001>
module attributes {stable_mosaic.version = 11 : i64} {
  func.func @_copy(%arg0: i32, %arg1: memref<8x128xf32, #tpu.memory_space<vmem>>, %arg2: memref<8x128xf32, #tpu.memory_space<vmem>>) attributes {dimension_semantics = [#tpu.dimension_semantics<arbitrary>], iteration_bounds = array<i64: 2>, scalar_prefetch = 0 : i64, scratch_operands = 0 : i64, tpu.core_type = #tpu.core_type<tc>, window_params = [{pipeline_mode = #tpu.pipeline_mode<synchronous>, transform_indices = @transform_0, window_bounds = array<i64: 8, 128>}, {transform_indices = @transform_1, window_bounds = array<i64: 8, 128>}]} {
    %c0 = arith.constant 0 : index
    %c0_0 = arith.constant 0 : index
    %0 = vector.load %arg1[%c0, %c0_0] : memref<8x128xf32, #tpu.memory_space<vmem>>, vector<8x128xf32>
    %c0_1 = arith.constant 0 : index
    %c0_2 = arith.constant 0 : index
    %1 = vector.load %arg2[%c0_1, %c0_2] : memref<8x128xf32, #tpu.memory_space<vmem>>, vector<8x128xf32>
    tpu.vector_store %arg2[%c0_1, %c0_2], %0 {strides = array<i32>} : memref<8x128xf32, #tpu.memory_space<vmem>>, vector<8x128xf32>,
    return
  }
  func.func @transform_0(%arg0: i32) -> (i32, i32) {
    %c0_i32 = arith.constant 0 : i32
    %c0_i32_0 = arith.constant 0 : i32
    %c0_i32_1 = arith.constant 0 : i32
    return %c0_i32, %c0_i32_0 : i32, i32
  }
  func.func @transform_1(%arg0: i32) -> (i32, i32) {
    %c0_i32 = arith.constant 0 : i32
    %c0_i32_0 = arith.constant 0 : i32
    return %arg0, %c0_i32 : i32, i32
  }
}

module attributes {stable_mosaic.version = 11 : i64} {
  func.func @_prediction_kernel(%arg0: i32, %arg1: memref<512x512xf32, #tpu.memory_space<vmem>>, %arg2: memref<512x512xbf16, #tpu.memory_space<vmem>>, %arg3: memref<1x512xf32, #tpu.memory_space<vmem>>, %arg4: memref<512x512xbf16, #tpu.memory_space<vmem>>, %arg5: memref<1x512xf32, #tpu.memory_space<vmem>>, %arg6: memref<512x512xf32, #tpu.memory_space<vmem>>) attributes {dimension_semantics = [#tpu.dimension_semantics<parallel>], iteration_bounds = array<i64: 1>, scalar_prefetch = 0 : i64, scratch_operands = 0 : i64, tpu.core_type = #tpu.core_type<tc>, window_params = [{transform_indices = @transform_0, window_bounds = array<i64: 512, 512>}, {pipeline_mode = #tpu.pipeline_mode<synchronous>, transform_indices = @transform_1, window_bounds = array<i64: 512, 512>}, {pipeline_mode = #tpu.pipeline_mode<synchronous>, transform_indices = @transform_2, window_bounds = array<i64: 1, 512>}, {pipeline_mode = #tpu.pipeline_mode<synchronous>, transform_indices = @transform_3, window_bounds = array<i64: 512, 512>}, {pipeline_mode = #tpu.pipeline_mode<synchronous>, transform_indices = @transform_4, window_bounds = array<i64: 1, 512>}, {transform_indices = @transform_5, window_bounds = array<i64: 512, 512>}]} {
    %c0 = arith.constant 0 : index
    %c0_0 = arith.constant 0 : index
    %0 = vector.load %arg1[%c0, %c0_0] : memref<512x512xf32, #tpu.memory_space<vmem>>, vector<512x512xf32>
    %1 = arith.truncf %0 : vector<512x512xf32> to vector<512x512xbf16>
    %c0_1 = arith.constant 0 : index
    %c0_2 = arith.constant 0 : index
    %2 = vector.load %arg2[%c0_1, %c0_2] : memref<512x512xbf16, #tpu.memory_space<vmem>>, vector<512x512xbf16>
    %cst = arith.constant dense<0.000000e+00> : vector<512x512xf32>
    %3 = tpu.matmul %1, %2, %cst {dimension_numbers = #tpu.dot_dimension_numbers<[1], [0], [0], [1], [0, 0, 1, 1], [], []>} : vector<512x512xbf16>, vector<512x512xbf16>, vector<512x512xf32> -> vector<512x512xf32>
    %c0_3 = arith.constant 0 : index
    %c0_4 = arith.constant 0 : index
    %4 = vector.load %arg3[%c0_3, %c0_4] : memref<1x512xf32, #tpu.memory_space<vmem>>, vector<1x512xf32>
    %5 = vector.broadcast %4 : vector<1x512xf32> to vector<512x512xf32>
    %6 = arith.addf %3, %5 : vector<512x512xf32>
    %7 = math.tanh %6 : vector<512x512xf32>
    %8 = arith.truncf %7 : vector<512x512xf32> to vector<512x512xbf16>
    %c0_5 = arith.constant 0 : index
    %c0_6 = arith.constant 0 : index
    %9 = vector.load %arg4[%c0_5, %c0_6] : memref<512x512xbf16, #tpu.memory_space<vmem>>, vector<512x512xbf16>
    %cst_7 = arith.constant dense<0.000000e+00> : vector<512x512xf32>
    %10 = tpu.matmul %8, %9, %cst_7 {dimension_numbers = #tpu.dot_dimension_numbers<[1], [0], [0], [1], [0, 0, 1, 1], [], []>} : vector<512x512xbf16>, vector<512x512xbf16>, vector<512x512xf32> -> vector<512x512xf32>
    %c0_8 = arith.constant 0 : index
    %c0_9 = arith.constant 0 : index
    %11 = vector.load %arg5[%c0_8, %c0_9] : memref<1x512xf32, #tpu.memory_space<vmem>>, vector<1x512xf32>
    %12 = vector.broadcast %11 : vector<1x512xf32> to vector<512x512xf32>
    %13 = arith.addf %10, %12 : vector<512x512xf32>
    %c0_10 = arith.constant 0 : index
    %c0_11 = arith.constant 0 : index
    %14 = vector.load %arg6[%c0_10, %c0_11] : memref<512x512xf32, #tpu.memory_space<vmem>>, vector<512x512xf32>
    tpu.vector_store %arg6[%c0_10, %c0_11], %13 {strides = array<i32>} : memref<512x512xf32, #tpu.memory_space<vmem>>, vector<512x512xf32>,
    return
  }
  func.func @transform_0(%arg0: i32) -> (i32, i32) {
    %c0_i32 = arith.constant 0 : i32
    %c0_i32_0 = arith.constant 0 : i32
    return %arg0, %c0_i32 : i32, i32
  }
  func.func @transform_1(%arg0: i32) -> (i32, i32) {
    %c0_i32 = arith.constant 0 : i32
    %c0_i32_0 = arith.constant 0 : i32
    %c0_i32_1 = arith.constant 0 : i32
    return %c0_i32, %c0_i32_0 : i32, i32
  }
  func.func @transform_2(%arg0: i32) -> (i32, i32) {
    %c0_i32 = arith.constant 0 : i32
    %c0_i32_0 = arith.constant 0 : i32
    %c0_i32_1 = arith.constant 0 : i32
    return %c0_i32, %c0_i32_0 : i32, i32
  }
  func.func @transform_3(%arg0: i32) -> (i32, i32) {
    %c0_i32 = arith.constant 0 : i32
    %c0_i32_0 = arith.constant 0 : i32
    %c0_i32_1 = arith.constant 0 : i32
    return %c0_i32, %c0_i32_0 : i32, i32
  }
  func.func @transform_4(%arg0: i32) -> (i32, i32) {
    %c0_i32 = arith.constant 0 : i32
    %c0_i32_0 = arith.constant 0 : i32
    %c0_i32_1 = arith.constant 0 : i32
    return %c0_i32, %c0_i32_0 : i32, i32
  }
  func.func @transform_5(%arg0: i32) -> (i32, i32) {
    %c0_i32 = arith.constant 0 : i32
    %c0_i32_0 = arith.constant 0 : i32
    return %arg0, %c0_i32 : i32, i32
  }
}

</mosaic_0001>

<bundles_post_ra>
// kernel: tpu_custom_call.1
= control target key start
LH: loop header
LB: loop body
LE: loop exit
PB: predicated region body
PF: predicated region fallthrough
CT: control target
= control target key end

     0   :  { %6 = vsyncpa [#allocation3], 0  ;;  %s481_s0 = inlined_call_operand.hbm [shape: f32[8,128], index: 0, kind: input, shape index: {}]   ;;  %s482_s1 = inlined_call_operand.hbm [shape: f32[16,128], index: 1, kind: output, shape index: {}]  }
   0x1   :  { %7 = vsyncpa [#allocation4], 0 }
   0x2   :  { %9 = vsyncpa [#allocation4 + $0x1], 0  ;;  %s351_s6 = smov 0   ;;  %s353_s7 = smov 0  }
   0x3   :  { %s355_s8 = smov 0   ;;  %s357_s9 = smov 0  }
   0x4 LB: > { %s372_s10 = sadd.s32 4294967295, %s337_s9   ;;  %s183_s11 = sadd.s32 4294967294, %s337_s9   ;;  %s337_s9 = sphi %s357_s9, %s498_s9   ;;  %s333_s8 = sphi %s355_s8, %s497_s8   ;;  %s329_s7 = sphi %s353_s7, %s496_s7   ;;  %s325_s6 = sphi %s351_s6, %s495_s6  }
   0x5   : > { %s376_s12 = sadd.s32 1, %s337_s9   ;;  %s43_s13 = sadd.s32 1, %s333_s8 }
   0x6   : > { %s40_s14 = ssub.s32 %s337_s9, %s376_s12  ;;  %p53_p0 = scmp.ne.s32.totalorder %s333_s8, %s329_s7 }
   0x7   : > { %p41_p1 = scmp.eq.s32.totalorder %s40_s14, 0  ;;  %p54_p2 = scmp.eq.s32.totalorder %s372_s10, 1 }
   0x8   : > { %p59_p3 = scmp.ne.s32.totalorder %s329_s7, %s325_s6  ;;  %p60_p4 = scmp.eq.s32.totalorder %s183_s11, 1 }
   0x9   : > { %s387_s15 = scalar_select %p41_p1, %s333_s8, %s43_s13  }
   0xa   : > { %p389_p5 = por %p54_p2, %p53_p0  ;;  %p393_p6 = por %p60_p4, %p59_p3 }
   0xb   : > { %p184_p7 = scmp.ge.s32.totalorder %s337_s9, 1  ;;  %p67_p8 = scmp.lt.s32.totalorder %s337_s9, 3 }
   0xc   : > { %s486_s16 = scalar_select %p389_p5, 1, 0 }
   0xd   : > { %s487_s17 = scalar_select %p393_p6, 1, 0 }
   0xe   : > { %p483_p9 = scmp.eq.s32.totalorder %s372_s10, 0  ;;  %p400_p10 = pnand %p184_p7, %p67_p8 }
   0xf   : > { %s339_s19 = smov [#allocation2]   ;;  %s243_s24 = scalar_lea.hbm %s481_s0, 128 }
  0x10   : > { %s488_s18 = scalar_select %p400_p10, 1, 0 }
  0x11   : > { %s80_s20 = sshll.u32 %s339_s19, 4  ;;  %p199_p11 = pneg %p400_p10  ;;  %s81_s20 = int_to_ptr.vmem [resolvable:$true] %s80_s20 }
  0x12   : > { %p244_p13 = scmp.ne.s32.totalorder %s481_s0, %s243_s24  ;;  %p250_p3 = scmp.lt.u32.totalorder %s243_s24, %s481_s0 }
  0x13   : > { %p408_p12 = pnand %p483_p9, %p199_p11 }
  0x15   : > { %p245_p0 = pneg %p408_p12 }
  0x17   : > { %p246_p1 = pnand %p245_p0, %p244_p13 }
  0x19   : > { %p247_p2 = pneg %p246_p1 }
  0x1b   : > { %p252_p4 = pnand %p250_p3, %p247_p2 }
  0x1d   : > { %255 = shalt.err (!%p252_p4)
}
  0x1e   : > { %s256_s29 = scalar_lea.vmem %s81_s20, 128  ;;  %p264_p9 = scmp.lt.s32.totalorder %s81_s20, %s81_s20 }
  0x1f   : > { %p257_p7 = scmp.ne.s32.totalorder %s81_s20, %s256_s29  ;;  %p265_p6 = scmp.lt.s32.totalorder %s256_s29, %s256_s29 }
  0x21   : > { %p259_p8 = pnand %p257_p7, %p245_p0  ;;  %p266_p5 = por %p265_p6, %p264_p9 }
  0x23   : > { %p260_p11 = pneg %p259_p8 }
  0x25   : > { %p267_p10 = pnand %p266_p5, %p260_p11 }
  0x27   : > { %270 = shalt.err (!%p267_p10)
}
  0x28   : > { %202 = dma.hbm_to_vmem [thread:$0]  (!%p408_p12), %s481_s0, 128, %s81_s20, [#allocation3]  }
  0x29   : > { %p490_p13 = scmp.ne.s32.totalorder %s488_s18, 0 }
  0x2a   : > { %p491_p1 = scmp.eq.s32.totalorder (!%p490_p13), %s372_s10, 0 }
  0x2b   : > { %93 = sbr.rel (%p490_p13) target bundleno = 77 (0x4d), region = 24 }
  0x32   : > { %316 = dma.done.wait (%p491_p1), [#allocation3], 128   ;;  %p492_p0 = pmov %p491_p1 }
  0x33   : > { %s105_s3 = sand.u32 1, %s329_s7   ;;  %s190_s13 = sshll.u32 %s372_s10, 7  ;;  %v108_v0 = vld [vmem:[#allocation2] sm:$0xff] }
  0x34   : > { %318 = vsyncadd (%p492_p0), [#allocation3], 4294967168  ;;  %s188_s4 = sshll.u32 %s105_s3, 3  ;;  %s441_s18 = scalar_lea.hbm %s482_s1, %s190_s13 }
  0x35   : > { %s107_s5 = scalar_lea.vmem [#allocation5], %s188_s4  ;;  %s111_s20 = scalar_lea.sflag [#allocation4], %s105_s3 }
  0x36   : > { %s124_s11 = sshll.u32 %s107_s5, 4  ;;  %109 = vst [vmem:[%s107_s5] sm:$0xff] %v108_v0  ;;  %p493_p6 = scmp.ne.s32.totalorder %s486_s16, 0  ;;  %s436_s11 = int_to_ptr.vmem [resolvable:$true] %s124_s11 }
  0x37   : > { %s271_s21 = scalar_lea.vmem %s436_s11, 128  ;;  %s340_s22 = smov [#allocation5]  }
  0x38   : > { %p272_p5 = scmp.ne.s32.totalorder %s436_s11, %s271_s21  ;;  %s275_s10 = sshll.u32 %s340_s22, 4  ;;  %s276_s10 = int_to_ptr.vmem [resolvable:$false] %s275_s10 }
  0x39   : > { %s277_s23 = scalar_lea.vmem %s276_s10, 256  ;;  %p278_p12 = scmp.lt.s32.totalorder %s436_s11, %s276_s10 }
  0x3a   : > { %p273_p9 = pnand %p272_p5, %p493_p6  ;;  %p279_p2 = scmp.lt.s32.totalorder %s277_s23, %s271_s21 }
  0x3c   : > { %p274_p10 = pneg %p273_p9  ;;  %p280_p3 = por %p279_p2, %p278_p12 }
  0x3e   : > { %p281_p4 = pnand %p280_p3, %p274_p10 }
  0x40   : > { %284 = shalt.err (!%p281_p4)
}
  0x41   : > { %s285_s24 = scalar_lea.hbm %s441_s18, 128  ;;  %s289_s27 = scalar_lea.hbm %s482_s1, 256 }
  0x42   : > { %p286_p7 = scmp.ne.s32.totalorder %s441_s18, %s285_s24  ;;  %p290_p13 = scmp.lt.u32.totalorder %s441_s18, %s482_s1 }
  0x43   : > { %p291_p1 = scmp.lt.u32.totalorder %s289_s27, %s285_s24  ;;  %p293_p5 = scmp.lt.u32.totalorder %s285_s24, %s441_s18 }
  0x44   : > { %p287_p8 = pnand %p286_p7, %p493_p6 }
  0x45   : > { %p292_p0 = por %p291_p1, %p290_p13 }
  0x46   : > { %p288_p11 = pneg %p287_p8 }
  0x47   : > { %p294_p9 = por %p293_p5, %p292_p0 }
  0x49   : > { %p295_p10 = pnand %p294_p9, %p288_p11 }
  0x4b   : > { %298 = shalt.err (!%p295_p10)
}
  0x4c   : > { %197 = dma.vmem_to_hbm [thread:$0]  (%p493_p6), %s436_s11, 128, %s441_s18, %s111_s20  }
  0x4d PF: > { %p209_p12 = scmp.ge.s32.totalorder %s337_s9, 2  ;;  %s136_s30 = sand.u32 1, %s325_s6  }
  0x4e   : > { %p494_p2 = scmp.ne.s32.totalorder %s487_s17, 0  ;;  %s137_s2 = scalar_lea.sflag [#allocation4], %s136_s30 }
  0x50   : > { %p204_p3 = pnand %p209_p12, %p494_p2 }
  0x52   : > { %320 = dma.done.wait (!%p204_p3), %s137_s2, 128  }
  0x53   : > { %322 = vsyncadd (!%p204_p3), %s137_s2, 4294967168  ;;  %p12_p4 = scmp.ge.s32.totalorder %s376_s12, 4   ;;  %s495_s6 = smov %s329_s7 }
  0x54   : > { %s496_s7 = smov %s333_s8  ;;  %s497_s8 = smov %s387_s15 }
  0x55   : > { %s498_s9 = smov %s376_s12  ;;  %14 = sbr.rel (!%p12_p4) target bundleno = 4 (0x4), region = 61 }
  0x5c   :  { %142 = vsyncpa [#allocation3], 1 }
  0x5d   :  { %144 = vsyncpa [#allocation3 + $0x1], 1 }
  0x5e   :  { %145 = vsyncpa [#allocation4], 1 }
  0x5f   :  { %147 = vsyncpa [#allocation4 + $0x1], 1 }

// kernel: _forward.1
= control target key start
LH: loop header
LB: loop body
LE: loop exit
PB: predicated region body
PF: predicated region fallthrough
CT: control target
= control target key end

     0   :  { %s10293_s0 = inlined_call_operand.vmem [shape: f32[512,512], index: 0, kind: input, shape index: {}]   ;;  %s10294_s1 = inlined_call_operand.vmem [shape: bf16[512,512], index: 1, kind: input, shape index: {}]   ;;  %s10295_s2 = inlined_call_operand.vmem [shape: f32[1,512], index: 2, kind: input, shape index: {}]   ;;  %s10296_s3 = inlined_call_operand.vmem [shape: bf16[512,512], index: 3, kind: input, shape index: {}]   ;;  %s10297_s4 = inlined_call_operand.vmem [shape: f32[1,512], index: 4, kind: input, shape index: {}]   ;;  %s10298_s5 = inlined_call_operand.hbm [shape: f32[512,512], index: 5, kind: output, shape index: {}]  }
   0x1   :  { %v6748_v0 = vld [vmem:[%s10294_s1 + $0x4] ss:$16 sps:$4 sm:$0xff]   ;;  %v6750_v1 = vld [vmem:[%s10294_s1 + $0xc] ss:$16 sps:$4 sm:$0xff]   ;;  %v6752_v2 = vld [vmem:[%s10294_s1] ss:$16 sps:$4 sm:$0xff]  }
   0x2   :  { %1195 = vmatprep.subr.bf16.mxu0 %v6748_v0  ;;  %v6753_v3 = vld [vmem:[%s10294_s1 + $0x8] ss:$16 sps:$4 sm:$0xff]   ;;  %1901 = vmatprep.subr.bf16.mxu1 %v6750_v1  ;;  %v6754_v4 = vld [vmem:[%s10294_s1 + $0x24] ss:$16 sps:$4 sm:$0xff]   ;;  %v6756_v5 = vld [vmem:[%s10294_s1 + $0x2c] ss:$16 sps:$4 sm:$0xff]  }
   0x3   :  { %1196 = vmatpush1.bf16.msra.mxu0 %v6752_v2  ;;  %1902 = vmatpush1.bf16.msra.mxu1 %v6753_v3  ;;  %v6758_v6 = vld [vmem:[%s10294_s1 + $0x20] ss:$16 sps:$4 sm:$0xff]   ;;  %v6759_v7 = vld [vmem:[%s10294_s1 + $0x28] ss:$16 sps:$4 sm:$0xff]   ;;  %v6760_v8 = vld [vmem:[%s10294_s1 + $0x44] ss:$16 sps:$4 sm:$0xff]  }
   0x4   :  { %1197 = vmatprep.subr.bf16.mxu0 %v6754_v4  ;;  %1903 = vmatprep.subr.bf16.mxu1 %v6756_v5  ;;  %v6762_v9 = vld [vmem:[%s10294_s1 + $0x4c] ss:$16 sps:$4 sm:$0xff]   ;;  %v6764_v10 = vld [vmem:[%s10294_s1 + $0x40] ss:$16 sps:$4 sm:$0xff]   ;;  %v6765_v11 = vld [vmem:[%s10294_s1 + $0x48] ss:$16 sps:$4 sm:$0xff]  }
   0x5   :  { %v6766_v12 = vld [vmem:[%s10294_s1 + $0x64] ss:$16 sps:$4 sm:$0xff]   ;;  %v6768_v13 = vld [vmem:[%s10294_s1 + $0x6c] ss:$16 sps:$4 sm:$0xff]   ;;  %v6770_v14 = vld [vmem:[%s10294_s1 + $0x60] ss:$16 sps:$4 sm:$0xff]  }
   0x6   :  { %v6771_v15 = vld [vmem:[%s10294_s1 + $0x68] ss:$16 sps:$4 sm:$0xff]   ;;  %v6772_v16 = vld [vmem:[%s10294_s1 + $0x84] ss:$16 sps:$4 sm:$0xff]   ;;  %v6774_v17 = vld [vmem:[%s10294_s1 + $0x8c] ss:$16 sps:$4 sm:$0xff]  }
   0x7   :  { %1198 = vmatpush1.bf16.msra.mxu0 %v6758_v6  ;;  %1904 = vmatpush1.bf16.msra.mxu1 %v6759_v7  ;;  %v6776_v18 = vld [vmem:[%s10294_s1 + $0x80] ss:$16 sps:$4 sm:$0xff]   ;;  %v6777_v19 = vld [vmem:[%s10294_s1 + $0x88] ss:$16 sps:$4 sm:$0xff]   ;;  %v6778_v20 = vld [vmem:[%s10294_s1 + $0xa4] ss:$16 sps:$4 sm:$0xff]  }
   0x8   :  { %1199 = vmatprep.subr.bf16.mxu0 %v6760_v8  ;;  %1905 = vmatprep.subr.bf16.mxu1 %v6762_v9  ;;  %v6780_v21 = vld [vmem:[%s10294_s1 + $0xac] ss:$16 sps:$4 sm:$0xff]   ;;  %v6782_v22 = vld [vmem:[%s10294_s1 + $0xa0] ss:$16 sps:$4 sm:$0xff]   ;;  %v6783_v23 = vld [vmem:[%s10294_s1 + $0xa8] ss:$16 sps:$4 sm:$0xff]  }
   0x9   :  { %v6784_v24 = vld [vmem:[%s10294_s1 + $0xc4] ss:$16 sps:$4 sm:$0xff]   ;;  %v6786_v25 = vld [vmem:[%s10294_s1 + $0xcc] ss:$16 sps:$4 sm:$0xff]   ;;  %v6788_v26 = vld [vmem:[%s10294_s1 + $0xc0] ss:$16 sps:$4 sm:$0xff]  }
   0xa   :  { %v6789_v27 = vld [vmem:[%s10294_s1 + $0xc8] ss:$16 sps:$4 sm:$0xff]   ;;  %v6790_v28 = vld [vmem:[%s10294_s1 + $0xe4] ss:$16 sps:$4 sm:$0xff]   ;;  %v6792_v29 = vld [vmem:[%s10294_s1 + $0xec] ss:$16 sps:$4 sm:$0xff]  }
   0xb   :  { %1200 = vmatpush1.bf16.msra.mxu0 %v6764_v10  ;;  %1906 = vmatpush1.bf16.msra.mxu1 %v6765_v11  ;;  %v6794_v30 = vld [vmem:[%s10294_s1 + $0xe0] ss:$16 sps:$4 sm:$0xff]   ;;  %v6795_v31 = vld [vmem:[%s10294_s1 + $0xe8] ss:$16 sps:$4 sm:$0xff]   ;;  %v6796_v32 = vld [vmem:[%s10294_s1 + $0x104] ss:$16 sps:$4 sm:$0xff]  }
   0xc   :  { %1201 = vmatprep.subr.bf16.mxu0 %v6766_v12  ;;  %1907 = vmatprep.subr.bf16.mxu1 %v6768_v13  ;;  %v6798_v33 = vld [vmem:[%s10294_s1 + $0x10c] ss:$16 sps:$4 sm:$0xff]   ;;  %v6800_v34 = vld [vmem:[%s10294_s1 + $0x100] ss:$16 sps:$4 sm:$0xff]   ;;  %v6801_v35 = vld [vmem:[%s10294_s1 + $0x108] ss:$16 sps:$4 sm:$0xff]  }
   0xd   :  { %v6802_v36 = vld [vmem:[%s10294_s1 + $0x124] ss:$16 sps:$4 sm:$0xff]   ;;  %v6804_v37 = vld [vmem:[%s10294_s1 + $0x12c] ss:$16 sps:$4 sm:$0xff]   ;;  %v6806_v38 = vld [vmem:[%s10294_s1 + $0x120] ss:$16 sps:$4 sm:$0xff]  }
   0xe   :  { %v6807_v39 = vld [vmem:[%s10294_s1 + $0x128] ss:$16 sps:$4 sm:$0xff]   ;;  %v6808_v40 = vld [vmem:[%s10294_s1 + $0x144] ss:$16 sps:$4 sm:$0xff]   ;;  %v6810_v41 = vld [vmem:[%s10294_s1 + $0x14c] ss:$16 sps:$4 sm:$0xff]  }
   0xf   :  { %1202 = vmatpush1.bf16.msra.mxu0 %v6770_v14  ;;  %1908 = vmatpush1.bf16.msra.mxu1 %v6771_v15  ;;  %v6812_v42 = vld [vmem:[%s10294_s1 + $0x140] ss:$16 sps:$4 sm:$0xff]   ;;  %v6813_v43 = vld [vmem:[%s10294_s1 + $0x148] ss:$16 sps:$4 sm:$0xff]   ;;  %v6814_v44 = vld [vmem:[%s10294_s1 + $0x164] ss:$16 sps:$4 sm:$0xff]  }
  0x10   :  { %1203 = vmatprep.subr.bf16.mxu0 %v6772_v16  ;;  %1909 = vmatprep.subr.bf16.mxu1 %v6774_v17  ;;  %v6816_v45 = vld [vmem:[%s10294_s1 + $0x16c] ss:$16 sps:$4 sm:$0xff]   ;;  %v6818_v47 = vld [vmem:[%s10294_s1 + $0x160] ss:$16 sps:$4 sm:$0xff]   ;;  %v6819_v48 = vld [vmem:[%s10294_s1 + $0x168] ss:$16 sps:$4 sm:$0xff]  }
  0x11   :  { %v22_v46 = vld [vmem:[%s10293_s0 + $0x8] sm:$0xff]  ;;  %v6820_v50 = vld [vmem:[%s10294_s1 + $0x184] ss:$16 sps:$4 sm:$0xff]   ;;  %v6824_v53 = vld [vmem:[%s10294_s1 + $0x180] ss:$16 sps:$4 sm:$0xff]  }
  0x12   :  { %v26_v49 = vld [vmem:[%s10293_s0 + $0x28] sm:$0xff]  ;;  %v6826_v55 = vld [vmem:[%s10294_s1 + $0x1a4] ss:$16 sps:$4 sm:$0xff]   ;;  %v6830_v57 = vld [vmem:[%s10294_s1 + $0x1a0] ss:$16 sps:$4 sm:$0xff]  }
  0x13   :  { %1204 = vmatpush1.bf16.msra.mxu0 %v6776_v18  ;;  %1910 = vmatpush1.bf16.msra.mxu1 %v6777_v19  ;;  %v278_v51 = vpack.c.bf16 %v26_v49, %v22_v46  ;;  %v6822_v52 = vld [vmem:[%s10294_s1 + $0x18c] ss:$16 sps:$4 sm:$0xff]   ;;  %v6825_v54 = vld [vmem:[%s10294_s1 + $0x188] ss:$16 sps:$4 sm:$0xff]   ;;  %v6832_v59 = vld [vmem:[%s10294_s1 + $0x1c4] ss:$16 sps:$4 sm:$0xff]  }
  0x14   :  { %1205 = vmatprep.subr.bf16.mxu0 %v6778_v20  ;;  %1911 = vmatprep.subr.bf16.mxu1 %v6780_v21  ;;  %v6828_v56 = vld [vmem:[%s10294_s1 + $0x1ac] ss:$16 sps:$4 sm:$0xff]   ;;  %v6831_v58 = vld [vmem:[%s10294_s1 + $0x1a8] ss:$16 sps:$4 sm:$0xff]   ;;  %v6836_v61 = vld [vmem:[%s10294_s1 + $0x1c0] ss:$16 sps:$4 sm:$0xff]  }
  0x15   :  { %1227 = vmatprep.mubr.bf16.mxu0 %v278_v51  ;;  %1933 = vmatprep.mubr.bf16.mxu1 %v278_v51  ;;  %v6834_v60 = vld [vmem:[%s10294_s1 + $0x1cc] ss:$16 sps:$4 sm:$0xff]   ;;  %v6837_v62 = vld [vmem:[%s10294_s1 + $0x1c8] ss:$16 sps:$4 sm:$0xff]   ;;  %v6838_v63 = vld [vmem:[%s10294_s1 + $0x1e4] ss:$16 sps:$4 sm:$0xff]  }
  0x16   :  { %v6840_v0 = vld [vmem:[%s10294_s1 + $0x1ec] ss:$16 sps:$4 sm:$0xff]   ;;  %v6842_v1 = vld [vmem:[%s10294_s1 + $0x1e0] ss:$16 sps:$4 sm:$0xff]   ;;  %v6843_v2 = vld [vmem:[%s10294_s1 + $0x1e8] ss:$16 sps:$4 sm:$0xff]  }
  0x17   :  { %1206 = vmatpush1.bf16.msra.mxu0 %v6782_v22  ;;  %1912 = vmatpush1.bf16.msra.mxu1 %v6783_v23  ;;  %v21_v3 = vld [vmem:[%s10293_s0] sm:$0xff]  ;;  %v6849_v6 = vld [vmem:[%s10294_s1 + $0x20c] ss:$16 sps:$4 sm:$0xff]   ;;  %v6847_v11 = vld [vmem:[%s10294_s1 + $0x208] ss:$16 sps:$4 sm:$0xff]  }
  0x18   :  { %1207 = vmatprep.subr.bf16.mxu0 %v6784_v24  ;;  %1913 = vmatprep.subr.bf16.mxu1 %v6786_v25  ;;  %v25_v4 = vld [vmem:[%s10293_s0 + $0x20] sm:$0xff]  ;;  %v30_v7 = vld [vmem:[%s10293_s0 + $0x48] sm:$0xff] }
  0x19   :  { %v6846_v5 = vld [vmem:[%s10294_s1 + $0x204] ss:$16 sps:$4 sm:$0xff]   ;;  %v34_v8 = vld [vmem:[%s10293_s0 + $0x68] sm:$0xff]  ;;  %v277_v9 = vpack.c.bf16 %v25_v4, %v21_v3  ;;  %v6844_v10 = vld [vmem:[%s10294_s1 + $0x200] ss:$16 sps:$4 sm:$0xff]  }
  0x1a   :  { %v282_v12 = vpack.c.bf16 %v34_v8, %v30_v7  ;;  %v6852_v13 = vld [vmem:[%s10294_s1 + $0x224] ss:$16 sps:$4 sm:$0xff]   ;;  %v6855_v14 = vld [vmem:[%s10294_s1 + $0x22c] ss:$16 sps:$4 sm:$0xff]   ;;  %v6850_v18 = vld [vmem:[%s10294_s1 + $0x220] ss:$16 sps:$4 sm:$0xff]  }
  0x1b   :  { %1208 = vmatpush1.bf16.msra.mxu0 %v6788_v26  ;;  %1914 = vmatpush1.bf16.msra.mxu1 %v6789_v27  ;;  %v29_v15 = vld [vmem:[%s10293_s0 + $0x40] sm:$0xff]  ;;  %v38_v17 = vld [vmem:[%s10293_s0 + $0x88] sm:$0xff] }
  0x1c   :  { %1209 = vmatprep.subr.bf16.mxu0 %v6790_v28  ;;  %1915 = vmatprep.subr.bf16.mxu1 %v6792_v29  ;;  %v33_v16 = vld [vmem:[%s10293_s0 + $0x60] sm:$0xff]  ;;  %v6853_v19 = vld [vmem:[%s10294_s1 + $0x228] ss:$16 sps:$4 sm:$0xff]   ;;  %v6861_v22 = vld [vmem:[%s10294_s1 + $0x24c] ss:$16 sps:$4 sm:$0xff]  }
  0x1d   :  { %v42_v20 = vld [vmem:[%s10293_s0 + $0xa8] sm:$0xff]  ;;  %v6858_v21 = vld [vmem:[%s10294_s1 + $0x244] ss:$16 sps:$4 sm:$0xff]   ;;  %v281_v23 = vpack.c.bf16 %v33_v16, %v29_v15  ;;  %v6856_v25 = vld [vmem:[%s10294_s1 + $0x240] ss:$16 sps:$4 sm:$0xff]  }
  0x1e   :  { %v286_v24 = vpack.c.bf16 %v42_v20, %v38_v17  ;;  %v6859_v26 = vld [vmem:[%s10294_s1 + $0x248] ss:$16 sps:$4 sm:$0xff]   ;;  %v37_v27 = vld [vmem:[%s10293_s0 + $0x80] sm:$0xff]  ;;  %v6867_v29 = vld [vmem:[%s10294_s1 + $0x26c] ss:$16 sps:$4 sm:$0xff]  }
  0x1f   :  { %1210 = vmatpush1.bf16.msra.mxu0 %v6794_v30  ;;  %1916 = vmatpush1.bf16.msra.mxu1 %v6795_v31  ;;  %v6864_v28 = vld [vmem:[%s10294_s1 + $0x264] ss:$16 sps:$4 sm:$0xff]   ;;  %v46_v31 = vld [vmem:[%s10293_s0 + $0xc8] sm:$0xff]  ;;  %v6892_v3 = vld [vmem:[%s10294_s1 + $0x300] ss:$16 sps:$4 sm:$0xff]  }
  0x20   :  { %1211 = vmatprep.subr.bf16.mxu0 %v6796_v32  ;;  %1917 = vmatprep.subr.bf16.mxu1 %v6798_v33  ;;  %v41_v30 = vld [vmem:[%s10293_s0 + $0xa0] sm:$0xff]  ;;  %v50_v32 = vld [vmem:[%s10293_s0 + $0xe8] sm:$0xff] }
  0x21   :  { %v6862_v33 = vld [vmem:[%s10294_s1 + $0x260] ss:$16 sps:$4 sm:$0xff]   ;;  %v58_v46 = vld [vmem:[%s10293_s0 + $0x128] sm:$0xff]  ;;  %v6882_v49 = vld [vmem:[%s10294_s1 + $0x2c4] ss:$16 sps:$4 sm:$0xff]  }
  0x22   :  { %v6895_v4 = vld [vmem:[%s10294_s1 + $0x308] ss:$16 sps:$4 sm:$0xff]   ;;  %v61_v7 = vld [vmem:[%s10293_s0 + $0x140] sm:$0xff] }
  0x23   :  { %1212 = vmatpush1.bf16.msra.mxu0 %v6800_v34  ;;  %1918 = vmatpush1.bf16.msra.mxu1 %v6801_v35  ;;  %v6865_v34 = vld [vmem:[%s10294_s1 + $0x268] ss:$16 sps:$4 sm:$0xff]   ;;  %v6870_v35 = vld [vmem:[%s10294_s1 + $0x284] ss:$16 sps:$4 sm:$0xff]   ;;  %v6904_v16 = vld [vmem:[%s10294_s1 + $0x340] ss:$16 sps:$4 sm:$0xff]  }
  0x24   :  { %1213 = vmatprep.subr.bf16.mxu0 %v6802_v36  ;;  %1919 = vmatprep.subr.bf16.mxu1 %v6804_v37  ;;  %v6873_v36 = vld [vmem:[%s10294_s1 + $0x28c] ss:$16 sps:$4 sm:$0xff]   ;;  %v285_v37 = vpack.c.bf16 %v41_v30, %v37_v27  ;;  %v65_v8 = vld [vmem:[%s10293_s0 + $0x160] sm:$0xff]  ;;  %v6907_v17 = vld [vmem:[%s10294_s1 + $0x348] ss:$16 sps:$4 sm:$0xff]  }
  0x25   :  { %v297_v15 = vpack.c.bf16 %v65_v8, %v61_v7  ;;  %v73_v20 = vld [vmem:[%s10293_s0 + $0x1a0] sm:$0xff]  ;;  %v6913_v27 = vld [vmem:[%s10294_s1 + $0x368] ss:$16 sps:$4 sm:$0xff]   ;;  %v6915_v30 = vld [vmem:[%s10294_s1 + $0x36c] ss:$16 sps:$4 sm:$0xff]  }
  0x27   :  { %1214 = vmatpush1.bf16.msra.mxu0 %v6806_v38  ;;  %1920 = vmatpush1.bf16.msra.mxu1 %v6807_v39  ;;  %v290_v38 = vpack.c.bf16 %v50_v32, %v46_v31  ;;  %v6868_v39 = vld [vmem:[%s10294_s1 + $0x280] ss:$16 sps:$4 sm:$0xff]   ;;  %v86_v31 = vld [vmem:[%s10293_s0 + $0x208] sm:$0xff] }
  0x28   :  { %1215 = vmatprep.subr.bf16.mxu0 %v6808_v40  ;;  %1921 = vmatprep.subr.bf16.mxu1 %v6810_v41  ;;  %v6871_v40 = vld [vmem:[%s10294_s1 + $0x288] ss:$16 sps:$4 sm:$0xff]   ;;  %v6876_v41 = vld [vmem:[%s10294_s1 + $0x2a4] ss:$16 sps:$4 sm:$0xff]  }
  0x29   :  { %v90_v32 = vld [vmem:[%s10293_s0 + $0x228] sm:$0xff] }
  0x2b   :  { %1216 = vmatpush1.bf16.msra.mxu0 %v6812_v42  ;;  %1922 = vmatpush1.bf16.msra.mxu1 %v6813_v43  ;;  %v6879_v42 = vld [vmem:[%s10294_s1 + $0x2ac] ss:$16 sps:$4 sm:$0xff]   ;;  %v45_v43 = vld [vmem:[%s10293_s0 + $0xc0] sm:$0xff] }
  0x2c   :  { %1217 = vmatprep.subr.bf16.mxu0 %v6814_v44  ;;  %1923 = vmatprep.subr.bf16.mxu1 %v6816_v45  ;;  %v49_v44 = vld [vmem:[%s10293_s0 + $0xe0] sm:$0xff]  ;;  %v54_v45 = vld [vmem:[%s10293_s0 + $0x108] sm:$0xff] }
  0x2d   :  { %v289_v51 = vpack.c.bf16 %v49_v44, %v45_v43  ;;  %v6919_v43 = vld [vmem:[%s10294_s1 + $0x388] ss:$16 sps:$4 sm:$0xff]   ;;  %v93_v44 = vld [vmem:[%s10293_s0 + $0x240] sm:$0xff] }
  0x2f   :  { %1218 = vmatpush1.bf16.msra.mxu0 %v6818_v47  ;;  %1924 = vmatpush1.bf16.msra.mxu1 %v6819_v48  ;;  %v6874_v47 = vld [vmem:[%s10294_s1 + $0x2a0] ss:$16 sps:$4 sm:$0xff]   ;;  %v6877_v48 = vld [vmem:[%s10294_s1 + $0x2a8] ss:$16 sps:$4 sm:$0xff]  }
  0x30   :  { %1219 = vmatprep.subr.bf16.mxu0 %v6820_v50  ;;  %1925 = vmatprep.subr.bf16.mxu1 %v6822_v52  ;;  %v6885_v50 = vld [vmem:[%s10294_s1 + $0x2cc] ss:$16 sps:$4 sm:$0xff]   ;;  %v294_v52 = vpack.c.bf16 %v58_v46, %v54_v45  ;;  %v97_v45 = vld [vmem:[%s10293_s0 + $0x260] sm:$0xff] }
  0x31   :  { %v6921_v46 = vld [vmem:[%s10294_s1 + $0x38c] ss:$16 sps:$4 sm:$0xff]  }
  0x33   :  { %1220 = vmatpush1.bf16.msra.mxu0 %v6824_v53  ;;  %1926 = vmatpush1.bf16.msra.mxu1 %v6825_v54  ;;  %v6880_v53 = vld [vmem:[%s10294_s1 + $0x2c0] ss:$16 sps:$4 sm:$0xff]   ;;  %v6883_v54 = vld [vmem:[%s10294_s1 + $0x2c8] ss:$16 sps:$4 sm:$0xff]  }
  0x34   :  { %1221 = vmatprep.subr.bf16.mxu0 %v6826_v55  ;;  %1927 = vmatprep.subr.bf16.mxu1 %v6828_v56  ;;  %v53_v55 = vld [vmem:[%s10293_s0 + $0x100] sm:$0xff] }
  0x35   :  { %v6888_v56 = vld [vmem:[%s10294_s1 + $0x2e4] ss:$16 sps:$4 sm:$0xff]  }
  0x37   :  { %1222 = vmatpush1.bf16.msra.mxu0 %v6830_v57  ;;  %1928 = vmatpush1.bf16.msra.mxu1 %v6831_v58  ;;  %v6891_v57 = vld [vmem:[%s10294_s1 + $0x2ec] ss:$16 sps:$4 sm:$0xff]   ;;  %v57_v58 = vld [vmem:[%s10293_s0 + $0x120] sm:$0xff] }
  0x38   :  { %1223 = vmatprep.subr.bf16.mxu0 %v6832_v59  ;;  %1929 = vmatprep.subr.bf16.mxu1 %v6834_v60  ;;  %v62_v59 = vld [vmem:[%s10293_s0 + $0x148] sm:$0xff] }
  0x39   :  { %v66_v60 = vld [vmem:[%s10293_s0 + $0x168] sm:$0xff] }
  0x3b   :  { %1224 = vmatpush1.bf16.msra.mxu0 %v6836_v61  ;;  %1930 = vmatpush1.bf16.msra.mxu1 %v6837_v62  ;;  %v6886_v61 = vld [vmem:[%s10294_s1 + $0x2e0] ss:$16 sps:$4 sm:$0xff]   ;;  %v6889_v62 = vld [vmem:[%s10294_s1 + $0x2e8] ss:$16 sps:$4 sm:$0xff]  }
  0x3c   :  { %1225 = vmatprep.subr.bf16.mxu0 %v6838_v63  ;;  %1931 = vmatprep.subr.bf16.mxu1 %v6840_v0  ;;  %v6894_v63 = vld [vmem:[%s10294_s1 + $0x304] ss:$16 sps:$4 sm:$0xff]   ;;  %v6897_v0 = vld [vmem:[%s10294_s1 + $0x30c] ss:$16 sps:$4 sm:$0xff]  }
  0x3f   :  { %1226 = vmatpush1.bf16.msra.mxu0 %v6842_v1  ;;  %1932 = vmatpush1.bf16.msra.mxu1 %v6843_v2  ;;  %v293_v1 = vpack.c.bf16 %v57_v58, %v53_v55  ;;  %v298_v2 = vpack.c.bf16 %v66_v60, %v62_v59  ;;  %v6924_v58 = vld [vmem:[%s10294_s1 + $0x3a4] ss:$16 sps:$4 sm:$0xff]   ;;  %v6925_v59 = vld [vmem:[%s10294_s1 + $0x3a8] ss:$16 sps:$4 sm:$0xff]  }
  0x40   :  { %1548 = vmatprep.subr.bf16.mxu0 %v6846_v5  ;;  %2254 = vmatprep.subr.bf16.mxu1 %v6849_v6  ;;  %v6900_v5 = vld [vmem:[%s10294_s1 + $0x324] ss:$16 sps:$4 sm:$0xff]   ;;  %v6903_v6 = vld [vmem:[%s10294_s1 + $0x32c] ss:$16 sps:$4 sm:$0xff]  }
  0x41   :  { %v109_v60 = vld [vmem:[%s10293_s0 + $0x2c0] sm:$0xff] }
  0x42   :  { %1228 = vmatmul.mubr.bf16.vlgmr.msra.gmra.mrb[0].mxu0 %v277_v9  ;;  %1934 = vmatmul.mubr.bf16.vlgmr.msra.gmra.mrb[0].mxu1 %v277_v9  ;;  %v70_v9 = vld [vmem:[%s10293_s0 + $0x188] sm:$0xff] }
  0x43   :  { %1549 = vmatpush1.bf16.msra.mxu0 %v6844_v10  ;;  %2255 = vmatpush1.bf16.msra.mxu1 %v6847_v11  ;;  %v74_v10 = vld [vmem:[%s10293_s0 + $0x1a8] sm:$0xff]  ;;  %v6898_v11 = vld [vmem:[%s10294_s1 + $0x320] ss:$16 sps:$4 sm:$0xff]  }
  0x44   :  { %1237 = vmatprep.mubr.bf16.mxu0 %v282_v12  ;;  %1943 = vmatprep.mubr.bf16.mxu1 %v282_v12  ;;  %v6901_v12 = vld [vmem:[%s10294_s1 + $0x328] ss:$16 sps:$4 sm:$0xff]  }
  0x45   :  { %1550 = vmatprep.subr.bf16.mxu0 %v6852_v13  ;;  %2256 = vmatprep.subr.bf16.mxu1 %v6855_v14  ;;  %v6906_v13 = vld [vmem:[%s10294_s1 + $0x344] ss:$16 sps:$4 sm:$0xff]   ;;  %v6909_v14 = vld [vmem:[%s10294_s1 + $0x34c] ss:$16 sps:$4 sm:$0xff]  }
  0x47   :  { %1551 = vmatpush1.bf16.msra.mxu0 %v6850_v18  ;;  %2257 = vmatpush1.bf16.msra.mxu1 %v6853_v19  ;;  %v302_v18 = vpack.c.bf16 %v74_v10, %v70_v9  ;;  %v69_v19 = vld [vmem:[%s10293_s0 + $0x180] sm:$0xff] }
  0x48   :  { %1552 = vmatprep.subr.bf16.mxu0 %v6858_v21  ;;  %2258 = vmatprep.subr.bf16.mxu1 %v6861_v22  ;;  %v78_v21 = vld [vmem:[%s10293_s0 + $0x1c8] sm:$0xff]  ;;  %v6928_v9 = vld [vmem:[%s10294_s1 + $0x3c0] ss:$16 sps:$4 sm:$0xff]   ;;  %v6930_v10 = vld [vmem:[%s10294_s1 + $0x3c4] ss:$16 sps:$4 sm:$0xff]  }
  0x49   :  { %v82_v22 = vld [vmem:[%s10293_s0 + $0x1e8] sm:$0xff] }
  0x4a   :  { %1238 = vmatmul.mubr.bf16.gmra.mrb[4].mxu0 %v281_v23  ;;  %1944 = vmatmul.mubr.bf16.gmra.mrb[4].mxu1 %v281_v23  ;;  %v301_v23 = vpack.c.bf16 %v73_v20, %v69_v19 }
  0x4b   :  { %1247 = vmatprep.mubr.bf16.mxu0 %v286_v24  ;;  %1953 = vmatprep.mubr.bf16.mxu1 %v286_v24  ;;  %v306_v24 = vpack.c.bf16 %v82_v22, %v78_v21 }
  0x4c   :  { %1553 = vmatpush1.bf16.msra.mxu0 %v6856_v25  ;;  %2259 = vmatpush1.bf16.msra.mxu1 %v6859_v26  ;;  %v6910_v25 = vld [vmem:[%s10294_s1 + $0x360] ss:$16 sps:$4 sm:$0xff]   ;;  %v6912_v26 = vld [vmem:[%s10294_s1 + $0x364] ss:$16 sps:$4 sm:$0xff]  }
  0x4d   :  { %1554 = vmatprep.subr.bf16.mxu0 %v6864_v28  ;;  %2260 = vmatprep.subr.bf16.mxu1 %v6867_v29  ;;  %v77_v28 = vld [vmem:[%s10293_s0 + $0x1c0] sm:$0xff] }
  0x4e   :  { %v81_v29 = vld [vmem:[%s10293_s0 + $0x1e0] sm:$0xff] }
  0x50   :  { %1555 = vmatpush1.bf16.msra.mxu0 %v6862_v33  ;;  %2261 = vmatpush1.bf16.msra.mxu1 %v6865_v34  ;;  %v305_v33 = vpack.c.bf16 %v81_v29, %v77_v28  ;;  %v310_v34 = vpack.c.bf16 %v90_v32, %v86_v31 }
  0x51   :  { %1556 = vmatprep.subr.bf16.mxu0 %v6870_v35  ;;  %2262 = vmatprep.subr.bf16.mxu1 %v6873_v36  ;;  %v85_v35 = vld [vmem:[%s10293_s0 + $0x200] sm:$0xff] }
  0x52   :  { %1248 = vmatmul.mubr.bf16.gmra.mrb[8].mxu0 %v285_v37  ;;  %1954 = vmatmul.mubr.bf16.gmra.mrb[8].mxu1 %v285_v37  ;;  %v89_v36 = vld [vmem:[%s10293_s0 + $0x220] sm:$0xff]  ;;  %v94_v37 = vld [vmem:[%s10293_s0 + $0x248] sm:$0xff] }
  0x53   :  { %1257 = vmatprep.mubr.bf16.mxu0 %v290_v38  ;;  %1963 = vmatprep.mubr.bf16.mxu1 %v290_v38  ;;  %v98_v38 = vld [vmem:[%s10293_s0 + $0x268] sm:$0xff] }
  0x54   :  { %1557 = vmatpush1.bf16.msra.mxu0 %v6868_v39  ;;  %2263 = vmatpush1.bf16.msra.mxu1 %v6871_v40  ;;  %v309_v39 = vpack.c.bf16 %v89_v36, %v85_v35  ;;  %v314_v40 = vpack.c.bf16 %v98_v38, %v94_v37 }
  0x55   :  { %1558 = vmatprep.subr.bf16.mxu0 %v6876_v41  ;;  %2264 = vmatprep.subr.bf16.mxu1 %v6879_v42  ;;  %v6916_v41 = vld [vmem:[%s10294_s1 + $0x380] ss:$16 sps:$4 sm:$0xff]   ;;  %v6918_v42 = vld [vmem:[%s10294_s1 + $0x384] ss:$16 sps:$4 sm:$0xff]  }
  0x58   :  { %1559 = vmatpush1.bf16.msra.mxu0 %v6874_v47  ;;  %2265 = vmatpush1.bf16.msra.mxu1 %v6877_v48  ;;  %v102_v47 = vld [vmem:[%s10293_s0 + $0x288] sm:$0xff] }
  0x59   :  { %1560 = vmatprep.subr.bf16.mxu0 %v6882_v49  ;;  %2266 = vmatprep.subr.bf16.mxu1 %v6885_v50  ;;  %v106_v48 = vld [vmem:[%s10293_s0 + $0x2a8] sm:$0xff]  ;;  %v313_v49 = vpack.c.bf16 %v97_v45, %v93_v44 }
  0x5a   :  { %1258 = vmatmul.mubr.bf16.gmra.mrb[12].mxu0 %v289_v51  ;;  %1964 = vmatmul.mubr.bf16.gmra.mrb[12].mxu1 %v289_v51  ;;  %v318_v50 = vpack.c.bf16 %v106_v48, %v102_v47  ;;  %v101_v51 = vld [vmem:[%s10293_s0 + $0x280] sm:$0xff] }
  0x5b   :  { %1267 = vmatprep.mubr.bf16.mxu0 %v294_v52  ;;  %1973 = vmatprep.mubr.bf16.mxu1 %v294_v52  ;;  %v105_v52 = vld [vmem:[%s10293_s0 + $0x2a0] sm:$0xff] }
  0x5c   :  { %1561 = vmatpush1.bf16.msra.mxu0 %v6880_v53  ;;  %2267 = vmatpush1.bf16.msra.mxu1 %v6883_v54  ;;  %v110_v53 = vld [vmem:[%s10293_s0 + $0x2c8] sm:$0xff]  ;;  %v317_v55 = vpack.c.bf16 %v105_v52, %v101_v51 }
  0x5d   :  { %1562 = vmatprep.subr.bf16.mxu0 %v6888_v56  ;;  %2268 = vmatprep.subr.bf16.mxu1 %v6891_v57  ;;  %v114_v54 = vld [vmem:[%s10293_s0 + $0x2e8] sm:$0xff]  ;;  %v6922_v57 = vld [vmem:[%s10294_s1 + $0x3a0] ss:$16 sps:$4 sm:$0xff]  }
  0x5e   :  { %v322_v56 = vpack.c.bf16 %v114_v54, %v110_v53 }
  0x60   :  { %1563 = vmatpush1.bf16.msra.mxu0 %v6886_v61  ;;  %2269 = vmatpush1.bf16.msra.mxu1 %v6889_v62  ;;  %v113_v61 = vld [vmem:[%s10293_s0 + $0x2e0] sm:$0xff]  ;;  %v6927_v62 = vld [vmem:[%s10294_s1 + $0x3ac] ss:$16 sps:$4 sm:$0xff]  }
  0x61   :  { %1564 = vmatprep.subr.bf16.mxu0 %v6894_v63  ;;  %2270 = vmatprep.subr.bf16.mxu1 %v6897_v0  ;;  %v118_v63 = vld [vmem:[%s10293_s0 + $0x308] sm:$0xff] }
  0x62   :  { %1268 = vmatmul.mubr.bf16.gmra.mrb[16].mxu0 %v293_v1  ;;  %1974 = vmatmul.mubr.bf16.gmra.mrb[16].mxu1 %v293_v1  ;;  %v122_v0 = vld [vmem:[%s10293_s0 + $0x328] sm:$0xff]  ;;  %v321_v1 = vpack.c.bf16 %v113_v61, %v109_v60 }
  0x63   :  { %1277 = vmatprep.mubr.bf16.mxu0 %v298_v2  ;;  %1983 = vmatprep.mubr.bf16.mxu1 %v298_v2  ;;  %v326_v2 = vpack.c.bf16 %v122_v0, %v118_v63 }
  0x64   :  { %1565 = vmatpush1.bf16.msra.mxu0 %v6892_v3  ;;  %2271 = vmatpush1.bf16.msra.mxu1 %v6895_v4  ;;  %v117_v3 = vld [vmem:[%s10293_s0 + $0x300] sm:$0xff] }
  0x65   :  { %1566 = vmatprep.subr.bf16.mxu0 %v6900_v5  ;;  %2272 = vmatprep.subr.bf16.mxu1 %v6903_v6  ;;  %v121_v4 = vld [vmem:[%s10293_s0 + $0x320] sm:$0xff]  ;;  %v126_v5 = vld [vmem:[%s10293_s0 + $0x348] sm:$0xff] }
  0x66   :  { %v130_v6 = vld [vmem:[%s10293_s0 + $0x368] sm:$0xff]  ;;  %v325_v7 = vpack.c.bf16 %v121_v4, %v117_v3 }
  0x67   :  { %v330_v8 = vpack.c.bf16 %v130_v6, %v126_v5 }
  0x68   :  { %1567 = vmatpush1.bf16.msra.mxu0 %v6898_v11  ;;  %2273 = vmatpush1.bf16.msra.mxu1 %v6901_v12  ;;  %v6931_v11 = vld [vmem:[%s10294_s1 + $0x3c8] ss:$16 sps:$4 sm:$0xff]   ;;  %v125_v12 = vld [vmem:[%s10293_s0 + $0x340] sm:$0xff] }
  0x69   :  { %1568 = vmatprep.subr.bf16.mxu0 %v6906_v13  ;;  %2274 = vmatprep.subr.bf16.mxu1 %v6909_v14  ;;  %v129_v13 = vld [vmem:[%s10293_s0 + $0x360] sm:$0xff]  ;;  %v6933_v14 = vld [vmem:[%s10294_s1 + $0x3cc] ss:$16 sps:$4 sm:$0xff]  }
  0x6a   :  { %1278 = vmatmul.mubr.bf16.gmra.mrb[20].mxu0 %v297_v15  ;;  %1984 = vmatmul.mubr.bf16.gmra.mrb[20].mxu1 %v297_v15  ;;  %v134_v15 = vld [vmem:[%s10293_s0 + $0x388] sm:$0xff] }
  0x6b   :  { %1287 = vmatprep.mubr.bf16.mxu0 %v302_v18  ;;  %1993 = vmatprep.mubr.bf16.mxu1 %v302_v18 }
  0x6c   :  { %1569 = vmatpush1.bf16.msra.mxu0 %v6904_v16  ;;  %2275 = vmatpush1.bf16.msra.mxu1 %v6907_v17  ;;  %v138_v16 = vld [vmem:[%s10293_s0 + $0x3a8] sm:$0xff] }
  0x6d   :  { %1570 = vmatprep.subr.bf16.mxu0 %v6912_v26  ;;  %2276 = vmatprep.subr.bf16.mxu1 %v6915_v30 }
  0x70   :  { %1571 = vmatpush1.bf16.msra.mxu0 %v6910_v25  ;;  %2277 = vmatpush1.bf16.msra.mxu1 %v6913_v27 }
  0x71   :  { %1572 = vmatprep.subr.bf16.mxu0 %v6918_v42  ;;  %2278 = vmatprep.subr.bf16.mxu1 %v6921_v46 }
  0x72   :  { %1288 = vmatmul.mubr.bf16.gmra.mrb[24].mxu0 %v301_v23  ;;  %1994 = vmatmul.mubr.bf16.gmra.mrb[24].mxu1 %v301_v23 }
  0x73   :  { %1297 = vmatprep.mubr.bf16.mxu0 %v306_v24  ;;  %2003 = vmatprep.mubr.bf16.mxu1 %v306_v24 }
  0x74   :  { %1573 = vmatpush1.bf16.msra.mxu0 %v6916_v41  ;;  %2279 = vmatpush1.bf16.msra.mxu1 %v6919_v43 }
  0x75   :  { %1574 = vmatprep.subr.bf16.mxu0 %v6924_v58  ;;  %2280 = vmatprep.subr.bf16.mxu1 %v6927_v62 }
  0x78   :  { %1575 = vmatpush1.bf16.msra.mxu0 %v6922_v57  ;;  %2281 = vmatpush1.bf16.msra.mxu1 %v6925_v59 }
  0x79   :  { %1576 = vmatprep.subr.bf16.mxu0 %v6930_v10  ;;  %2282 = vmatprep.subr.bf16.mxu1 %v6933_v14 }
  0x7a   :  { %1298 = vmatmul.mubr.bf16.gmra.mrb[28].mxu0 %v305_v33  ;;  %2004 = vmatmul.mubr.bf16.gmra.mrb[28].mxu1 %v305_v33 }
  0x7b   :  { %1307 = vmatprep.mubr.bf16.mxu0 %v310_v34  ;;  %2013 = vmatprep.mubr.bf16.mxu1 %v310_v34 }
  0x7c   :  { %1577 = vmatpush1.bf16.msra.mxu0 %v6928_v9 }
  0x82   :  { %1308 = vmatmul.mubr.bf16.gmra.mrb[32].mxu0 %v309_v39  ;;  %2014 = vmatmul.mubr.bf16.gmra.mrb[32].mxu1 %v309_v39 }
  0x83   :  { %1317 = vmatprep.mubr.bf16.mxu0 %v314_v40  ;;  %2023 = vmatprep.mubr.bf16.mxu1 %v314_v40 }
  0x8a   :  { %1318 = vmatmul.mubr.bf16.gmra.mrb[36].mxu0 %v313_v49  ;;  %2024 = vmatmul.mubr.bf16.gmra.mrb[36].mxu1 %v313_v49 }
  0x8b   :  { %1327 = vmatprep.mubr.bf16.mxu0 %v318_v50  ;;  %2033 = vmatprep.mubr.bf16.mxu1 %v318_v50 }
  0x92   :  { %1328 = vmatmul.mubr.bf16.gmra.mrb[40].mxu0 %v317_v55  ;;  %2034 = vmatmul.mubr.bf16.gmra.mrb[40].mxu1 %v317_v55 }
  0x93   :  { %1337 = vmatprep.mubr.bf16.mxu0 %v322_v56  ;;  %2043 = vmatprep.mubr.bf16.mxu1 %v322_v56 }
  0x9a   :  { %1338 = vmatmul.mubr.bf16.gmra.mrb[44].mxu0 %v321_v1  ;;  %2044 = vmatmul.mubr.bf16.gmra.mrb[44].mxu1 %v321_v1 }
  0x9b   :  { %1347 = vmatprep.mubr.bf16.mxu0 %v326_v2  ;;  %2053 = vmatprep.mubr.bf16.mxu1 %v326_v2 }
  0xa2   :  { %1348 = vmatmul.mubr.bf16.gmra.mrb[48].mxu0 %v325_v7  ;;  %2054 = vmatmul.mubr.bf16.gmra.mrb[48].mxu1 %v325_v7 }
  0xa3   :  { %1357 = vmatprep.mubr.bf16.mxu0 %v330_v8  ;;  %2063 = vmatprep.mubr.bf16.mxu1 %v330_v8 }
  0xa4   :  { %10 = vsyncpa [#allocation3], 0  ;;  %v329_v17 = vpack.c.bf16 %v129_v13, %v125_v12  ;;  %2283 = vmatpush1.bf16.msra.mxu1 %v6931_v11  ;;  %v334_v18 = vpack.c.bf16 %v138_v16, %v134_v15  ;;  %v133_v19 = vld [vmem:[%s10293_s0 + $0x380] sm:$0xff]  ;;  %v142_v21 = vld [vmem:[%s10293_s0 + $0x3c8] sm:$0xff] }
  0xa5   :  { %v137_v20 = vld [vmem:[%s10293_s0 + $0x3a0] sm:$0xff]  ;;  %v146_v22 = vld [vmem:[%s10293_s0 + $0x3e8] sm:$0xff] }
  0xa6   :  { %v333_v23 = vpack.c.bf16 %v137_v20, %v133_v19  ;;  %v338_v24 = vpack.c.bf16 %v146_v22, %v142_v21  ;;  %v6934_v25 = vld [vmem:[%s10294_s1 + $0x3e0] ss:$16 sps:$4 sm:$0xff]   ;;  %v6936_v26 = vld [vmem:[%s10294_s1 + $0x3e4] ss:$16 sps:$4 sm:$0xff]   ;;  %v6937_v27 = vld [vmem:[%s10294_s1 + $0x3e8] ss:$16 sps:$4 sm:$0xff]  }
  0xa7   :  { %v141_v28 = vld [vmem:[%s10293_s0 + $0x3c0] sm:$0xff]  ;;  %v6939_v30 = vld [vmem:[%s10294_s1 + $0x3ec] ss:$16 sps:$4 sm:$0xff]   ;;  %1578 = vmatprep.subr.bf16.mxu0 %v6936_v26 }
  0xa8   :  { %v145_v29 = vld [vmem:[%s10293_s0 + $0x3e0] sm:$0xff]  ;;  %v150_v31 = vld [vmem:[%s10293_s0 + $0x408] sm:$0xff]  ;;  %2284 = vmatprep.subr.bf16.mxu1 %v6939_v30  ;;  %1579 = vmatpush1.bf16.msra.mxu0 %v6934_v25 }
  0xa9   :  { %v154_v32 = vld [vmem:[%s10293_s0 + $0x428] sm:$0xff]  ;;  %v337_v33 = vpack.c.bf16 %v145_v29, %v141_v28  ;;  %2285 = vmatpush1.bf16.msra.mxu1 %v6937_v27  ;;  %v149_v35 = vld [vmem:[%s10293_s0 + $0x400] sm:$0xff] }
  0xaa   :  { %1358 = vmatmul.mubr.bf16.gmra.mrb[52].mxu0 %v329_v17  ;;  %2064 = vmatmul.mubr.bf16.gmra.mrb[52].mxu1 %v329_v17  ;;  %v342_v34 = vpack.c.bf16 %v154_v32, %v150_v31  ;;  %v153_v36 = vld [vmem:[%s10293_s0 + $0x420] sm:$0xff]  ;;  %v158_v37 = vld [vmem:[%s10293_s0 + $0x448] sm:$0xff] }
  0xab   :  { %1367 = vmatprep.mubr.bf16.mxu0 %v334_v18  ;;  %2073 = vmatprep.mubr.bf16.mxu1 %v334_v18  ;;  %v162_v38 = vld [vmem:[%s10293_s0 + $0x468] sm:$0xff]  ;;  %v341_v39 = vpack.c.bf16 %v153_v36, %v149_v35  ;;  %v6942_v41 = vld [vmem:[%s10296_s3 + $0x4] ss:$16 sps:$4 sm:$0xff]  }
  0xac   :  { %v346_v40 = vpack.c.bf16 %v162_v38, %v158_v37  ;;  %v157_v42 = vld [vmem:[%s10293_s0 + $0x440] sm:$0xff]  ;;  %v6945_v44 = vld [vmem:[%s10296_s3 + $0xc] ss:$16 sps:$4 sm:$0xff]   ;;  %3781 = vmatprep.subr.bf16.mxu0 %v6942_v41 }
  0xad   :  { %v161_v43 = vld [vmem:[%s10293_s0 + $0x460] sm:$0xff]  ;;  %v166_v45 = vld [vmem:[%s10293_s0 + $0x488] sm:$0xff]  ;;  %4487 = vmatprep.subr.bf16.mxu1 %v6945_v44 }
  0xae   :  { %v170_v46 = vld [vmem:[%s10293_s0 + $0x4a8] sm:$0xff]  ;;  %v345_v47 = vpack.c.bf16 %v161_v43, %v157_v42  ;;  %v165_v49 = vld [vmem:[%s10293_s0 + $0x480] sm:$0xff] }
  0xaf   :  { %v350_v48 = vpack.c.bf16 %v170_v46, %v166_v45  ;;  %v169_v50 = vld [vmem:[%s10293_s0 + $0x4a0] sm:$0xff]  ;;  %v174_v51 = vld [vmem:[%s10293_s0 + $0x4c8] sm:$0xff] }
  0xb0   :  { %v178_v52 = vld [vmem:[%s10293_s0 + $0x4e8] sm:$0xff]  ;;  %v349_v53 = vpack.c.bf16 %v169_v50, %v165_v49  ;;  %v173_v55 = vld [vmem:[%s10293_s0 + $0x4c0] sm:$0xff] }
  0xb1   :  { %v354_v54 = vpack.c.bf16 %v178_v52, %v174_v51  ;;  %v177_v56 = vld [vmem:[%s10293_s0 + $0x4e0] sm:$0xff]  ;;  %v182_v57 = vld [vmem:[%s10293_s0 + $0x508] sm:$0xff] }
  0xb2   :  { %1368 = vmatmul.mubr.bf16.gmra.mrb[56].mxu0 %v333_v23  ;;  %2074 = vmatmul.mubr.bf16.gmra.mrb[56].mxu1 %v333_v23  ;;  %v186_v58 = vld [vmem:[%s10293_s0 + $0x528] sm:$0xff]  ;;  %v353_v59 = vpack.c.bf16 %v177_v56, %v173_v55  ;;  %v181_v61 = vld [vmem:[%s10293_s0 + $0x500] sm:$0xff] }
  0xb3   :  { %1377 = vmatprep.mubr.bf16.mxu0 %v338_v24  ;;  %2083 = vmatprep.mubr.bf16.mxu1 %v338_v24  ;;  %v358_v60 = vpack.c.bf16 %v186_v58, %v182_v57  ;;  %v185_v62 = vld [vmem:[%s10293_s0 + $0x520] sm:$0xff]  ;;  %v190_v63 = vld [vmem:[%s10293_s0 + $0x548] sm:$0xff] }
  0xb4   :  { %v194_v0 = vld [vmem:[%s10293_s0 + $0x568] sm:$0xff]  ;;  %v357_v1 = vpack.c.bf16 %v185_v62, %v181_v61  ;;  %v189_v3 = vld [vmem:[%s10293_s0 + $0x540] sm:$0xff] }
  0xb5   :  { %v362_v2 = vpack.c.bf16 %v194_v0, %v190_v63  ;;  %v193_v4 = vld [vmem:[%s10293_s0 + $0x560] sm:$0xff]  ;;  %v198_v5 = vld [vmem:[%s10293_s0 + $0x588] sm:$0xff] }
  0xb6   :  { %v202_v6 = vld [vmem:[%s10293_s0 + $0x5a8] sm:$0xff]  ;;  %v361_v7 = vpack.c.bf16 %v193_v4, %v189_v3  ;;  %v197_v9 = vld [vmem:[%s10293_s0 + $0x580] sm:$0xff] }
  0xb7   :  { %v366_v8 = vpack.c.bf16 %v202_v6, %v198_v5  ;;  %v201_v10 = vld [vmem:[%s10293_s0 + $0x5a0] sm:$0xff]  ;;  %v206_v11 = vld [vmem:[%s10293_s0 + $0x5c8] sm:$0xff]  ;;  %v23_v5 = vld [vmem:[%s10293_s0 + $0x10] sm:$0xff] }
  0xb8   :  { %v210_v12 = vld [vmem:[%s10293_s0 + $0x5e8] sm:$0xff]  ;;  %v365_v13 = vpack.c.bf16 %v201_v10, %v197_v9  ;;  %v205_v15 = vld [vmem:[%s10293_s0 + $0x5c0] sm:$0xff]  ;;  %v27_v6 = vld [vmem:[%s10293_s0 + $0x30] sm:$0xff] }
  0xb9   :  { %v370_v14 = vpack.c.bf16 %v210_v12, %v206_v11  ;;  %v209_v16 = vld [vmem:[%s10293_s0 + $0x5e0] sm:$0xff]  ;;  %v214_v17 = vld [vmem:[%s10293_s0 + $0x608] sm:$0xff]  ;;  %v279_v9 = vpack.c.bf16 %v27_v6, %v23_v5 }
  0xba   :  { %1378 = vmatmul.mubr.bf16.gmra.mrb[60].mxu0 %v337_v33  ;;  %2084 = vmatmul.mubr.bf16.gmra.mrb[60].mxu1 %v337_v33  ;;  %v218_v18 = vld [vmem:[%s10293_s0 + $0x628] sm:$0xff]  ;;  %v369_v19 = vpack.c.bf16 %v209_v16, %v205_v15  ;;  %v213_v21 = vld [vmem:[%s10293_s0 + $0x600] sm:$0xff]  ;;  %v31_v15 = vld [vmem:[%s10293_s0 + $0x50] sm:$0xff] }
  0xbb   :  { %1387 = vmatprep.mubr.bf16.mxu0 %v342_v34  ;;  %2093 = vmatprep.mubr.bf16.mxu1 %v342_v34  ;;  %v374_v20 = vpack.c.bf16 %v218_v18, %v214_v17  ;;  %v217_v22 = vld [vmem:[%s10293_s0 + $0x620] sm:$0xff]  ;;  %v222_v23 = vld [vmem:[%s10293_s0 + $0x648] sm:$0xff]  ;;  %v35_v16 = vld [vmem:[%s10293_s0 + $0x70] sm:$0xff] }
  0xbc   :  { %v226_v24 = vld [vmem:[%s10293_s0 + $0x668] sm:$0xff]  ;;  %v373_v25 = vpack.c.bf16 %v217_v22, %v213_v21  ;;  %v221_v27 = vld [vmem:[%s10293_s0 + $0x640] sm:$0xff]  ;;  %v40_v17 = vld [vmem:[%s10293_s0 + $0x98] sm:$0xff] }
  0xbd   :  { %v378_v26 = vpack.c.bf16 %v226_v24, %v222_v23  ;;  %v225_v28 = vld [vmem:[%s10293_s0 + $0x660] sm:$0xff]  ;;  %v230_v29 = vld [vmem:[%s10293_s0 + $0x688] sm:$0xff]  ;;  %v283_v23 = vpack.c.bf16 %v35_v16, %v31_v15 }
  0xbe   :  { %v234_v30 = vld [vmem:[%s10293_s0 + $0x6a8] sm:$0xff]  ;;  %v377_v31 = vpack.c.bf16 %v225_v28, %v221_v27  ;;  %v229_v33 = vld [vmem:[%s10293_s0 + $0x680] sm:$0xff] }
  0xbf   :  { %v382_v32 = vpack.c.bf16 %v234_v30, %v230_v29  ;;  %v233_v34 = vld [vmem:[%s10293_s0 + $0x6a0] sm:$0xff]  ;;  %v238_v35 = vld [vmem:[%s10293_s0 + $0x6c8] sm:$0xff]  ;;  %v39_v29 = vld [vmem:[%s10293_s0 + $0x90] sm:$0xff] }
  0xc0   :  { %v242_v36 = vld [vmem:[%s10293_s0 + $0x6e8] sm:$0xff]  ;;  %v381_v37 = vpack.c.bf16 %v233_v34, %v229_v33  ;;  %v245_v45 = vld [vmem:[%s10293_s0 + $0x700] sm:$0xff]  ;;  %v43_v30 = vld [vmem:[%s10293_s0 + $0xb0] sm:$0xff] }
  0xc1   :  { %v386_v38 = vpack.c.bf16 %v242_v36, %v238_v35  ;;  %v246_v41 = vld [vmem:[%s10293_s0 + $0x708] sm:$0xff]  ;;  %v249_v46 = vld [vmem:[%s10293_s0 + $0x720] sm:$0xff] }
  0xc2   :  { %1388 = vmatmul.mubr.bf16.gmra.mrb[64].mxu0 %v341_v39  ;;  %2094 = vmatmul.mubr.bf16.gmra.mrb[64].mxu1 %v341_v39  ;;  %v237_v39 = vld [vmem:[%s10293_s0 + $0x6c0] sm:$0xff]  ;;  %v250_v42 = vld [vmem:[%s10293_s0 + $0x728] sm:$0xff]  ;;  %v389_v49 = vpack.c.bf16 %v249_v46, %v245_v45  ;;  %v56_v45 = vld [vmem:[%s10293_s0 + $0x118] sm:$0xff] }
  0xc3   :  { %1397 = vmatprep.mubr.bf16.mxu0 %v346_v40  ;;  %2103 = vmatprep.mubr.bf16.mxu1 %v346_v40  ;;  %v241_v40 = vld [vmem:[%s10293_s0 + $0x6e0] sm:$0xff]  ;;  %v390_v44 = vpack.c.bf16 %v250_v42, %v246_v41  ;;  %v6943_v11 = vld [vmem:[%s10296_s3 + $0x8] ss:$16 sps:$4 sm:$0xff]   ;;  %v6957_v22 = vld [vmem:[%s10296_s3 + $0x4c] ss:$16 sps:$4 sm:$0xff]  }
  0xc4   :  { %v385_v43 = vpack.c.bf16 %v241_v40, %v237_v39  ;;  %v253_v51 = vld [vmem:[%s10293_s0 + $0x740] sm:$0xff]  ;;  %v6963_v28 = vld [vmem:[%s10296_s3 + $0x6c] ss:$16 sps:$4 sm:$0xff]   ;;  %v6961_v34 = vld [vmem:[%s10296_s3 + $0x68] ss:$16 sps:$4 sm:$0xff]  }
  0xc5   :  { %v257_v52 = vld [vmem:[%s10293_s0 + $0x760] sm:$0xff]  ;;  %v6969_v36 = vld [vmem:[%s10296_s3 + $0x8c] ss:$16 sps:$4 sm:$0xff]   ;;  %v6967_v40 = vld [vmem:[%s10296_s3 + $0x88] ss:$16 sps:$4 sm:$0xff]  }
  0xc6   :  { %v393_v55 = vpack.c.bf16 %v257_v52, %v253_v51  ;;  %v261_v57 = vld [vmem:[%s10293_s0 + $0x780] sm:$0xff]  ;;  %v6975_v42 = vld [vmem:[%s10296_s3 + $0xac] ss:$16 sps:$4 sm:$0xff]  }
  0xc7   :  { %v265_v58 = vld [vmem:[%s10293_s0 + $0x7a0] sm:$0xff]  ;;  %v60_v46 = vld [vmem:[%s10293_s0 + $0x138] sm:$0xff] }
  0xc8   :  { %v397_v61 = vpack.c.bf16 %v265_v58, %v261_v57  ;;  %v269_v63 = vld [vmem:[%s10293_s0 + $0x7c0] sm:$0xff]  ;;  %v296_v52 = vpack.c.bf16 %v60_v46, %v56_v45  ;;  %v55_v57 = vld [vmem:[%s10293_s0 + $0x110] sm:$0xff]  ;;  %v6999_v6 = vld [vmem:[%s10296_s3 + $0x12c] ss:$16 sps:$4 sm:$0xff]  }
  0xc9   :  { %v273_v0 = vld [vmem:[%s10293_s0 + $0x7e0] sm:$0xff]  ;;  %v59_v58 = vld [vmem:[%s10293_s0 + $0x130] sm:$0xff]  ;;  %v7017_v46 = vld [vmem:[%s10296_s3 + $0x18c] ss:$16 sps:$4 sm:$0xff]  }
  0xca   :  { %1398 = vmatmul.mubr.bf16.gmra.mrb[68].mxu0 %v345_v47  ;;  %2104 = vmatmul.mubr.bf16.gmra.mrb[68].mxu1 %v345_v47  ;;  %v254_v47 = vld [vmem:[%s10293_s0 + $0x748] sm:$0xff]  ;;  %v401_v3 = vpack.c.bf16 %v273_v0, %v269_v63  ;;  %v6940_v10 = vld [vmem:[%s10296_s3] ss:$16 sps:$4 sm:$0xff]   ;;  %v6954_v21 = vld [vmem:[%s10296_s3 + $0x44] ss:$16 sps:$4 sm:$0xff]  }
  0xcb   :  { %1407 = vmatprep.mubr.bf16.mxu0 %v350_v48  ;;  %2113 = vmatprep.mubr.bf16.mxu1 %v350_v48  ;;  %v258_v48 = vld [vmem:[%s10293_s0 + $0x768] sm:$0xff]  ;;  %v6946_v18 = vld [vmem:[%s10296_s3 + $0x20] ss:$16 sps:$4 sm:$0xff]   ;;  %v6960_v27 = vld [vmem:[%s10296_s3 + $0x64] ss:$16 sps:$4 sm:$0xff]  }
  0xcc   :  { %v394_v50 = vpack.c.bf16 %v258_v48, %v254_v47  ;;  %v6958_v33 = vld [vmem:[%s10296_s3 + $0x60] ss:$16 sps:$4 sm:$0xff]   ;;  %v6966_v35 = vld [vmem:[%s10296_s3 + $0x84] ss:$16 sps:$4 sm:$0xff]   ;;  %v6973_v48 = vld [vmem:[%s10296_s3 + $0xa8] ss:$16 sps:$4 sm:$0xff]  }
  0xcd   :  { %v6964_v39 = vld [vmem:[%s10296_s3 + $0x80] ss:$16 sps:$4 sm:$0xff]   ;;  %v6972_v41 = vld [vmem:[%s10296_s3 + $0xa4] ss:$16 sps:$4 sm:$0xff]   ;;  %v6993_v0 = vld [vmem:[%s10296_s3 + $0x10c] ss:$16 sps:$4 sm:$0xff]  }
  0xce   :  { %v6970_v47 = vld [vmem:[%s10296_s3 + $0xa0] ss:$16 sps:$4 sm:$0xff]   ;;  %v6990_v63 = vld [vmem:[%s10296_s3 + $0x104] ss:$16 sps:$4 sm:$0xff]  }
  0xcf   :  { %v6996_v5 = vld [vmem:[%s10296_s3 + $0x124] ss:$16 sps:$4 sm:$0xff]  }
  0xd0   :  { %v99_v45 = vld [vmem:[%s10293_s0 + $0x270] sm:$0xff] }
  0xd2   :  { %1408 = vmatmul.mubr.bf16.gmra.mrb[72].mxu0 %v349_v53  ;;  %2114 = vmatmul.mubr.bf16.gmra.mrb[72].mxu1 %v349_v53  ;;  %v262_v53 = vld [vmem:[%s10293_s0 + $0x788] sm:$0xff] }
  0xd3   :  { %1417 = vmatprep.mubr.bf16.mxu0 %v354_v54  ;;  %2123 = vmatprep.mubr.bf16.mxu1 %v354_v54  ;;  %v266_v54 = vld [vmem:[%s10293_s0 + $0x7a8] sm:$0xff] }
  0xd4   :  { %v398_v56 = vpack.c.bf16 %v266_v54, %v262_v53  ;;  %v6976_v53 = vld [vmem:[%s10296_s3 + $0xc0] ss:$16 sps:$4 sm:$0xff]   ;;  %v6979_v54 = vld [vmem:[%s10296_s3 + $0xc8] ss:$16 sps:$4 sm:$0xff]  }
  0xda   :  { %1418 = vmatmul.mubr.bf16.gmra.mrb[76].mxu0 %v353_v59  ;;  %2124 = vmatmul.mubr.bf16.gmra.mrb[76].mxu1 %v353_v59  ;;  %v270_v59 = vld [vmem:[%s10293_s0 + $0x7c8] sm:$0xff] }
  0xdb   :  { %1427 = vmatprep.mubr.bf16.mxu0 %v358_v60  ;;  %2133 = vmatprep.mubr.bf16.mxu1 %v358_v60  ;;  %v274_v60 = vld [vmem:[%s10293_s0 + $0x7e8] sm:$0xff] }
  0xdc   :  { %v402_v62 = vpack.c.bf16 %v274_v60, %v270_v59  ;;  %v64_v59 = vld [vmem:[%s10293_s0 + $0x158] sm:$0xff] }
  0xdd   :  { %v68_v60 = vld [vmem:[%s10293_s0 + $0x178] sm:$0xff] }
  0xe2   :  { %1428 = vmatmul.mubr.bf16.gmra.mrb[80].mxu0 %v357_v1  ;;  %2134 = vmatmul.mubr.bf16.gmra.mrb[80].mxu1 %v357_v1  ;;  %v24_v1 = vld [vmem:[%s10293_s0 + $0x18] sm:$0xff] }
  0xe3   :  { %1437 = vmatprep.mubr.bf16.mxu0 %v362_v2  ;;  %2143 = vmatprep.mubr.bf16.mxu1 %v362_v2  ;;  %v28_v2 = vld [vmem:[%s10293_s0 + $0x38] sm:$0xff] }
  0xe4   :  { %v280_v4 = vpack.c.bf16 %v28_v2, %v24_v1  ;;  %v295_v1 = vpack.c.bf16 %v59_v58, %v55_v57  ;;  %v300_v2 = vpack.c.bf16 %v68_v60, %v64_v59  ;;  %v7018_v57 = vld [vmem:[%s10296_s3 + $0x1a0] ss:$16 sps:$4 sm:$0xff]   ;;  %v7020_v58 = vld [vmem:[%s10296_s3 + $0x1a4] ss:$16 sps:$4 sm:$0xff]   ;;  %v7021_v59 = vld [vmem:[%s10296_s3 + $0x1a8] ss:$16 sps:$4 sm:$0xff]  }
  0xe5   :  { %v111_v60 = vld [vmem:[%s10293_s0 + $0x2d0] sm:$0xff] }
  0xea   :  { %1438 = vmatmul.mubr.bf16.gmra.mrb[84].mxu0 %v361_v7  ;;  %2144 = vmatmul.mubr.bf16.gmra.mrb[84].mxu1 %v361_v7  ;;  %v32_v7 = vld [vmem:[%s10293_s0 + $0x58] sm:$0xff] }
  0xeb   :  { %1447 = vmatprep.mubr.bf16.mxu0 %v366_v8  ;;  %2153 = vmatprep.mubr.bf16.mxu1 %v366_v8  ;;  %v36_v8 = vld [vmem:[%s10293_s0 + $0x78] sm:$0xff] }
  0xec   :  { %v284_v12 = vpack.c.bf16 %v36_v8, %v32_v7  ;;  %v63_v7 = vld [vmem:[%s10293_s0 + $0x150] sm:$0xff] }
  0xed   :  { %v67_v8 = vld [vmem:[%s10293_s0 + $0x170] sm:$0xff] }
  0xee   :  { %v299_v15 = vpack.c.bf16 %v67_v8, %v63_v7 }
  0xf2   :  { %1448 = vmatmul.mubr.bf16.gmra.mrb[88].mxu0 %v365_v13  ;;  %2154 = vmatmul.mubr.bf16.gmra.mrb[88].mxu1 %v365_v13  ;;  %v6948_v13 = vld [vmem:[%s10296_s3 + $0x24] ss:$16 sps:$4 sm:$0xff]  }
  0xf3   :  { %1457 = vmatprep.mubr.bf16.mxu0 %v370_v14  ;;  %2163 = vmatprep.mubr.bf16.mxu1 %v370_v14  ;;  %v6951_v14 = vld [vmem:[%s10296_s3 + $0x2c] ss:$16 sps:$4 sm:$0xff]  }
  0xfa   :  { %1458 = vmatmul.mubr.bf16.gmra.mrb[92].mxu0 %v369_v19  ;;  %2164 = vmatmul.mubr.bf16.gmra.mrb[92].mxu1 %v369_v19  ;;  %v6949_v19 = vld [vmem:[%s10296_s3 + $0x28] ss:$16 sps:$4 sm:$0xff]  }
  0xfb   :  { %1467 = vmatprep.mubr.bf16.mxu0 %v374_v20  ;;  %2173 = vmatprep.mubr.bf16.mxu1 %v374_v20  ;;  %v44_v20 = vld [vmem:[%s10293_s0 + $0xb8] sm:$0xff] }
  0xfc   :  { %v288_v24 = vpack.c.bf16 %v44_v20, %v40_v17  ;;  %v7000_v17 = vld [vmem:[%s10296_s3 + $0x140] ss:$16 sps:$4 sm:$0xff]  }
  0xfd   :  { %v75_v20 = vld [vmem:[%s10293_s0 + $0x1b0] sm:$0xff] }
 0x102   :  { %1468 = vmatmul.mubr.bf16.gmra.mrb[96].mxu0 %v373_v25  ;;  %2174 = vmatmul.mubr.bf16.gmra.mrb[96].mxu1 %v373_v25  ;;  %v6952_v25 = vld [vmem:[%s10296_s3 + $0x40] ss:$16 sps:$4 sm:$0xff]  }
 0x103   :  { %1477 = vmatprep.mubr.bf16.mxu0 %v378_v26  ;;  %2183 = vmatprep.mubr.bf16.mxu1 %v378_v26  ;;  %v6955_v26 = vld [vmem:[%s10296_s3 + $0x48] ss:$16 sps:$4 sm:$0xff]  }
 0x10a   :  { %1478 = vmatmul.mubr.bf16.gmra.mrb[100].mxu0 %v377_v31  ;;  %2184 = vmatmul.mubr.bf16.gmra.mrb[100].mxu1 %v377_v31  ;;  %v48_v31 = vld [vmem:[%s10293_s0 + $0xd8] sm:$0xff] }
 0x10b   :  { %1487 = vmatprep.mubr.bf16.mxu0 %v382_v32  ;;  %2193 = vmatprep.mubr.bf16.mxu1 %v382_v32  ;;  %v52_v32 = vld [vmem:[%s10293_s0 + $0xf8] sm:$0xff] }
 0x112   :  { %1488 = vmatmul.mubr.bf16.gmra.mrb[104].mxu0 %v381_v37  ;;  %2194 = vmatmul.mubr.bf16.gmra.mrb[104].mxu1 %v381_v37  ;;  %v287_v37 = vpack.c.bf16 %v43_v30, %v39_v29  ;;  %v83_v29 = vld [vmem:[%s10293_s0 + $0x1f0] sm:$0xff]  ;;  %v7011_v30 = vld [vmem:[%s10296_s3 + $0x16c] ss:$16 sps:$4 sm:$0xff]  }
 0x113   :  { %1497 = vmatprep.mubr.bf16.mxu0 %v386_v38  ;;  %2203 = vmatprep.mubr.bf16.mxu1 %v386_v38  ;;  %v292_v38 = vpack.c.bf16 %v52_v32, %v48_v31  ;;  %v88_v31 = vld [vmem:[%s10293_s0 + $0x218] sm:$0xff] }
 0x114   :  { %v92_v32 = vld [vmem:[%s10293_s0 + $0x238] sm:$0xff] }
 0x11a   :  { %1498 = vmatmul.mubr.bf16.gmra.mrb[108].mxu0 %v385_v43  ;;  %2204 = vmatmul.mubr.bf16.gmra.mrb[108].mxu1 %v385_v43  ;;  %v47_v43 = vld [vmem:[%s10293_s0 + $0xd0] sm:$0xff] }
 0x11b   :  { %1507 = vmatprep.mubr.bf16.mxu0 %v390_v44  ;;  %2213 = vmatprep.mubr.bf16.mxu1 %v390_v44  ;;  %v51_v44 = vld [vmem:[%s10293_s0 + $0xf0] sm:$0xff] }
 0x11c   :  { %v291_v51 = vpack.c.bf16 %v51_v44, %v47_v43  ;;  %v7015_v43 = vld [vmem:[%s10296_s3 + $0x188] ss:$16 sps:$4 sm:$0xff]   ;;  %v95_v44 = vld [vmem:[%s10293_s0 + $0x250] sm:$0xff] }
 0x122   :  { %1508 = vmatmul.mubr.bf16.gmra.mrb[112].mxu0 %v389_v49  ;;  %2214 = vmatmul.mubr.bf16.gmra.mrb[112].mxu1 %v389_v49  ;;  %v6978_v49 = vld [vmem:[%s10296_s3 + $0xc4] ss:$16 sps:$4 sm:$0xff]  }
 0x123   :  { %1517 = vmatprep.mubr.bf16.mxu0 %v394_v50  ;;  %2223 = vmatprep.mubr.bf16.mxu1 %v394_v50  ;;  %v6981_v50 = vld [vmem:[%s10296_s3 + $0xcc] ss:$16 sps:$4 sm:$0xff]  }
 0x12a   :  { %1518 = vmatmul.mubr.bf16.gmra.mrb[116].mxu0 %v393_v55  ;;  %2224 = vmatmul.mubr.bf16.gmra.mrb[116].mxu1 %v393_v55  ;;  %v6984_v55 = vld [vmem:[%s10296_s3 + $0xe4] ss:$16 sps:$4 sm:$0xff]  }
 0x12b   :  { %1527 = vmatprep.mubr.bf16.mxu0 %v398_v56  ;;  %2233 = vmatprep.mubr.bf16.mxu1 %v398_v56  ;;  %v6987_v56 = vld [vmem:[%s10296_s3 + $0xec] ss:$16 sps:$4 sm:$0xff]  }
 0x132   :  { %1528 = vmatmul.mubr.bf16.gmra.mrb[120].mxu0 %v397_v61  ;;  %2234 = vmatmul.mubr.bf16.gmra.mrb[120].mxu1 %v397_v61  ;;  %v6982_v61 = vld [vmem:[%s10296_s3 + $0xe0] ss:$16 sps:$4 sm:$0xff]  }
 0x133   :  { %1537 = vmatprep.mubr.bf16.mxu0 %v402_v62  ;;  %2243 = vmatprep.mubr.bf16.mxu1 %v402_v62  ;;  %v6985_v62 = vld [vmem:[%s10296_s3 + $0xe8] ss:$16 sps:$4 sm:$0xff]  }
 0x13a   :  { %1538 = vmatmul.mubr.bf16.gmra.mrb[124].mxu0 %v401_v3  ;;  %2244 = vmatmul.mubr.bf16.gmra.mrb[124].mxu1 %v401_v3  ;;  %v6988_v3 = vld [vmem:[%s10296_s3 + $0x100] ss:$16 sps:$4 sm:$0xff]  }
 0x13b   :  { %1580 = vmatprep.mubr.bf16.mxu0 %v280_v4  ;;  %2286 = vmatprep.mubr.bf16.mxu1 %v280_v4  ;;  %v6991_v4 = vld [vmem:[%s10296_s3 + $0x108] ss:$16 sps:$4 sm:$0xff]  }
 0x142   :  { %1581 = vmatmul.mubr.bf16.vlgmr.msra.gmra.mrb[0].mxu0 %v279_v9  ;;  %2287 = vmatmul.mubr.bf16.vlgmr.msra.gmra.mrb[0].mxu1 %v279_v9  ;;  %v72_v9 = vld [vmem:[%s10293_s0 + $0x198] sm:$0xff] }
 0x143   :  { %3782 = vmatpush1.bf16.msra.mxu0 %v6940_v10  ;;  %4488 = vmatpush1.bf16.msra.mxu1 %v6943_v11  ;;  %v76_v10 = vld [vmem:[%s10293_s0 + $0x1b8] sm:$0xff]  ;;  %v6994_v11 = vld [vmem:[%s10296_s3 + $0x120] ss:$16 sps:$4 sm:$0xff]  }
 0x144   :  { %1590 = vmatprep.mubr.bf16.mxu0 %v284_v12  ;;  %2296 = vmatprep.mubr.bf16.mxu1 %v284_v12  ;;  %v6997_v12 = vld [vmem:[%s10296_s3 + $0x128] ss:$16 sps:$4 sm:$0xff]   ;;  %v304_v16 = vpack.c.bf16 %v76_v10, %v72_v9  ;;  %v127_v9 = vld [vmem:[%s10293_s0 + $0x350] sm:$0xff] }
 0x145   :  { %3783 = vmatprep.subr.bf16.mxu0 %v6948_v13  ;;  %4489 = vmatprep.subr.bf16.mxu1 %v6951_v14  ;;  %v7002_v13 = vld [vmem:[%s10296_s3 + $0x144] ss:$16 sps:$4 sm:$0xff]   ;;  %v7005_v14 = vld [vmem:[%s10296_s3 + $0x14c] ss:$16 sps:$4 sm:$0xff]  }
 0x146   :  { %v131_v10 = vld [vmem:[%s10293_s0 + $0x370] sm:$0xff] }
 0x147   :  { %3784 = vmatpush1.bf16.msra.mxu0 %v6946_v18  ;;  %4490 = vmatpush1.bf16.msra.mxu1 %v6949_v19  ;;  %v7003_v18 = vld [vmem:[%s10296_s3 + $0x148] ss:$16 sps:$4 sm:$0xff]   ;;  %v71_v19 = vld [vmem:[%s10293_s0 + $0x190] sm:$0xff] }
 0x148   :  { %3785 = vmatprep.subr.bf16.mxu0 %v6954_v21  ;;  %4491 = vmatprep.subr.bf16.mxu1 %v6957_v22  ;;  %v80_v21 = vld [vmem:[%s10293_s0 + $0x1d8] sm:$0xff] }
 0x149   :  { %v84_v22 = vld [vmem:[%s10293_s0 + $0x1f8] sm:$0xff] }
 0x14a   :  { %1591 = vmatmul.mubr.bf16.gmra.mrb[4].mxu0 %v283_v23  ;;  %2297 = vmatmul.mubr.bf16.gmra.mrb[4].mxu1 %v283_v23  ;;  %v303_v23 = vpack.c.bf16 %v75_v20, %v71_v19  ;;  %v135_v19 = vld [vmem:[%s10293_s0 + $0x390] sm:$0xff] }
 0x14b   :  { %1600 = vmatprep.mubr.bf16.mxu0 %v288_v24  ;;  %2306 = vmatprep.mubr.bf16.mxu1 %v288_v24  ;;  %v308_v24 = vpack.c.bf16 %v84_v22, %v80_v21  ;;  %v139_v20 = vld [vmem:[%s10293_s0 + $0x3b0] sm:$0xff]  ;;  %v144_v21 = vld [vmem:[%s10293_s0 + $0x3d8] sm:$0xff] }
 0x14c   :  { %3786 = vmatpush1.bf16.msra.mxu0 %v6952_v25  ;;  %4492 = vmatpush1.bf16.msra.mxu1 %v6955_v26  ;;  %v7006_v25 = vld [vmem:[%s10296_s3 + $0x160] ss:$16 sps:$4 sm:$0xff]   ;;  %v7008_v26 = vld [vmem:[%s10296_s3 + $0x164] ss:$16 sps:$4 sm:$0xff]   ;;  %v148_v22 = vld [vmem:[%s10293_s0 + $0x3f8] sm:$0xff] }
 0x14d   :  { %3787 = vmatprep.subr.bf16.mxu0 %v6960_v27  ;;  %4493 = vmatprep.subr.bf16.mxu1 %v6963_v28  ;;  %v7009_v27 = vld [vmem:[%s10296_s3 + $0x168] ss:$16 sps:$4 sm:$0xff]   ;;  %v79_v28 = vld [vmem:[%s10293_s0 + $0x1d0] sm:$0xff] }
 0x150   :  { %3788 = vmatpush1.bf16.msra.mxu0 %v6958_v33  ;;  %4494 = vmatpush1.bf16.msra.mxu1 %v6961_v34  ;;  %v307_v33 = vpack.c.bf16 %v83_v29, %v79_v28  ;;  %v312_v34 = vpack.c.bf16 %v92_v32, %v88_v31  ;;  %v156_v28 = vld [vmem:[%s10293_s0 + $0x438] sm:$0xff]  ;;  %v7032_v31 = vld [vmem:[%s10296_s3 + $0x1e4] ss:$16 sps:$4 sm:$0xff]   ;;  %v7030_v32 = vld [vmem:[%s10296_s3 + $0x1e0] ss:$16 sps:$4 sm:$0xff]  }
 0x151   :  { %3789 = vmatprep.subr.bf16.mxu0 %v6966_v35  ;;  %4495 = vmatprep.subr.bf16.mxu1 %v6969_v36  ;;  %v87_v35 = vld [vmem:[%s10293_s0 + $0x210] sm:$0xff] }
 0x152   :  { %1601 = vmatmul.mubr.bf16.gmra.mrb[8].mxu0 %v287_v37  ;;  %2307 = vmatmul.mubr.bf16.gmra.mrb[8].mxu1 %v287_v37  ;;  %v91_v36 = vld [vmem:[%s10293_s0 + $0x230] sm:$0xff]  ;;  %v96_v37 = vld [vmem:[%s10293_s0 + $0x258] sm:$0xff] }
 0x153   :  { %1610 = vmatprep.mubr.bf16.mxu0 %v292_v38  ;;  %2316 = vmatprep.mubr.bf16.mxu1 %v292_v38  ;;  %v100_v38 = vld [vmem:[%s10293_s0 + $0x278] sm:$0xff] }
 0x154   :  { %3790 = vmatpush1.bf16.msra.mxu0 %v6964_v39  ;;  %4496 = vmatpush1.bf16.msra.mxu1 %v6967_v40  ;;  %v311_v39 = vpack.c.bf16 %v91_v36, %v87_v35  ;;  %v316_v40 = vpack.c.bf16 %v100_v38, %v96_v37  ;;  %v151_v35 = vld [vmem:[%s10293_s0 + $0x410] sm:$0xff]  ;;  %v160_v37 = vld [vmem:[%s10293_s0 + $0x458] sm:$0xff] }
 0x155   :  { %3791 = vmatprep.subr.bf16.mxu0 %v6972_v41  ;;  %4497 = vmatprep.subr.bf16.mxu1 %v6975_v42  ;;  %v7012_v41 = vld [vmem:[%s10296_s3 + $0x180] ss:$16 sps:$4 sm:$0xff]   ;;  %v7014_v42 = vld [vmem:[%s10296_s3 + $0x184] ss:$16 sps:$4 sm:$0xff]   ;;  %v164_v38 = vld [vmem:[%s10293_s0 + $0x478] sm:$0xff] }
 0x156   :  { %v155_v36 = vld [vmem:[%s10293_s0 + $0x430] sm:$0xff] }
 0x158   :  { %3792 = vmatpush1.bf16.msra.mxu0 %v6970_v47  ;;  %4498 = vmatpush1.bf16.msra.mxu1 %v6973_v48  ;;  %v104_v47 = vld [vmem:[%s10293_s0 + $0x298] sm:$0xff] }
 0x159   :  { %3793 = vmatprep.subr.bf16.mxu0 %v6978_v49  ;;  %4499 = vmatprep.subr.bf16.mxu1 %v6981_v50  ;;  %v108_v48 = vld [vmem:[%s10293_s0 + $0x2b8] sm:$0xff]  ;;  %v315_v49 = vpack.c.bf16 %v99_v45, %v95_v44 }
 0x15a   :  { %1611 = vmatmul.mubr.bf16.gmra.mrb[12].mxu0 %v291_v51  ;;  %2317 = vmatmul.mubr.bf16.gmra.mrb[12].mxu1 %v291_v51  ;;  %v320_v50 = vpack.c.bf16 %v108_v48, %v104_v47  ;;  %v103_v51 = vld [vmem:[%s10293_s0 + $0x290] sm:$0xff]  ;;  %v172_v44 = vld [vmem:[%s10293_s0 + $0x4b8] sm:$0xff] }
 0x15b   :  { %1620 = vmatprep.mubr.bf16.mxu0 %v296_v52  ;;  %2326 = vmatprep.mubr.bf16.mxu1 %v296_v52  ;;  %v107_v52 = vld [vmem:[%s10293_s0 + $0x2b0] sm:$0xff]  ;;  %v7041_v48 = vld [vmem:[%s10296_s3 + $0x20c] ss:$16 sps:$4 sm:$0xff]  }
 0x15c   :  { %3794 = vmatpush1.bf16.msra.mxu0 %v6976_v53  ;;  %4500 = vmatpush1.bf16.msra.mxu1 %v6979_v54  ;;  %v112_v53 = vld [vmem:[%s10293_s0 + $0x2d8] sm:$0xff]  ;;  %v7038_v47 = vld [vmem:[%s10296_s3 + $0x204] ss:$16 sps:$4 sm:$0xff]  }
 0x15d   :  { %3795 = vmatprep.subr.bf16.mxu0 %v6984_v55  ;;  %4501 = vmatprep.subr.bf16.mxu1 %v6987_v56  ;;  %v116_v54 = vld [vmem:[%s10293_s0 + $0x2f8] sm:$0xff]  ;;  %v319_v55 = vpack.c.bf16 %v107_v52, %v103_v51 }
 0x15e   :  { %v324_v56 = vpack.c.bf16 %v116_v54, %v112_v53  ;;  %v176_v51 = vld [vmem:[%s10293_s0 + $0x4d8] sm:$0xff] }
 0x15f   :  { %v180_v52 = vld [vmem:[%s10293_s0 + $0x4f8] sm:$0xff] }
 0x160   :  { %3796 = vmatpush1.bf16.msra.mxu0 %v6982_v61  ;;  %4502 = vmatpush1.bf16.msra.mxu1 %v6985_v62  ;;  %v115_v61 = vld [vmem:[%s10293_s0 + $0x2f0] sm:$0xff]  ;;  %v7023_v62 = vld [vmem:[%s10296_s3 + $0x1ac] ss:$16 sps:$4 sm:$0xff]   ;;  %v356_v54 = vpack.c.bf16 %v180_v52, %v176_v51 }
 0x161   :  { %3797 = vmatprep.subr.bf16.mxu0 %v6990_v63  ;;  %4503 = vmatprep.subr.bf16.mxu1 %v6993_v0  ;;  %v120_v63 = vld [vmem:[%s10293_s0 + $0x318] sm:$0xff]  ;;  %v243_v51 = vld [vmem:[%s10293_s0 + $0x6f0] sm:$0xff] }
 0x162   :  { %1621 = vmatmul.mubr.bf16.gmra.mrb[16].mxu0 %v295_v1  ;;  %2327 = vmatmul.mubr.bf16.gmra.mrb[16].mxu1 %v295_v1  ;;  %v124_v0 = vld [vmem:[%s10293_s0 + $0x338] sm:$0xff]  ;;  %v323_v1 = vpack.c.bf16 %v115_v61, %v111_v60  ;;  %v183_v61 = vld [vmem:[%s10293_s0 + $0x510] sm:$0xff] }
 0x163   :  { %1630 = vmatprep.mubr.bf16.mxu0 %v300_v2  ;;  %2336 = vmatprep.mubr.bf16.mxu1 %v300_v2  ;;  %v328_v2 = vpack.c.bf16 %v124_v0, %v120_v63  ;;  %v192_v63 = vld [vmem:[%s10293_s0 + $0x558] sm:$0xff] }
 0x164   :  { %3798 = vmatpush1.bf16.msra.mxu0 %v6988_v3  ;;  %4504 = vmatpush1.bf16.msra.mxu1 %v6991_v4  ;;  %v119_v3 = vld [vmem:[%s10293_s0 + $0x310] sm:$0xff]  ;;  %v196_v0 = vld [vmem:[%s10293_s0 + $0x578] sm:$0xff] }
 0x165   :  { %3799 = vmatprep.subr.bf16.mxu0 %v6996_v5  ;;  %4505 = vmatprep.subr.bf16.mxu1 %v6999_v6  ;;  %v123_v4 = vld [vmem:[%s10293_s0 + $0x330] sm:$0xff]  ;;  %v128_v5 = vld [vmem:[%s10293_s0 + $0x358] sm:$0xff] }
 0x166   :  { %v132_v6 = vld [vmem:[%s10293_s0 + $0x378] sm:$0xff]  ;;  %v327_v7 = vpack.c.bf16 %v123_v4, %v119_v3  ;;  %v191_v3 = vld [vmem:[%s10293_s0 + $0x550] sm:$0xff] }
 0x167   :  { %v332_v8 = vpack.c.bf16 %v132_v6, %v128_v5  ;;  %v195_v4 = vld [vmem:[%s10293_s0 + $0x570] sm:$0xff]  ;;  %v200_v5 = vld [vmem:[%s10293_s0 + $0x598] sm:$0xff] }
 0x168   :  { %3800 = vmatpush1.bf16.msra.mxu0 %v6994_v11  ;;  %4506 = vmatpush1.bf16.msra.mxu1 %v6997_v12  ;;  %v136_v11 = vld [vmem:[%s10293_s0 + $0x398] sm:$0xff] }
 0x169   :  { %3801 = vmatprep.subr.bf16.mxu0 %v7002_v13  ;;  %4507 = vmatprep.subr.bf16.mxu1 %v7005_v14  ;;  %v140_v12 = vld [vmem:[%s10293_s0 + $0x3b8] sm:$0xff]  ;;  %v331_v13 = vpack.c.bf16 %v131_v10, %v127_v9  ;;  %v199_v9 = vld [vmem:[%s10293_s0 + $0x590] sm:$0xff] }
 0x16a   :  { %1631 = vmatmul.mubr.bf16.gmra.mrb[20].mxu0 %v299_v15  ;;  %2337 = vmatmul.mubr.bf16.gmra.mrb[20].mxu1 %v299_v15  ;;  %v336_v14 = vpack.c.bf16 %v140_v12, %v136_v11  ;;  %v7026_v15 = vld [vmem:[%s10296_s3 + $0x1c4] ss:$16 sps:$4 sm:$0xff]   ;;  %v204_v6 = vld [vmem:[%s10293_s0 + $0x5b8] sm:$0xff] }
 0x16b   :  { %1640 = vmatprep.mubr.bf16.mxu0 %v304_v16  ;;  %2346 = vmatprep.mubr.bf16.mxu1 %v304_v16  ;;  %v7024_v16 = vld [vmem:[%s10296_s3 + $0x1c0] ss:$16 sps:$4 sm:$0xff]   ;;  %v208_v11 = vld [vmem:[%s10293_s0 + $0x5d8] sm:$0xff] }
 0x16c   :  { %3802 = vmatpush1.bf16.msra.mxu0 %v7000_v17  ;;  %4508 = vmatpush1.bf16.msra.mxu1 %v7003_v18  ;;  %v7029_v17 = vld [vmem:[%s10296_s3 + $0x1cc] ss:$16 sps:$4 sm:$0xff]   ;;  %v7027_v18 = vld [vmem:[%s10296_s3 + $0x1c8] ss:$16 sps:$4 sm:$0xff]   ;;  %v203_v10 = vld [vmem:[%s10293_s0 + $0x5b0] sm:$0xff] }
 0x16d   :  { %3803 = vmatprep.subr.bf16.mxu0 %v7008_v26  ;;  %4509 = vmatprep.subr.bf16.mxu1 %v7011_v30  ;;  %v147_v26 = vld [vmem:[%s10293_s0 + $0x3f0] sm:$0xff]  ;;  %v212_v12 = vld [vmem:[%s10293_s0 + $0x5f8] sm:$0xff] }
 0x16e   :  { %v248_v52 = vld [vmem:[%s10293_s0 + $0x718] sm:$0xff] }
 0x170   :  { %3804 = vmatpush1.bf16.msra.mxu0 %v7006_v25  ;;  %4510 = vmatpush1.bf16.msra.mxu1 %v7009_v27  ;;  %v143_v25 = vld [vmem:[%s10293_s0 + $0x3d0] sm:$0xff]  ;;  %v152_v27 = vld [vmem:[%s10293_s0 + $0x418] sm:$0xff] }
 0x171   :  { %3805 = vmatprep.subr.bf16.mxu0 %v7014_v42  ;;  %4511 = vmatprep.subr.bf16.mxu1 %v7017_v46  ;;  %v339_v29 = vpack.c.bf16 %v147_v26, %v143_v25  ;;  %v344_v30 = vpack.c.bf16 %v156_v28, %v152_v27  ;;  %v163_v42 = vld [vmem:[%s10293_s0 + $0x470] sm:$0xff] }
 0x172   :  { %1641 = vmatmul.mubr.bf16.gmra.mrb[24].mxu0 %v303_v23  ;;  %2347 = vmatmul.mubr.bf16.gmra.mrb[24].mxu1 %v303_v23  ;;  %v335_v23 = vpack.c.bf16 %v139_v20, %v135_v19  ;;  %v223_v27 = vld [vmem:[%s10293_s0 + $0x650] sm:$0xff] }
 0x173   :  { %1650 = vmatprep.mubr.bf16.mxu0 %v308_v24  ;;  %2356 = vmatprep.mubr.bf16.mxu1 %v308_v24  ;;  %v340_v24 = vpack.c.bf16 %v148_v22, %v144_v21  ;;  %v215_v21 = vld [vmem:[%s10293_s0 + $0x610] sm:$0xff] }
 0x174   :  { %3806 = vmatpush1.bf16.msra.mxu0 %v7012_v41  ;;  %4512 = vmatpush1.bf16.msra.mxu1 %v7015_v43  ;;  %v159_v41 = vld [vmem:[%s10293_s0 + $0x450] sm:$0xff]  ;;  %v168_v43 = vld [vmem:[%s10293_s0 + $0x498] sm:$0xff] }
 0x175   :  { %3807 = vmatprep.subr.bf16.mxu0 %v7020_v58  ;;  %4513 = vmatprep.subr.bf16.mxu1 %v7023_v62  ;;  %v347_v45 = vpack.c.bf16 %v163_v42, %v159_v41  ;;  %v352_v46 = vpack.c.bf16 %v172_v44, %v168_v43  ;;  %v188_v58 = vld [vmem:[%s10293_s0 + $0x538] sm:$0xff]  ;;  %v187_v62 = vld [vmem:[%s10293_s0 + $0x530] sm:$0xff]  ;;  %v533_v42 = vld [vmem:[%s10295_s2] sm:$0xf] }
 0x176   :  { %v219_v22 = vld [vmem:[%s10293_s0 + $0x630] sm:$0xff] }
 0x177   :  { %v375_v25 = vpack.c.bf16 %v219_v22, %v215_v21  ;;  %v227_v28 = vld [vmem:[%s10293_s0 + $0x670] sm:$0xff] }
 0x178   :  { %3808 = vmatpush1.bf16.msra.mxu0 %v7018_v57  ;;  %4514 = vmatpush1.bf16.msra.mxu1 %v7021_v59  ;;  %v184_v57 = vld [vmem:[%s10293_s0 + $0x518] sm:$0xff] }
 0x179   :  { %3809 = vmatprep.subr.bf16.mxu0 %v7026_v15  ;;  %4515 = vmatprep.subr.bf16.mxu1 %v7029_v17  ;;  %v360_v60 = vpack.c.bf16 %v188_v58, %v184_v57  ;;  %v207_v15 = vld [vmem:[%s10293_s0 + $0x5d0] sm:$0xff]  ;;  %v216_v17 = vld [vmem:[%s10293_s0 + $0x618] sm:$0xff] }
 0x17a   :  { %1651 = vmatmul.mubr.bf16.gmra.mrb[28].mxu0 %v307_v33  ;;  %2357 = vmatmul.mubr.bf16.gmra.mrb[28].mxu1 %v307_v33  ;;  %v7035_v33 = vld [vmem:[%s10296_s3 + $0x1ec] ss:$16 sps:$4 sm:$0xff]  }
 0x17b   :  { %1660 = vmatprep.mubr.bf16.mxu0 %v312_v34  ;;  %2366 = vmatprep.mubr.bf16.mxu1 %v312_v34  ;;  %v7033_v34 = vld [vmem:[%s10296_s3 + $0x1e8] ss:$16 sps:$4 sm:$0xff]  }
 0x17c   :  { %3810 = vmatpush1.bf16.msra.mxu0 %v7024_v16  ;;  %4516 = vmatpush1.bf16.msra.mxu1 %v7027_v18  ;;  %v211_v16 = vld [vmem:[%s10293_s0 + $0x5f0] sm:$0xff]  ;;  %v220_v18 = vld [vmem:[%s10293_s0 + $0x638] sm:$0xff] }
 0x17d   :  { %3811 = vmatprep.subr.bf16.mxu0 %v7032_v31  ;;  %4517 = vmatprep.subr.bf16.mxu1 %v7035_v33  ;;  %v371_v19 = vpack.c.bf16 %v211_v16, %v207_v15  ;;  %v376_v20 = vpack.c.bf16 %v220_v18, %v216_v17  ;;  %v379_v31 = vpack.c.bf16 %v227_v28, %v223_v27 }
 0x180   :  { %3812 = vmatpush1.bf16.msra.mxu0 %v7030_v32  ;;  %4518 = vmatpush1.bf16.msra.mxu1 %v7033_v34  ;;  %v535_v32 = vlaneseq }
 0x181   :  { %4134 = vmatprep.subr.bf16.mxu0 %v7038_v47  ;;  %4840 = vmatprep.subr.bf16.mxu1 %v7041_v48 }
 0x182   :  { %1661 = vmatmul.mubr.bf16.gmra.mrb[32].mxu0 %v311_v39  ;;  %2367 = vmatmul.mubr.bf16.gmra.mrb[32].mxu1 %v311_v39  ;;  %v343_v39 = vpack.c.bf16 %v155_v36, %v151_v35  ;;  %v8985_v34 = vshrl.u32 %v535_v32, 7  ;;  %v231_v35 = vld [vmem:[%s10293_s0 + $0x690] sm:$0xff] }
 0x183   :  { %1670 = vmatprep.mubr.bf16.mxu0 %v316_v40  ;;  %2376 = vmatprep.mubr.bf16.mxu1 %v316_v40  ;;  %v348_v40 = vpack.c.bf16 %v164_v38, %v160_v37  ;;  %v235_v36 = vld [vmem:[%s10293_s0 + $0x6b0] sm:$0xff]  ;;  %v240_v37 = vld [vmem:[%s10293_s0 + $0x6d8] sm:$0xff] }
 0x184   :  { %10332 = vst [vmem:[#allocation5_spill] sm:$0xff] %v8985_v34  ;;  %v244_v38 = vld [vmem:[%s10293_s0 + $0x6f8] sm:$0xff]  ;;  %v10301_v41 = vsub.s32 2, %v8985_v34  ;;  %v10300_v43 = vsub.s32 1, %v8985_v34  ;;  %v10299_v44 = vsub.s32 3, %v8985_v34 }
 0x186   :  { %v9012_v47 = vrot.slane %v533_v42, %v10301_v41  ;;  %v9016_v48 = vrot.slane %v533_v42, %v10300_v43 }
 0x18a   :  { %1671 = vmatmul.mubr.bf16.gmra.mrb[36].mxu0 %v315_v49  ;;  %2377 = vmatmul.mubr.bf16.gmra.mrb[36].mxu1 %v315_v49  ;;  %v167_v49 = vld [vmem:[%s10293_s0 + $0x490] sm:$0xff] }
 0x18b   :  { %1680 = vmatprep.mubr.bf16.mxu0 %v320_v50  ;;  %2386 = vmatprep.mubr.bf16.mxu1 %v320_v50  ;;  %v171_v50 = vld [vmem:[%s10293_s0 + $0x4b0] sm:$0xff] }
 0x18c   :  { %v351_v53 = vpack.c.bf16 %v171_v50, %v167_v49  ;;  %v9020_v49 = vrot.slane %v533_v42, %v10299_v44  ;;  %v239_v50 = vld [vmem:[%s10293_s0 + $0x6d0] sm:$0xff] }
 0x192   :  { %1681 = vmatmul.mubr.bf16.gmra.mrb[40].mxu0 %v319_v55  ;;  %2387 = vmatmul.mubr.bf16.gmra.mrb[40].mxu1 %v319_v55  ;;  %v175_v55 = vld [vmem:[%s10293_s0 + $0x4d0] sm:$0xff] }
 0x193   :  { %1690 = vmatprep.mubr.bf16.mxu0 %v324_v56  ;;  %2396 = vmatprep.mubr.bf16.mxu1 %v324_v56  ;;  %v179_v56 = vld [vmem:[%s10293_s0 + $0x4f0] sm:$0xff] }
 0x194   :  { %v355_v59 = vpack.c.bf16 %v179_v56, %v175_v55 }
 0x19a   :  { %1691 = vmatmul.mubr.bf16.gmra.mrb[44].mxu0 %v323_v1  ;;  %2397 = vmatmul.mubr.bf16.gmra.mrb[44].mxu1 %v323_v1  ;;  %v359_v1 = vpack.c.bf16 %v187_v62, %v183_v61 }
 0x19b   :  { %1700 = vmatprep.mubr.bf16.mxu0 %v328_v2  ;;  %2406 = vmatprep.mubr.bf16.mxu1 %v328_v2  ;;  %v364_v2 = vpack.c.bf16 %v196_v0, %v192_v63 }
 0x1a2   :  { %1701 = vmatmul.mubr.bf16.gmra.mrb[48].mxu0 %v327_v7  ;;  %2407 = vmatmul.mubr.bf16.gmra.mrb[48].mxu1 %v327_v7  ;;  %v363_v7 = vpack.c.bf16 %v195_v4, %v191_v3 }
 0x1a3   :  { %1710 = vmatprep.mubr.bf16.mxu0 %v332_v8  ;;  %2416 = vmatprep.mubr.bf16.mxu1 %v332_v8  ;;  %v368_v8 = vpack.c.bf16 %v204_v6, %v200_v5 }
 0x1aa   :  { %1711 = vmatmul.mubr.bf16.gmra.mrb[52].mxu0 %v331_v13  ;;  %2417 = vmatmul.mubr.bf16.gmra.mrb[52].mxu1 %v331_v13  ;;  %v367_v13 = vpack.c.bf16 %v203_v10, %v199_v9  ;;  %v251_v9 = vld [vmem:[%s10293_s0 + $0x730] sm:$0xff]  ;;  %v256_v10 = vld [vmem:[%s10293_s0 + $0x758] sm:$0xff] }
 0x1ab   :  { %1720 = vmatprep.mubr.bf16.mxu0 %v336_v14  ;;  %2426 = vmatprep.mubr.bf16.mxu1 %v336_v14  ;;  %v372_v14 = vpack.c.bf16 %v212_v12, %v208_v11  ;;  %v260_v11 = vld [vmem:[%s10293_s0 + $0x778] sm:$0xff] }
 0x1b2   :  { %1721 = vmatmul.mubr.bf16.gmra.mrb[56].mxu0 %v335_v23  ;;  %2427 = vmatmul.mubr.bf16.gmra.mrb[56].mxu1 %v335_v23  ;;  %v224_v23 = vld [vmem:[%s10293_s0 + $0x658] sm:$0xff] }
 0x1b3   :  { %1730 = vmatprep.mubr.bf16.mxu0 %v340_v24  ;;  %2436 = vmatprep.mubr.bf16.mxu1 %v340_v24  ;;  %v228_v24 = vld [vmem:[%s10293_s0 + $0x678] sm:$0xff] }
 0x1b4   :  { %v380_v26 = vpack.c.bf16 %v228_v24, %v224_v23  ;;  %v396_v23 = vpack.c.bf16 %v260_v11, %v256_v10 }
 0x1ba   :  { %1731 = vmatmul.mubr.bf16.gmra.mrb[60].mxu0 %v339_v29  ;;  %2437 = vmatmul.mubr.bf16.gmra.mrb[60].mxu1 %v339_v29  ;;  %v232_v29 = vld [vmem:[%s10293_s0 + $0x698] sm:$0xff] }
 0x1bb   :  { %1740 = vmatprep.mubr.bf16.mxu0 %v344_v30  ;;  %2446 = vmatprep.mubr.bf16.mxu1 %v344_v30  ;;  %v236_v30 = vld [vmem:[%s10293_s0 + $0x6b8] sm:$0xff] }
 0x1bc   :  { %v384_v33 = vpack.c.bf16 %v236_v30, %v232_v29  ;;  %v255_v30 = vld [vmem:[%s10293_s0 + $0x750] sm:$0xff] }
 0x1c2   :  { %1741 = vmatmul.mubr.bf16.gmra.mrb[64].mxu0 %v343_v39  ;;  %2447 = vmatmul.mubr.bf16.gmra.mrb[64].mxu1 %v343_v39  ;;  %v383_v39 = vpack.c.bf16 %v235_v36, %v231_v35  ;;  %v264_v35 = vld [vmem:[%s10293_s0 + $0x798] sm:$0xff] }
 0x1c3   :  { %1750 = vmatprep.mubr.bf16.mxu0 %v348_v40  ;;  %2456 = vmatprep.mubr.bf16.mxu1 %v348_v40  ;;  %v10302_v40 = vsub.s32 0, %v8985_v34  ;;  %v268_v36 = vld [vmem:[%s10293_s0 + $0x7b8] sm:$0xff] }
 0x1ca   :  { %1751 = vmatmul.mubr.bf16.gmra.mrb[68].mxu0 %v347_v45  ;;  %2457 = vmatmul.mubr.bf16.gmra.mrb[68].mxu1 %v347_v45  ;;  %v388_v45 = vpack.c.bf16 %v244_v38, %v240_v37 }
 0x1cb   :  { %1760 = vmatprep.mubr.bf16.mxu0 %v352_v46  ;;  %2466 = vmatprep.mubr.bf16.mxu1 %v352_v46  ;;  %v9008_v46 = vrot.slane %v533_v42, %v10302_v40 }
 0x1d2   :  { %1761 = vmatmul.mubr.bf16.gmra.mrb[72].mxu0 %v351_v53  ;;  %2467 = vmatmul.mubr.bf16.gmra.mrb[72].mxu1 %v351_v53  ;;  %v252_v53 = vld [vmem:[%s10293_s0 + $0x738] sm:$0xff] }
 0x1d3   :  { %1770 = vmatprep.mubr.bf16.mxu0 %v356_v54  ;;  %2476 = vmatprep.mubr.bf16.mxu1 %v356_v54 }
 0x1da   :  { %1771 = vmatmul.mubr.bf16.gmra.mrb[76].mxu0 %v355_v59  ;;  %2477 = vmatmul.mubr.bf16.gmra.mrb[76].mxu1 %v355_v59 }
 0x1db   :  { %1780 = vmatprep.mubr.bf16.mxu0 %v360_v60  ;;  %2486 = vmatprep.mubr.bf16.mxu1 %v360_v60  ;;  %v387_v60 = vpack.c.bf16 %v243_v51, %v239_v50 }
 0x1e2   :  { %1781 = vmatmul.mubr.bf16.gmra.mrb[80].mxu0 %v359_v1  ;;  %2487 = vmatmul.mubr.bf16.gmra.mrb[80].mxu1 %v359_v1  ;;  %v392_v1 = vpack.c.bf16 %v252_v53, %v248_v52 }
 0x1e3   :  { %1790 = vmatprep.mubr.bf16.mxu0 %v364_v2  ;;  %2496 = vmatprep.mubr.bf16.mxu1 %v364_v2 }
 0x1ea   :  { %1791 = vmatmul.mubr.bf16.gmra.mrb[84].mxu0 %v363_v7  ;;  %2497 = vmatmul.mubr.bf16.gmra.mrb[84].mxu1 %v363_v7 }
 0x1eb   :  { %1800 = vmatprep.mubr.bf16.mxu0 %v368_v8  ;;  %2506 = vmatprep.mubr.bf16.mxu1 %v368_v8  ;;  %v247_v8 = vld [vmem:[%s10293_s0 + $0x710] sm:$0xff] }
 0x1ec   :  { %v391_v18 = vpack.c.bf16 %v251_v9, %v247_v8  ;;  %v263_v8 = vld [vmem:[%s10293_s0 + $0x790] sm:$0xff] }
 0x1ed   :  { %v267_v9 = vld [vmem:[%s10293_s0 + $0x7b0] sm:$0xff] }
 0x1f2   :  { %1801 = vmatmul.mubr.bf16.gmra.mrb[88].mxu0 %v367_v13  ;;  %2507 = vmatmul.mubr.bf16.gmra.mrb[88].mxu1 %v367_v13 }
 0x1f3   :  { %1810 = vmatprep.mubr.bf16.mxu0 %v372_v14  ;;  %2516 = vmatprep.mubr.bf16.mxu1 %v372_v14 }
 0x1fa   :  { %1811 = vmatmul.mubr.bf16.gmra.mrb[92].mxu0 %v371_v19  ;;  %2517 = vmatmul.mubr.bf16.gmra.mrb[92].mxu1 %v371_v19 }
 0x1fb   :  { %1820 = vmatprep.mubr.bf16.mxu0 %v376_v20  ;;  %2526 = vmatprep.mubr.bf16.mxu1 %v376_v20 }
 0x202   :  { %1821 = vmatmul.mubr.bf16.gmra.mrb[96].mxu0 %v375_v25  ;;  %2527 = vmatmul.mubr.bf16.gmra.mrb[96].mxu1 %v375_v25 }
 0x203   :  { %1830 = vmatprep.mubr.bf16.mxu0 %v380_v26  ;;  %2536 = vmatprep.mubr.bf16.mxu1 %v380_v26 }
 0x20a   :  { %1831 = vmatmul.mubr.bf16.gmra.mrb[100].mxu0 %v379_v31  ;;  %2537 = vmatmul.mubr.bf16.gmra.mrb[100].mxu1 %v379_v31  ;;  %v259_v31 = vld [vmem:[%s10293_s0 + $0x770] sm:$0xff] }
 0x20b   :  { %1840 = vmatprep.mubr.bf16.mxu0 %v384_v33  ;;  %2546 = vmatprep.mubr.bf16.mxu1 %v384_v33 }
 0x212   :  { %1841 = vmatmul.mubr.bf16.gmra.mrb[104].mxu0 %v383_v39  ;;  %2547 = vmatmul.mubr.bf16.gmra.mrb[104].mxu1 %v383_v39 }
 0x213   :  { %1850 = vmatprep.mubr.bf16.mxu0 %v388_v45  ;;  %2556 = vmatprep.mubr.bf16.mxu1 %v388_v45  ;;  %v395_v45 = vpack.c.bf16 %v259_v31, %v255_v30 }
 0x215   :  { %v1582_v54 = vpop.f32.mrb[0].mxu0  ;;  %v2288_v55 = vpop.f32.mrb[0].mxu1 }
 0x216   :  { %v5721_v56 = vadd.f32 %v1582_v54, %v9008_v46  ;;  %v5849_v57 = vadd.f32 %v2288_v55, %v9012_v47  ;;  %v1584_v58 = vpop.f32.mrb[1].mxu0  ;;  %v2290_v59 = vpop.f32.mrb[1].mxu1  ;;  %v400_v55 = vpack.c.bf16 %v268_v36, %v264_v35 }
 0x217   :  { %v5722_v61 = vadd.f32 %v1584_v58, %v9016_v48  ;;  %v5850_v62 = vadd.f32 %v2290_v59, %v9020_v49  ;;  %v1586_v63 = vpop.f32.mrb[2].mxu0  ;;  %v2292_v0 = vpop.f32.mrb[2].mxu1 }
 0x218   :  { %7132 = vtanh.f32 %v5721_v56  ;;  %v5723_v2 = vadd.f32 %v1586_v63, %v9008_v46  ;;  %v1588_v3 = vpop.f32.mrb[3].mxu0  ;;  %v2294_v4 = vpop.f32.mrb[3].mxu1  ;;  %v5851_v5 = vadd.f32 %v2292_v0, %v9012_v47 }
 0x219   :  { %7134 = vtanh.f32 %v5849_v57  ;;  %v5724_v6 = vadd.f32 %v1588_v3, %v9016_v48  ;;  %v5852_v7 = vadd.f32 %v2294_v4, %v9020_v49 }
 0x21a   :  { %7136 = vtanh.f32 %v5722_v61  ;;  %1851 = vmatmul.mubr.bf16.gmra.mrb[108].mxu0 %v387_v60  ;;  %2557 = vmatmul.mubr.bf16.gmra.mrb[108].mxu1 %v387_v60 }
 0x21b   :  { %7138 = vtanh.f32 %v5850_v62  ;;  %1860 = vmatprep.mubr.bf16.mxu0 %v392_v1  ;;  %2566 = vmatprep.mubr.bf16.mxu1 %v392_v1 }
 0x21c   :  { %7140 = vtanh.f32 %v5723_v2 }
 0x21d   :  { %7142 = vtanh.f32 %v5851_v5  ;;  %v1592_v12 = vpop.f32.mrb[4].mxu0  ;;  %v2298_v13 = vpop.f32.mrb[4].mxu1 }
 0x21e   :  { %7144 = vtanh.f32 %v5724_v6  ;;  %v5725_v14 = vadd.f32 %v1592_v12, %v9008_v46  ;;  %v5853_v15 = vadd.f32 %v2298_v13, %v9012_v47  ;;  %v1594_v16 = vpop.f32.mrb[5].mxu0  ;;  %v2300_v17 = vpop.f32.mrb[5].mxu1  ;;  %v272_v13 = vld [vmem:[%s10293_s0 + $0x7d8] sm:$0xff] }
 0x21f   :  { %7146 = vtanh.f32 %v5852_v7  ;;  %v5726_v19 = vadd.f32 %v1594_v16, %v9016_v48  ;;  %v5854_v20 = vadd.f32 %v2300_v17, %v9020_v49  ;;  %v1596_v21 = vpop.f32.mrb[6].mxu0  ;;  %v2302_v22 = vpop.f32.mrb[6].mxu1 }
 0x220   :  { %7148 = vtanh.f32 %v5725_v14  ;;  %v5727_v24 = vadd.f32 %v1596_v21, %v9008_v46  ;;  %v1598_v25 = vpop.f32.mrb[7].mxu0  ;;  %v2304_v26 = vpop.f32.mrb[7].mxu1  ;;  %v5855_v27 = vadd.f32 %v2302_v22, %v9012_v47  ;;  %v276_v14 = vld [vmem:[%s10293_s0 + $0x7f8] sm:$0xff] }
 0x221   :  { %7150 = vtanh.f32 %v5853_v15  ;;  %v5728_v29 = vadd.f32 %v1598_v25, %v9016_v48  ;;  %v5856_v33 = vadd.f32 %v2304_v26, %v9020_v49  ;;  %v404_v25 = vpack.c.bf16 %v276_v14, %v272_v13 }
 0x222   :  { %v7133_v28 = vpop.eup %7132  ;;  %7152 = vtanh.f32 %v5726_v19  ;;  %1861 = vmatmul.mubr.bf16.gmra.mrb[112].mxu0 %v391_v18  ;;  %2567 = vmatmul.mubr.bf16.gmra.mrb[112].mxu1 %v391_v18  ;;  %v399_v19 = vpack.c.bf16 %v267_v9, %v263_v8 }
 0x223   :  { %v7135_v32 = vpop.eup %7134  ;;  %7154 = vtanh.f32 %v5854_v20  ;;  %1870 = vmatprep.mubr.bf16.mxu0 %v396_v23  ;;  %2576 = vmatprep.mubr.bf16.mxu1 %v396_v23 }
 0x224   :  { %v7137_v37 = vpop.eup %7136  ;;  %7156 = vtanh.f32 %v5727_v24 }
 0x225   :  { %v7139_v38 = vpop.eup %7138  ;;  %7158 = vtanh.f32 %v5855_v27  ;;  %v1602_v39 = vpop.f32.mrb[8].mxu0 }
 0x226   :  { %v2308_v42 = vpop.f32.mrb[8].mxu1  ;;  %v7141_v50 = vpop.eup %7140  ;;  %7160 = vtanh.f32 %v5728_v29  ;;  %v5729_v51 = vadd.f32 %v1602_v39, %v9008_v46 }
 0x227   :  { %v5857_v52 = vadd.f32 %v2308_v42, %v9012_v47  ;;  %v1604_v53 = vpop.f32.mrb[9].mxu0  ;;  %v2310_v54 = vpop.f32.mrb[9].mxu1  ;;  %7162 = vtanh.f32 %v5856_v33  ;;  %v9078_v61 = vpack.c.bf16 %v7141_v50, %v7133_v28 }
 0x228   :  { %v7143_v56 = vpop.eup %7142  ;;  %v5730_v57 = vadd.f32 %v1604_v53, %v9016_v48  ;;  %v5858_v58 = vadd.f32 %v2310_v54, %v9020_v49  ;;  %v1606_v59 = vpop.f32.mrb[10].mxu0  ;;  %7164 = vtanh.f32 %v5729_v51  ;;  %v271_v54 = vld [vmem:[%s10293_s0 + $0x7d0] sm:$0xff] }
 0x229   :  { %v2312_v60 = vpop.f32.mrb[10].mxu1  ;;  %v7145_v62 = vpop.eup %7144  ;;  %v5731_v63 = vadd.f32 %v1606_v59, %v9008_v46  ;;  %v9081_v2 = vpack.c.bf16 %v7143_v56, %v7135_v32  ;;  %7166 = vtanh.f32 %v5857_v52 }
 0x22a   :  { %v1608_v0 = vpop.f32.mrb[11].mxu0  ;;  %v2314_v1 = vpop.f32.mrb[11].mxu1  ;;  %v5859_v4 = vadd.f32 %v2312_v60, %v9012_v47  ;;  %v9084_v5 = vpack.c.bf16 %v7145_v62, %v7137_v37  ;;  %7168 = vtanh.f32 %v5730_v57  ;;  %1871 = vmatmul.mubr.bf16.gmra.mrb[116].mxu0 %v395_v45  ;;  %2577 = vmatmul.mubr.bf16.gmra.mrb[116].mxu1 %v395_v45 }
 0x22b   :  { %v7147_v3 = vpop.eup %7146  ;;  %v5732_v7 = vadd.f32 %v1608_v0, %v9016_v48  ;;  %7170 = vtanh.f32 %v5858_v58  ;;  %v5860_v12 = vadd.f32 %v2314_v1, %v9020_v49  ;;  %1880 = vmatprep.mubr.bf16.mxu0 %v400_v55  ;;  %2586 = vmatprep.mubr.bf16.mxu1 %v400_v55  ;;  %v275_v55 = vld [vmem:[%s10293_s0 + $0x7f0] sm:$0xff] }
 0x22c   :  { %v7149_v6 = vpop.eup %7148  ;;  %v9093_v10 = vpack.c.bf16 %v7147_v3, %v7139_v38  ;;  %7172 = vtanh.f32 %v5731_v63  ;;  %v403_v3 = vpack.c.bf16 %v275_v55, %v271_v54 }
 0x22d   :  { %v7151_v11 = vpop.eup %7150  ;;  %7174 = vtanh.f32 %v5859_v4  ;;  %v1612_v17 = vpop.f32.mrb[12].mxu0 }
 0x22e   :  { %v7153_v15 = vpop.eup %7152  ;;  %v2318_v18 = vpop.f32.mrb[12].mxu1  ;;  %7176 = vtanh.f32 %v5732_v7  ;;  %v5733_v21 = vadd.f32 %v1612_v17, %v9008_v46 }
 0x22f   :  { %v7155_v16 = vpop.eup %7154  ;;  %v5861_v22 = vadd.f32 %v2318_v18, %v9012_v47  ;;  %v1614_v23 = vpop.f32.mrb[13].mxu0  ;;  %7178 = vtanh.f32 %v5860_v12 }
 0x230   :  { %v7157_v20 = vpop.eup %7156  ;;  %v2320_v24 = vpop.f32.mrb[13].mxu1  ;;  %v5734_v27 = vadd.f32 %v1614_v23, %v9016_v48  ;;  %7180 = vtanh.f32 %v5733_v21 }
 0x231   :  { %v7159_v26 = vpop.eup %7158  ;;  %v5862_v28 = vadd.f32 %v2320_v24, %v9020_v49  ;;  %v1616_v29 = vpop.f32.mrb[14].mxu0  ;;  %v9106_v31 = vpack.c.bf16 %v7157_v20, %v7149_v6  ;;  %7182 = vtanh.f32 %v5861_v22 }
 0x232   :  { %v2322_v30 = vpop.f32.mrb[14].mxu1  ;;  %v7161_v32 = vpop.eup %7160  ;;  %v5735_v33 = vadd.f32 %v1616_v29, %v9008_v46  ;;  %v9109_v37 = vpack.c.bf16 %v7159_v26, %v7151_v11  ;;  %7184 = vtanh.f32 %v5734_v27  ;;  %1881 = vmatmul.mubr.bf16.gmra.mrb[120].mxu0 %v399_v19  ;;  %2587 = vmatmul.mubr.bf16.gmra.mrb[120].mxu1 %v399_v19 }
 0x233   :  { %v1618_v35 = vpop.f32.mrb[15].mxu0  ;;  %v2324_v36 = vpop.f32.mrb[15].mxu1  ;;  %v5863_v39 = vadd.f32 %v2322_v30, %v9012_v47  ;;  %v9112_v42 = vpack.c.bf16 %v7161_v32, %v7153_v15  ;;  %7186 = vtanh.f32 %v5862_v28  ;;  %1890 = vmatprep.mubr.bf16.mxu0 %v404_v25  ;;  %2596 = vmatprep.mubr.bf16.mxu1 %v404_v25 }
 0x234   :  { %v7163_v38 = vpop.eup %7162  ;;  %v5736_v50 = vadd.f32 %v1618_v35, %v9016_v48  ;;  %v5864_v53 = vadd.f32 %v2324_v36, %v9020_v49  ;;  %7188 = vtanh.f32 %v5735_v33 }
 0x235   :  { %v7165_v45 = vpop.eup %7164  ;;  %v9115_v51 = vpack.c.bf16 %v7163_v38, %v7155_v16  ;;  %7190 = vtanh.f32 %v5863_v39  ;;  %v1622_v58 = vpop.f32.mrb[16].mxu0 }
 0x236   :  { %v7167_v52 = vpop.eup %7166  ;;  %v2328_v59 = vpop.f32.mrb[16].mxu1  ;;  %7192 = vtanh.f32 %v5736_v50  ;;  %v5737_v62 = vadd.f32 %v1622_v58, %v9008_v46  ;;  %v7036_v50 = vld [vmem:[%s10296_s3 + $0x200] ss:$16 sps:$4 sm:$0xff]  }
 0x237   :  { %v7169_v56 = vpop.eup %7168  ;;  %v5865_v63 = vadd.f32 %v2328_v59, %v9012_v47  ;;  %v1624_v0 = vpop.f32.mrb[17].mxu0  ;;  %7194 = vtanh.f32 %v5864_v53 }
 0x238   :  { %v7171_v57 = vpop.eup %7170  ;;  %v2330_v1 = vpop.f32.mrb[17].mxu1  ;;  %v5738_v6 = vadd.f32 %v1624_v0, %v9016_v48  ;;  %7196 = vtanh.f32 %v5737_v62  ;;  %v7044_v62 = vld [vmem:[%s10296_s3 + $0x224] ss:$16 sps:$4 sm:$0xff]  }
 0x239   :  { %v7173_v60 = vpop.eup %7172  ;;  %v5866_v7 = vadd.f32 %v2330_v1, %v9020_v49  ;;  %v1626_v8 = vpop.f32.mrb[18].mxu0  ;;  %7198 = vtanh.f32 %v5865_v63  ;;  %v7047_v63 = vld [vmem:[%s10296_s3 + $0x22c] ss:$16 sps:$4 sm:$0xff]  }
 0x23a   :  { %v7175_v4 = vpop.eup %7174  ;;  %v2332_v9 = vpop.f32.mrb[18].mxu1  ;;  %v9128_v11 = vpack.c.bf16 %v7173_v60, %v7165_v45  ;;  %v5739_v13 = vadd.f32 %v1626_v8, %v9008_v46  ;;  %7200 = vtanh.f32 %v5738_v6  ;;  %1891 = vmatmul.mubr.bf16.gmra.mrb[124].mxu0 %v403_v3  ;;  %2597 = vmatmul.mubr.bf16.gmra.mrb[124].mxu1 %v403_v3  ;;  %v7042_v8 = vld [vmem:[%s10296_s3 + $0x220] ss:$16 sps:$4 sm:$0xff]  }
 0x23b   :  { %v7177_v12 = vpop.eup %7176  ;;  %v1628_v14 = vpop.f32.mrb[19].mxu0  ;;  %v9131_v16 = vpack.c.bf16 %v7175_v4, %v7167_v52  ;;  %v5867_v18 = vadd.f32 %v2332_v9, %v9012_v47  ;;  %7202 = vtanh.f32 %v5866_v7  ;;  %3813 = vmatprep.mubr.bf16.mxu0 %v9084_v5  ;;  %4519 = vmatprep.mubr.bf16.mxu1 %v9084_v5 }
 0x23c   :  { %v2334_v15 = vpop.f32.mrb[19].mxu1  ;;  %v7179_v17 = vpop.eup %7178  ;;  %v9134_v19 = vpack.c.bf16 %v7177_v12, %v7169_v56  ;;  %v5740_v21 = vadd.f32 %v1628_v14, %v9016_v48  ;;  %7204 = vtanh.f32 %v5739_v13  ;;  %v7050_v12 = vld [vmem:[%s10296_s3 + $0x244] ss:$16 sps:$4 sm:$0xff]  }
 0x23d   :  { %v7181_v20 = vpop.eup %7180  ;;  %v9137_v22 = vpack.c.bf16 %v7179_v17, %v7171_v57  ;;  %v5868_v24 = vadd.f32 %v2334_v15, %v9020_v49  ;;  %7206 = vtanh.f32 %v5867_v18  ;;  %v1632_v27 = vpop.f32.mrb[20].mxu0  ;;  %v7039_v57 = vld [vmem:[%s10296_s3 + $0x208] ss:$16 sps:$4 sm:$0xff]   ;;  %v7053_v17 = vld [vmem:[%s10296_s3 + $0x24c] ss:$16 sps:$4 sm:$0xff]  }
 0x23e   :  { %v7183_v23 = vpop.eup %7182  ;;  %v2338_v28 = vpop.f32.mrb[20].mxu1  ;;  %7208 = vtanh.f32 %v5740_v21  ;;  %v5741_v30 = vadd.f32 %v1632_v27, %v9008_v46 }
 0x23f   :  { %v7185_v25 = vpop.eup %7184  ;;  %v5869_v32 = vadd.f32 %v2338_v28, %v9012_v47  ;;  %v1634_v33 = vpop.f32.mrb[21].mxu0  ;;  %7210 = vtanh.f32 %v5868_v24 }
 0x240   :  { %v7187_v26 = vpop.eup %7186  ;;  %v2340_v35 = vpop.f32.mrb[21].mxu1  ;;  %v5742_v38 = vadd.f32 %v1634_v33, %v9016_v48  ;;  %7212 = vtanh.f32 %v5741_v30 }
 0x241   :  { %v7189_v29 = vpop.eup %7188  ;;  %v5870_v5 = vadd.f32 %v2340_v35, %v9020_v49  ;;  %v1636_v39 = vpop.f32.mrb[22].mxu0  ;;  %7214 = vtanh.f32 %v5869_v32 }
 0x242   :  { %v7191_v36 = vpop.eup %7190  ;;  %v2342_v45 = vpop.f32.mrb[22].mxu1  ;;  %v9149_v52 = vpack.c.bf16 %v7189_v29, %v7181_v20  ;;  %v5743_v54 = vadd.f32 %v1636_v39, %v9008_v46  ;;  %7216 = vtanh.f32 %v5742_v38  ;;  %3814 = vmatmul.mubr.bf16.vlgmr.msra.gmra.mrb[128].mxu0 %v9078_v61  ;;  %4520 = vmatmul.mubr.bf16.vlgmr.msra.gmra.mrb[128].mxu1 %v9078_v61  ;;  %v7045_v61 = vld [vmem:[%s10296_s3 + $0x228] ss:$16 sps:$4 sm:$0xff]  }
 0x243   :  { %v7193_v53 = vpop.eup %7192  ;;  %v1638_v55 = vpop.f32.mrb[23].mxu0  ;;  %v9155_v58 = vpack.c.bf16 %v7191_v36, %v7183_v23  ;;  %v5871_v60 = vadd.f32 %v2342_v45, %v9012_v47  ;;  %7218 = vtanh.f32 %v5870_v5  ;;  %3823 = vmatprep.mubr.bf16.mxu0 %v9112_v42  ;;  %4135 = vmatpush1.bf16.msra.mxu0 %v7036_v50  ;;  %v7048_v36 = vld [vmem:[%s10296_s3 + $0x240] ss:$16 sps:$4 sm:$0xff]   ;;  %v7051_v38 = vld [vmem:[%s10296_s3 + $0x248] ss:$16 sps:$4 sm:$0xff]  }
 0x244   :  { %v2344_v56 = vpop.f32.mrb[23].mxu1  ;;  %v7195_v59 = vpop.eup %7194  ;;  %v9164_v0 = vpack.c.bf16 %v7193_v53, %v7185_v25  ;;  %v5744_v3 = vadd.f32 %v1638_v55, %v9016_v48  ;;  %7220 = vtanh.f32 %v5743_v54  ;;  %4529 = vmatprep.mubr.bf16.mxu1 %v9112_v42  ;;  %4841 = vmatpush1.bf16.msra.mxu1 %v7039_v57  ;;  %v7056_v53 = vld [vmem:[%s10296_s3 + $0x264] ss:$16 sps:$4 sm:$0xff]   ;;  %v7059_v54 = vld [vmem:[%s10296_s3 + $0x26c] ss:$16 sps:$4 sm:$0xff]  }
 0x245   :  { %v7197_v1 = vpop.eup %7196  ;;  %v9169_v4 = vpack.c.bf16 %v7195_v59, %v7187_v26  ;;  %v5872_v7 = vadd.f32 %v2344_v56, %v9020_v49  ;;  %7222 = vtanh.f32 %v5871_v60  ;;  %v1642_v14 = vpop.f32.mrb[24].mxu0  ;;  %4136 = vmatprep.subr.bf16.mxu0 %v7044_v62  ;;  %4842 = vmatprep.subr.bf16.mxu1 %v7047_v63  ;;  %v7054_v63 = vld [vmem:[%s10296_s3 + $0x260] ss:$16 sps:$4 sm:$0xff]  }
 0x246   :  { %v7199_v6 = vpop.eup %7198  ;;  %v2348_v15 = vpop.f32.mrb[24].mxu1  ;;  %7224 = vtanh.f32 %v5744_v3  ;;  %v5745_v18 = vadd.f32 %v1642_v14, %v9008_v46 }
 0x247   :  { %v7201_v9 = vpop.eup %7200  ;;  %v5873_v20 = vadd.f32 %v2348_v15, %v9012_v47  ;;  %v1644_v21 = vpop.f32.mrb[25].mxu0  ;;  %7226 = vtanh.f32 %v5872_v7  ;;  %4137 = vmatpush1.bf16.msra.mxu0 %v7042_v8  ;;  %v7065_v7 = vld [vmem:[%s10296_s3 + $0x28c] ss:$16 sps:$4 sm:$0xff]  }
 0x248   :  { %v7203_v13 = vpop.eup %7202  ;;  %v2350_v23 = vpop.f32.mrb[25].mxu1  ;;  %v5746_v25 = vadd.f32 %v1644_v21, %v9016_v48  ;;  %7228 = vtanh.f32 %v5745_v18  ;;  %4843 = vmatpush1.bf16.msra.mxu1 %v7045_v61  ;;  %4138 = vmatprep.subr.bf16.mxu0 %v7050_v12 }
 0x249   :  { %v7205_v42 = vpop.eup %7204  ;;  %v5874_v26 = vadd.f32 %v2350_v23, %v9020_v49  ;;  %v1646_v27 = vpop.f32.mrb[26].mxu0  ;;  %7230 = vtanh.f32 %v5873_v20  ;;  %4844 = vmatprep.subr.bf16.mxu1 %v7053_v17 }
 0x24a   :  { %v7207_v24 = vpop.eup %7206  ;;  %v2352_v28 = vpop.f32.mrb[26].mxu1  ;;  %v9190_v29 = vpack.c.bf16 %v7205_v42, %v7197_v1  ;;  %v5747_v32 = vadd.f32 %v1646_v27, %v9008_v46  ;;  %7232 = vtanh.f32 %v5746_v25  ;;  %3824 = vmatmul.mubr.bf16.gmra.mrb[132].mxu0 %v9106_v31  ;;  %4530 = vmatmul.mubr.bf16.gmra.mrb[132].mxu1 %v9106_v31  ;;  %v7057_v31 = vld [vmem:[%s10296_s3 + $0x268] ss:$16 sps:$4 sm:$0xff]  }
 0x24b   :  { %v7209_v30 = vpop.eup %7208  ;;  %v1648_v33 = vpop.f32.mrb[27].mxu0  ;;  %v9199_v5 = vpack.c.bf16 %v7207_v24, %v7199_v6  ;;  %v5875_v45 = vadd.f32 %v2352_v28, %v9012_v47  ;;  %7234 = vtanh.f32 %v5874_v26  ;;  %3833 = vmatprep.mubr.bf16.mxu0 %v9134_v19  ;;  %4539 = vmatprep.mubr.bf16.mxu1 %v9134_v19  ;;  %v7062_v19 = vld [vmem:[%s10296_s3 + $0x284] ss:$16 sps:$4 sm:$0xff]   ;;  %v7060_v26 = vld [vmem:[%s10296_s3 + $0x280] ss:$16 sps:$4 sm:$0xff]  }
 0x24c   :  { %v2354_v35 = vpop.f32.mrb[27].mxu1  ;;  %v7211_v39 = vpop.eup %7210  ;;  %v9202_v50 = vpack.c.bf16 %v7209_v30, %v7201_v9  ;;  %v5748_v56 = vadd.f32 %v1648_v33, %v9016_v48  ;;  %7236 = vtanh.f32 %v5747_v32  ;;  %4139 = vmatpush1.bf16.msra.mxu0 %v7048_v36  ;;  %4845 = vmatpush1.bf16.msra.mxu1 %v7051_v38  ;;  %v7063_v27 = vld [vmem:[%s10296_s3 + $0x288] ss:$16 sps:$4 sm:$0xff]   ;;  %v7071_v36 = vld [vmem:[%s10296_s3 + $0x2ac] ss:$16 sps:$4 sm:$0xff]  }
 0x24d   :  { %v7213_v55 = vpop.eup %7212  ;;  %v9213_v57 = vpack.c.bf16 %v7211_v39, %v7203_v13  ;;  %v5876_v60 = vadd.f32 %v2354_v35, %v9020_v49  ;;  %7238 = vtanh.f32 %v5875_v45  ;;  %v1652_v3 = vpop.f32.mrb[28].mxu0  ;;  %4140 = vmatprep.subr.bf16.mxu0 %v7056_v53  ;;  %4846 = vmatprep.subr.bf16.mxu1 %v7059_v54  ;;  %v7068_v35 = vld [vmem:[%s10296_s3 + $0x2a4] ss:$16 sps:$4 sm:$0xff]  }
 0x24e   :  { %v7215_v59 = vpop.eup %7214  ;;  %v2358_v6 = vpop.f32.mrb[28].mxu1  ;;  %7240 = vtanh.f32 %v5748_v56  ;;  %v5749_v9 = vadd.f32 %v1652_v3, %v9008_v46  ;;  %v7066_v56 = vld [vmem:[%s10296_s3 + $0x2a0] ss:$16 sps:$4 sm:$0xff]  }
 0x24f   :  { %v7217_v62 = vpop.eup %7216  ;;  %v5877_v61 = vadd.f32 %v2358_v6, %v9012_v47  ;;  %v1654_v12 = vpop.f32.mrb[29].mxu0  ;;  %7242 = vtanh.f32 %v5876_v60 }
 0x250   :  { %v7219_v1 = vpop.eup %7218  ;;  %v2360_v13 = vpop.f32.mrb[29].mxu1  ;;  %v5750_v15 = vadd.f32 %v1654_v12, %v9016_v48  ;;  %7244 = vtanh.f32 %v5749_v9  ;;  %4141 = vmatpush1.bf16.msra.mxu0 %v7054_v63  ;;  %4847 = vmatpush1.bf16.msra.mxu1 %v7057_v31  ;;  %v7077_v63 = vld [vmem:[%s10296_s3 + $0x2cc] ss:$16 sps:$4 sm:$0xff]  }
 0x251   :  { %v7221_v8 = vpop.eup %7220  ;;  %v5878_v17 = vadd.f32 %v2360_v13, %v9020_v49  ;;  %v1656_v42 = vpop.f32.mrb[30].mxu0  ;;  %7246 = vtanh.f32 %v5877_v61  ;;  %4142 = vmatprep.subr.bf16.mxu0 %v7062_v19  ;;  %4848 = vmatprep.subr.bf16.mxu1 %v7065_v7 }
 0x252   :  { %v7223_v14 = vpop.eup %7222  ;;  %v2362_v18 = vpop.f32.mrb[30].mxu1  ;;  %v9234_v20 = vpack.c.bf16 %v7221_v8, %v7213_v55  ;;  %v5751_v23 = vadd.f32 %v1656_v42, %v9008_v46  ;;  %7248 = vtanh.f32 %v5750_v15  ;;  %3834 = vmatmul.mubr.bf16.gmra.mrb[136].mxu0 %v9128_v11  ;;  %4540 = vmatmul.mubr.bf16.gmra.mrb[136].mxu1 %v9128_v11  ;;  %v7069_v11 = vld [vmem:[%s10296_s3 + $0x2a8] ss:$16 sps:$4 sm:$0xff]  }
 0x253   :  { %v7225_v21 = vpop.eup %7224  ;;  %v1658_v24 = vpop.f32.mrb[31].mxu0  ;;  %v9243_v28 = vpack.c.bf16 %v7223_v14, %v7215_v59  ;;  %v5879_v32 = vadd.f32 %v2362_v18, %v9012_v47  ;;  %7250 = vtanh.f32 %v5878_v17  ;;  %3843 = vmatprep.mubr.bf16.mxu0 %v9164_v0  ;;  %4549 = vmatprep.mubr.bf16.mxu1 %v9164_v0  ;;  %v7074_v0 = vld [vmem:[%s10296_s3 + $0x2c4] ss:$16 sps:$4 sm:$0xff]   ;;  %v7072_v18 = vld [vmem:[%s10296_s3 + $0x2c0] ss:$16 sps:$4 sm:$0xff]  }
 0x254   :  { %v2364_v25 = vpop.f32.mrb[31].mxu1  ;;  %v7227_v30 = vpop.eup %7226  ;;  %v9246_v33 = vpack.c.bf16 %v7225_v21, %v7217_v62  ;;  %v5752_v39 = vadd.f32 %v1658_v24, %v9016_v48  ;;  %7252 = vtanh.f32 %v5751_v23  ;;  %4143 = vmatpush1.bf16.msra.mxu0 %v7060_v26  ;;  %4849 = vmatpush1.bf16.msra.mxu1 %v7063_v27  ;;  %v7075_v21 = vld [vmem:[%s10296_s3 + $0x2c8] ss:$16 sps:$4 sm:$0xff]   ;;  %v7080_v27 = vld [vmem:[%s10296_s3 + $0x2e4] ss:$16 sps:$4 sm:$0xff]  }
 0x255   :  { %v7229_v38 = vpop.eup %7228  ;;  %v9257_v45 = vpack.c.bf16 %v7227_v30, %v7219_v1  ;;  %v5880_v54 = vadd.f32 %v2364_v25, %v9020_v49  ;;  %7254 = vtanh.f32 %v5879_v32  ;;  %v1662_v60 = vpop.f32.mrb[32].mxu0  ;;  %4144 = vmatprep.subr.bf16.mxu0 %v7068_v35  ;;  %4850 = vmatprep.subr.bf16.mxu1 %v7071_v36  ;;  %v7083_v30 = vld [vmem:[%s10296_s3 + $0x2ec] ss:$16 sps:$4 sm:$0xff]  }
 0x256   :  { %v7231_v53 = vpop.eup %7230  ;;  %v2368_v62 = vpop.f32.mrb[32].mxu1  ;;  %7256 = vtanh.f32 %v5752_v39  ;;  %v5753_v1 = vadd.f32 %v1662_v60, %v9008_v46 }
 0x257   :  { %v7233_v55 = vpop.eup %7232  ;;  %v5881_v3 = vadd.f32 %v2368_v62, %v9012_v47  ;;  %v1664_v6 = vpop.f32.mrb[33].mxu0  ;;  %7258 = vtanh.f32 %v5880_v54  ;;  %v7078_v54 = vld [vmem:[%s10296_s3 + $0x2e0] ss:$16 sps:$4 sm:$0xff]  }
 0x258   :  { %v7235_v59 = vpop.eup %7234  ;;  %v2370_v19 = vpop.f32.mrb[33].mxu1  ;;  %v5754_v8 = vadd.f32 %v1664_v6, %v9016_v48  ;;  %7260 = vtanh.f32 %v5753_v1  ;;  %4145 = vmatpush1.bf16.msra.mxu0 %v7066_v56  ;;  %4851 = vmatpush1.bf16.msra.mxu1 %v7069_v11 }
 0x259   :  { %v7237_v31 = vpop.eup %7236  ;;  %v5882_v9 = vadd.f32 %v2370_v19, %v9020_v49  ;;  %v1666_v61 = vpop.f32.mrb[34].mxu0  ;;  %7262 = vtanh.f32 %v5881_v3  ;;  %4146 = vmatprep.subr.bf16.mxu0 %v7074_v0  ;;  %4852 = vmatprep.subr.bf16.mxu1 %v7077_v63 }
 0x25a   :  { %v7239_v7 = vpop.eup %7238  ;;  %v2372_v12 = vpop.f32.mrb[34].mxu1  ;;  %v9278_v13 = vpack.c.bf16 %v7237_v31, %v7229_v38  ;;  %v5755_v15 = vadd.f32 %v1666_v61, %v9008_v46  ;;  %7264 = vtanh.f32 %v5754_v8  ;;  %3844 = vmatmul.mubr.bf16.gmra.mrb[140].mxu0 %v9149_v52  ;;  %4550 = vmatmul.mubr.bf16.gmra.mrb[140].mxu1 %v9149_v52  ;;  %v7081_v52 = vld [vmem:[%s10296_s3 + $0x2e8] ss:$16 sps:$4 sm:$0xff]  }
 0x25b   :  { %v7241_v14 = vpop.eup %7240  ;;  %v1668_v17 = vpop.f32.mrb[35].mxu0  ;;  %v9287_v23 = vpack.c.bf16 %v7239_v7, %v7231_v53  ;;  %v5883_v25 = vadd.f32 %v2372_v12, %v9012_v47  ;;  %7266 = vtanh.f32 %v5882_v9  ;;  %3853 = vmatprep.mubr.bf16.mxu0 %v9202_v50  ;;  %4559 = vmatprep.mubr.bf16.mxu1 %v9202_v50  ;;  %v7086_v50 = vld [vmem:[%s10296_s3 + $0x304] ss:$16 sps:$4 sm:$0xff]  }
 0x25c   :  { %v2374_v42 = vpop.f32.mrb[35].mxu1  ;;  %v7243_v24 = vpop.eup %7242  ;;  %v9290_v26 = vpack.c.bf16 %v7241_v14, %v7233_v55  ;;  %v5756_v35 = vadd.f32 %v1668_v17, %v9016_v48  ;;  %7268 = vtanh.f32 %v5755_v15  ;;  %4147 = vmatpush1.bf16.msra.mxu0 %v7072_v18  ;;  %4853 = vmatpush1.bf16.msra.mxu1 %v7075_v21  ;;  %v7084_v15 = vld [vmem:[%s10296_s3 + $0x300] ss:$16 sps:$4 sm:$0xff]   ;;  %v7087_v17 = vld [vmem:[%s10296_s3 + $0x308] ss:$16 sps:$4 sm:$0xff]  }
 0x25d   :  { %v7245_v32 = vpop.eup %7244  ;;  %v9301_v36 = vpack.c.bf16 %v7243_v24, %v7235_v59  ;;  %v5884_v39 = vadd.f32 %v2374_v42, %v9020_v49  ;;  %7270 = vtanh.f32 %v5883_v25  ;;  %v1672_v56 = vpop.f32.mrb[36].mxu0  ;;  %4148 = vmatprep.subr.bf16.mxu0 %v7080_v27  ;;  %4854 = vmatprep.subr.bf16.mxu1 %v7083_v30  ;;  %v7089_v59 = vld [vmem:[%s10296_s3 + $0x30c] ss:$16 sps:$4 sm:$0xff]   ;;  %v7092_v25 = vld [vmem:[%s10296_s3 + $0x324] ss:$16 sps:$4 sm:$0xff]  }
 0x25e   :  { %v7247_v38 = vpop.eup %7246  ;;  %v2378_v11 = vpop.f32.mrb[36].mxu1  ;;  %7272 = vtanh.f32 %v5756_v35  ;;  %v5757_v62 = vadd.f32 %v1672_v56, %v9008_v46  ;;  %v7095_v27 = vld [vmem:[%s10296_s3 + $0x32c] ss:$16 sps:$4 sm:$0xff]  }
 0x25f   :  { %v7249_v53 = vpop.eup %7248  ;;  %v5885_v0 = vadd.f32 %v2378_v11, %v9012_v47  ;;  %v1674_v63 = vpop.f32.mrb[37].mxu0  ;;  %7274 = vtanh.f32 %v5884_v39 }
 0x260   :  { %v7251_v55 = vpop.eup %7250  ;;  %v2380_v31 = vpop.f32.mrb[37].mxu1  ;;  %v5758_v3 = vadd.f32 %v1674_v63, %v9016_v48  ;;  %7276 = vtanh.f32 %v5757_v62  ;;  %4149 = vmatpush1.bf16.msra.mxu0 %v7078_v54  ;;  %4855 = vmatpush1.bf16.msra.mxu1 %v7081_v52  ;;  %v7090_v54 = vld [vmem:[%s10296_s3 + $0x320] ss:$16 sps:$4 sm:$0xff]  }
 0x261   :  { %v7253_v60 = vpop.eup %7252  ;;  %v5886_v6 = vadd.f32 %v2380_v31, %v9020_v49  ;;  %v1676_v19 = vpop.f32.mrb[38].mxu0  ;;  %7278 = vtanh.f32 %v5885_v0  ;;  %4150 = vmatprep.subr.bf16.mxu0 %v7086_v50  ;;  %4856 = vmatprep.subr.bf16.mxu1 %v7089_v59 }
 0x262   :  { %v7255_v1 = vpop.eup %7254  ;;  %v2382_v7 = vpop.f32.mrb[38].mxu1  ;;  %v9322_v8 = vpack.c.bf16 %v7253_v60, %v7245_v32  ;;  %v5759_v61 = vadd.f32 %v1676_v19, %v9008_v46  ;;  %7280 = vtanh.f32 %v5758_v3  ;;  %3854 = vmatmul.mubr.bf16.gmra.mrb[144].mxu0 %v9190_v29  ;;  %4560 = vmatmul.mubr.bf16.gmra.mrb[144].mxu1 %v9190_v29  ;;  %v7093_v29 = vld [vmem:[%s10296_s3 + $0x328] ss:$16 sps:$4 sm:$0xff]  }
 0x263   :  { %v7257_v9 = vpop.eup %7256  ;;  %v1678_v12 = vpop.f32.mrb[39].mxu0  ;;  %v9331_v42 = vpack.c.bf16 %v7255_v1, %v7247_v38  ;;  %v5887_v21 = vadd.f32 %v2382_v7, %v9012_v47  ;;  %7282 = vtanh.f32 %v5886_v6  ;;  %3863 = vmatprep.mubr.bf16.mxu0 %v9246_v33  ;;  %4569 = vmatprep.mubr.bf16.mxu1 %v9246_v33  ;;  %v7098_v6 = vld [vmem:[%s10296_s3 + $0x344] ss:$16 sps:$4 sm:$0xff]  }
 0x264   :  { %v2384_v14 = vpop.f32.mrb[39].mxu1  ;;  %v7259_v18 = vpop.eup %7258  ;;  %v9334_v24 = vpack.c.bf16 %v7257_v9, %v7249_v53  ;;  %v5760_v32 = vadd.f32 %v1678_v12, %v9016_v48  ;;  %7284 = vtanh.f32 %v5759_v61  ;;  %4151 = vmatpush1.bf16.msra.mxu0 %v7084_v15  ;;  %4857 = vmatpush1.bf16.msra.mxu1 %v7087_v17  ;;  %v7096_v12 = vld [vmem:[%s10296_s3 + $0x340] ss:$16 sps:$4 sm:$0xff]  }
 0x265   :  { %v7261_v30 = vpop.eup %7260  ;;  %v9345_v35 = vpack.c.bf16 %v7259_v18, %v7251_v55  ;;  %v5888_v39 = vadd.f32 %v2384_v14, %v9020_v49  ;;  %7286 = vtanh.f32 %v5887_v21  ;;  %v1682_v55 = vpop.f32.mrb[40].mxu0  ;;  %4152 = vmatprep.subr.bf16.mxu0 %v7092_v25  ;;  %4858 = vmatprep.subr.bf16.mxu1 %v7095_v27  ;;  %v7101_v14 = vld [vmem:[%s10296_s3 + $0x34c] ss:$16 sps:$4 sm:$0xff]   ;;  %v7099_v25 = vld [vmem:[%s10296_s3 + $0x348] ss:$16 sps:$4 sm:$0xff]  }
 0x266   :  { %v7263_v38 = vpop.eup %7262  ;;  %v2388_v56 = vpop.f32.mrb[40].mxu1  ;;  %7288 = vtanh.f32 %v5760_v32  ;;  %v5761_v33 = vadd.f32 %v1682_v55, %v9008_v46 }
 0x267   :  { %v7265_v53 = vpop.eup %7264  ;;  %v5889_v50 = vadd.f32 %v2388_v56, %v9012_v47  ;;  %v1684_v59 = vpop.f32.mrb[41].mxu0  ;;  %7290 = vtanh.f32 %v5888_v39 }
 0x268   :  { %v7267_v52 = vpop.eup %7266  ;;  %v2390_v60 = vpop.f32.mrb[41].mxu1  ;;  %v5762_v0 = vadd.f32 %v1684_v59, %v9016_v48  ;;  %7292 = vtanh.f32 %v5761_v33  ;;  %4153 = vmatpush1.bf16.msra.mxu0 %v7090_v54  ;;  %4859 = vmatpush1.bf16.msra.mxu1 %v7093_v29 }
 0x269   :  { %v7269_v11 = vpop.eup %7268  ;;  %v5890_v63 = vadd.f32 %v2390_v60, %v9020_v49  ;;  %v1686_v31 = vpop.f32.mrb[42].mxu0  ;;  %7294 = vtanh.f32 %v5889_v50  ;;  %4154 = vmatprep.subr.bf16.mxu0 %v7098_v6  ;;  %4860 = vmatprep.subr.bf16.mxu1 %v7101_v14 }
 0x26a   :  { %v7271_v62 = vpop.eup %7270  ;;  %v2392_v1 = vpop.f32.mrb[42].mxu1  ;;  %v9360_v3 = vpack.c.bf16 %v7269_v11, %v7261_v30  ;;  %v5763_v7 = vadd.f32 %v1686_v31, %v9008_v46  ;;  %7296 = vtanh.f32 %v5762_v0  ;;  %3864 = vmatmul.mubr.bf16.gmra.mrb[148].mxu0 %v9234_v20  ;;  %4570 = vmatmul.mubr.bf16.gmra.mrb[148].mxu1 %v9234_v20 }
 0x26b   :  { %v7273_v19 = vpop.eup %7272  ;;  %v1688_v9 = vpop.f32.mrb[43].mxu0  ;;  %v9372_v15 = vpack.c.bf16 %v7271_v62, %v7263_v38  ;;  %v5891_v18 = vadd.f32 %v2392_v1, %v9012_v47  ;;  %7298 = vtanh.f32 %v5890_v63  ;;  %3873 = vmatprep.mubr.bf16.mxu0 %v9290_v26  ;;  %4579 = vmatprep.mubr.bf16.mxu1 %v9290_v26 }
 0x26c   :  { %v2394_v61 = vpop.f32.mrb[43].mxu1  ;;  %v7275_v17 = vpop.eup %7274  ;;  %v9375_v21 = vpack.c.bf16 %v7273_v19, %v7265_v53  ;;  %v5764_v30 = vadd.f32 %v1688_v9, %v9016_v48  ;;  %7300 = vtanh.f32 %v5763_v7  ;;  %4155 = vmatpush1.bf16.msra.mxu0 %v7096_v12  ;;  %4861 = vmatpush1.bf16.msra.mxu1 %v7099_v25 }
 0x26d   :  { %v7277_v27 = vpop.eup %7276  ;;  %v9383_v32 = vpack.c.bf16 %v7275_v17, %v7267_v52  ;;  %v5892_v39 = vadd.f32 %v2394_v61, %v9020_v49  ;;  %7302 = vtanh.f32 %v5891_v18  ;;  %v1692_v29 = vpop.f32.mrb[44].mxu0 }
 0x26e   :  { %v7279_v38 = vpop.eup %7278  ;;  %v2398_v55 = vpop.f32.mrb[44].mxu1  ;;  %7304 = vtanh.f32 %v5764_v30  ;;  %v5765_v52 = vadd.f32 %v1692_v29, %v9008_v46 }
 0x26f   :  { %v7281_v53 = vpop.eup %7280  ;;  %v5893_v56 = vadd.f32 %v2398_v55, %v9012_v47  ;;  %v1694_v11 = vpop.f32.mrb[45].mxu0  ;;  %7306 = vtanh.f32 %v5892_v39 }
 0x270   :  { %v7283_v54 = vpop.eup %7282  ;;  %v2400_v33 = vpop.f32.mrb[45].mxu1  ;;  %v5766_v26 = vadd.f32 %v1694_v11, %v9016_v48  ;;  %7308 = vtanh.f32 %v5765_v52 }
 0x271   :  { %v7285_v20 = vpop.eup %7284  ;;  %v5894_v59 = vadd.f32 %v2400_v33, %v9020_v49  ;;  %v1696_v60 = vpop.f32.mrb[46].mxu0  ;;  %7310 = vtanh.f32 %v5893_v56 }
 0x272   :  { %v7287_v50 = vpop.eup %7286  ;;  %v2402_v62 = vpop.f32.mrb[46].mxu1  ;;  %v9392_v0 = vpack.c.bf16 %v7285_v20, %v7277_v27  ;;  %v5767_v31 = vadd.f32 %v1696_v60, %v9008_v46  ;;  %7312 = vtanh.f32 %v5766_v26  ;;  %3874 = vmatmul.mubr.bf16.gmra.mrb[152].mxu0 %v9278_v13  ;;  %4580 = vmatmul.mubr.bf16.gmra.mrb[152].mxu1 %v9278_v13 }
 0x273   :  { %v7289_v63 = vpop.eup %7288  ;;  %v1698_v1 = vpop.f32.mrb[47].mxu0  ;;  %v9395_v19 = vpack.c.bf16 %v7287_v50, %v7279_v38  ;;  %v5895_v9 = vadd.f32 %v2402_v62, %v9012_v47  ;;  %7314 = vtanh.f32 %v5894_v59  ;;  %3883 = vmatprep.mubr.bf16.mxu0 %v9334_v24  ;;  %4589 = vmatprep.mubr.bf16.mxu1 %v9334_v24  ;;  %v7104_v50 = vld [vmem:[%s10296_s3 + $0x364] ss:$16 sps:$4 sm:$0xff]  }
 0x274   :  { %v2404_v6 = vpop.f32.mrb[47].mxu1  ;;  %v7291_v7 = vpop.eup %7290  ;;  %v9398_v61 = vpack.c.bf16 %v7289_v63, %v7281_v53  ;;  %v5768_v14 = vadd.f32 %v1698_v1, %v9016_v48  ;;  %7316 = vtanh.f32 %v5767_v31  ;;  %v7102_v63 = vld [vmem:[%s10296_s3 + $0x360] ss:$16 sps:$4 sm:$0xff]   ;;  %v7107_v31 = vld [vmem:[%s10296_s3 + $0x36c] ss:$16 sps:$4 sm:$0xff]   ;;  %4156 = vmatprep.subr.bf16.mxu0 %v7104_v50 }
 0x275   :  { %v7293_v12 = vpop.eup %7292  ;;  %v9403_v17 = vpack.c.bf16 %v7291_v7, %v7283_v54  ;;  %v5896_v25 = vadd.f32 %v2404_v6, %v9020_v49  ;;  %7318 = vtanh.f32 %v5895_v9  ;;  %v1702_v38 = vpop.f32.mrb[48].mxu0  ;;  %4862 = vmatprep.subr.bf16.mxu1 %v7107_v31  ;;  %4157 = vmatpush1.bf16.msra.mxu0 %v7102_v63 }
 0x276   :  { %v7295_v18 = vpop.eup %7294  ;;  %v2408_v39 = vpop.f32.mrb[48].mxu1  ;;  %7320 = vtanh.f32 %v5768_v14  ;;  %v5769_v13 = vadd.f32 %v1702_v38, %v9008_v46 }
 0x277   :  { %v7297_v27 = vpop.eup %7296  ;;  %v5897_v54 = vadd.f32 %v2408_v39, %v9012_v47  ;;  %v1704_v29 = vpop.f32.mrb[49].mxu0  ;;  %7322 = vtanh.f32 %v5896_v25 }
 0x278   :  { %v7299_v30 = vpop.eup %7298  ;;  %v2410_v55 = vpop.f32.mrb[49].mxu1  ;;  %v5770_v52 = vadd.f32 %v1704_v29, %v9016_v48  ;;  %7324 = vtanh.f32 %v5769_v13 }
 0x279   :  { %v7301_v53 = vpop.eup %7300  ;;  %v5898_v24 = vadd.f32 %v2410_v55, %v9020_v49  ;;  %v1706_v56 = vpop.f32.mrb[50].mxu0  ;;  %7326 = vtanh.f32 %v5897_v54 }
 0x27a   :  { %v7303_v20 = vpop.eup %7302  ;;  %v2412_v11 = vpop.f32.mrb[50].mxu1  ;;  %v9412_v33 = vpack.c.bf16 %v7301_v53, %v7293_v12  ;;  %v5771_v59 = vadd.f32 %v1706_v56, %v9008_v46  ;;  %v7105_v12 = vld [vmem:[%s10296_s3 + $0x368] ss:$16 sps:$4 sm:$0xff]   ;;  %7328 = vtanh.f32 %v5770_v52  ;;  %3884 = vmatmul.mubr.bf16.gmra.mrb[156].mxu0 %v9322_v8  ;;  %4590 = vmatmul.mubr.bf16.gmra.mrb[156].mxu1 %v9322_v8 }
 0x27b   :  { %v7305_v26 = vpop.eup %7304  ;;  %v1708_v60 = vpop.f32.mrb[51].mxu0  ;;  %v9424_v1 = vpack.c.bf16 %v7303_v20, %v7295_v18  ;;  %v5899_v7 = vadd.f32 %v2412_v11, %v9012_v47  ;;  %7330 = vtanh.f32 %v5898_v24  ;;  %3893 = vmatprep.mubr.bf16.mxu0 %v9375_v21  ;;  %4599 = vmatprep.mubr.bf16.mxu1 %v9375_v21 }
 0x27c   :  { %v2414_v62 = vpop.f32.mrb[51].mxu1  ;;  %v7307_v6 = vpop.eup %7306  ;;  %v9427_v9 = vpack.c.bf16 %v7305_v26, %v7297_v27  ;;  %v5772_v25 = vadd.f32 %v1708_v60, %v9016_v48  ;;  %7332 = vtanh.f32 %v5771_v59  ;;  %4863 = vmatpush1.bf16.msra.mxu1 %v7105_v12 }
 0x27d   :  { %v7309_v14 = vpop.eup %7308  ;;  %v9435_v18 = vpack.c.bf16 %v7307_v6, %v7299_v30  ;;  %v5900_v27 = vadd.f32 %v2414_v62, %v9020_v49  ;;  %7334 = vtanh.f32 %v5899_v7  ;;  %v1712_v13 = vpop.f32.mrb[52].mxu0 }
 0x27e   :  { %v7311_v38 = vpop.eup %7310  ;;  %v2418_v54 = vpop.f32.mrb[52].mxu1  ;;  %7336 = vtanh.f32 %v5772_v25  ;;  %v5773_v30 = vadd.f32 %v1712_v13, %v9008_v46 }
 0x27f   :  { %v7313_v39 = vpop.eup %7312  ;;  %v5901_v29 = vadd.f32 %v2418_v54, %v9012_v47  ;;  %v1714_v55 = vpop.f32.mrb[53].mxu0  ;;  %7338 = vtanh.f32 %v5900_v27 }
 0x280   :  { %v7315_v53 = vpop.eup %7314  ;;  %v2420_v20 = vpop.f32.mrb[53].mxu1  ;;  %v5774_v21 = vadd.f32 %v1714_v55, %v9016_v48  ;;  %7340 = vtanh.f32 %v5773_v30 }
 0x281   :  { %v7317_v8 = vpop.eup %7316  ;;  %v5902_v24 = vadd.f32 %v2420_v20, %v9020_v49  ;;  %v1716_v56 = vpop.f32.mrb[54].mxu0  ;;  %7342 = vtanh.f32 %v5901_v29 }
 0x282   :  { %v7319_v52 = vpop.eup %7318  ;;  %v2422_v11 = vpop.f32.mrb[54].mxu1  ;;  %v9444_v50 = vpack.c.bf16 %v7317_v8, %v7309_v14  ;;  %v5775_v59 = vadd.f32 %v1716_v56, %v9008_v46  ;;  %7344 = vtanh.f32 %v5774_v21  ;;  %3894 = vmatmul.mubr.bf16.gmra.mrb[160].mxu0 %v9360_v3  ;;  %4600 = vmatmul.mubr.bf16.gmra.mrb[160].mxu1 %v9360_v3 }
 0x283   :  { %v7321_v26 = vpop.eup %7320  ;;  %v1718_v60 = vpop.f32.mrb[55].mxu0  ;;  %v9447_v63 = vpack.c.bf16 %v7319_v52, %v7311_v38  ;;  %v5903_v6 = vadd.f32 %v2422_v11, %v9012_v47  ;;  %7346 = vtanh.f32 %v5902_v24  ;;  %3903 = vmatprep.mubr.bf16.mxu0 %v9398_v61  ;;  %4609 = vmatprep.mubr.bf16.mxu1 %v9398_v61  ;;  %v7110_v11 = vld [vmem:[%s10296_s3 + $0x384] ss:$16 sps:$4 sm:$0xff]  }
 0x284   :  { %v2424_v62 = vpop.f32.mrb[55].mxu1  ;;  %v7323_v31 = vpop.eup %7322  ;;  %v9450_v7 = vpack.c.bf16 %v7321_v26, %v7313_v39  ;;  %v5776_v25 = vadd.f32 %v1718_v60, %v9016_v48  ;;  %7348 = vtanh.f32 %v5775_v59  ;;  %4158 = vmatprep.subr.bf16.mxu0 %v7110_v11 }
 0x285   :  { %v7325_v12 = vpop.eup %7324  ;;  %v9455_v14 = vpack.c.bf16 %v7323_v31, %v7315_v53  ;;  %v5904_v38 = vadd.f32 %v2424_v62, %v9020_v49  ;;  %7350 = vtanh.f32 %v5903_v6  ;;  %v1722_v54 = vpop.f32.mrb[56].mxu0  ;;  %v7108_v31 = vld [vmem:[%s10296_s3 + $0x380] ss:$16 sps:$4 sm:$0xff]   ;;  %v7113_v6 = vld [vmem:[%s10296_s3 + $0x38c] ss:$16 sps:$4 sm:$0xff]  }
 0x286   :  { %v7327_v27 = vpop.eup %7326  ;;  %v2428_v8 = vpop.f32.mrb[56].mxu1  ;;  %7352 = vtanh.f32 %v5776_v25  ;;  %v5777_v3 = vadd.f32 %v1722_v54, %v9008_v46  ;;  %4864 = vmatprep.subr.bf16.mxu1 %v7113_v6  ;;  %4159 = vmatpush1.bf16.msra.mxu0 %v7108_v31 }
 0x287   :  { %v7329_v39 = vpop.eup %7328  ;;  %v5905_v53 = vadd.f32 %v2428_v8, %v9012_v47  ;;  %v1724_v29 = vpop.f32.mrb[57].mxu0  ;;  %7354 = vtanh.f32 %v5904_v38  ;;  %v7111_v8 = vld [vmem:[%s10296_s3 + $0x388] ss:$16 sps:$4 sm:$0xff]  }
 0x288   :  { %v7331_v13 = vpop.eup %7330  ;;  %v2430_v55 = vpop.f32.mrb[57].mxu1  ;;  %v5778_v52 = vadd.f32 %v1724_v29, %v9016_v48  ;;  %7356 = vtanh.f32 %v5777_v3  ;;  %4865 = vmatpush1.bf16.msra.mxu1 %v7111_v8 }
 0x289   :  { %v7333_v30 = vpop.eup %7332  ;;  %v5906_v61 = vadd.f32 %v2430_v55, %v9020_v49  ;;  %v1726_v21 = vpop.f32.mrb[58].mxu0  ;;  %7358 = vtanh.f32 %v5905_v53 }
 0x28a   :  { %v7335_v20 = vpop.eup %7334  ;;  %v2432_v24 = vpop.f32.mrb[58].mxu1  ;;  %v9464_v56 = vpack.c.bf16 %v7333_v30, %v7325_v12  ;;  %v5779_v59 = vadd.f32 %v1726_v21, %v9008_v46  ;;  %7360 = vtanh.f32 %v5778_v52  ;;  %3904 = vmatmul.mubr.bf16.gmra.mrb[164].mxu0 %v9392_v0  ;;  %4610 = vmatmul.mubr.bf16.gmra.mrb[164].mxu1 %v9392_v0 }
 0x28b   :  { %v7337_v26 = vpop.eup %7336  ;;  %v1728_v60 = vpop.f32.mrb[59].mxu0  ;;  %v9476_v12 = vpack.c.bf16 %v7335_v20, %v7327_v27  ;;  %v5907_v38 = vadd.f32 %v2432_v24, %v9012_v47  ;;  %7362 = vtanh.f32 %v5906_v61  ;;  %3913 = vmatprep.mubr.bf16.mxu0 %v9427_v9  ;;  %4619 = vmatprep.mubr.bf16.mxu1 %v9427_v9 }
 0x28c   :  { %v2434_v62 = vpop.f32.mrb[59].mxu1  ;;  %v7339_v25 = vpop.eup %7338  ;;  %v9479_v54 = vpack.c.bf16 %v7337_v26, %v7329_v39  ;;  %v5780_v3 = vadd.f32 %v1728_v60, %v9016_v48  ;;  %7364 = vtanh.f32 %v5779_v59 }
 0x28d   :  { %v7341_v30 = vpop.eup %7340  ;;  %v9487_v27 = vpack.c.bf16 %v7339_v25, %v7331_v13  ;;  %v5908_v39 = vadd.f32 %v2434_v62, %v9020_v49  ;;  %7366 = vtanh.f32 %v5907_v38  ;;  %v1732_v20 = vpop.f32.mrb[60].mxu0 }
 0x28e   :  { %v7343_v53 = vpop.eup %7342  ;;  %v2438_v52 = vpop.f32.mrb[60].mxu1  ;;  %7368 = vtanh.f32 %v5780_v3  ;;  %v5781_v13 = vadd.f32 %v1732_v20, %v9008_v46 }
 0x28f   :  { %v7345_v29 = vpop.eup %7344  ;;  %v5909_v61 = vadd.f32 %v2438_v52, %v9012_v47  ;;  %v1734_v21 = vpop.f32.mrb[61].mxu0  ;;  %7370 = vtanh.f32 %v5908_v39 }
 0x290   :  { %v7347_v55 = vpop.eup %7346  ;;  %v2440_v24 = vpop.f32.mrb[61].mxu1  ;;  %v5782_v9 = vadd.f32 %v1734_v21, %v9016_v48  ;;  %7372 = vtanh.f32 %v5781_v13 }
 0x291   :  { %v7349_v0 = vpop.eup %7348  ;;  %v5910_v26 = vadd.f32 %v2440_v24, %v9020_v49  ;;  %v1736_v59 = vpop.f32.mrb[62].mxu0  ;;  %7374 = vtanh.f32 %v5909_v61 }
 0x292   :  { %v7351_v11 = vpop.eup %7350  ;;  %v2442_v60 = vpop.f32.mrb[62].mxu1  ;;  %v9496_v62 = vpack.c.bf16 %v7349_v0, %v7341_v30  ;;  %v5783_v6 = vadd.f32 %v1736_v59, %v9008_v46  ;;  %7376 = vtanh.f32 %v5782_v9  ;;  %3914 = vmatmul.mubr.bf16.gmra.mrb[168].mxu0 %v9412_v33  ;;  %4620 = vmatmul.mubr.bf16.gmra.mrb[168].mxu1 %v9412_v33 }
 0x293   :  { %v7353_v31 = vpop.eup %7352  ;;  %v1738_v25 = vpop.f32.mrb[63].mxu0  ;;  %v9499_v8 = vpack.c.bf16 %v7351_v11, %v7343_v53  ;;  %v5911_v39 = vadd.f32 %v2442_v60, %v9012_v47  ;;  %7378 = vtanh.f32 %v5910_v26  ;;  %3923 = vmatprep.mubr.bf16.mxu0 %v9450_v7  ;;  %4629 = vmatprep.mubr.bf16.mxu1 %v9450_v7 }
 0x294   :  { %v2444_v38 = vpop.f32.mrb[63].mxu1  ;;  %v7355_v3 = vpop.eup %7354  ;;  %v9502_v20 = vpack.c.bf16 %v7353_v31, %v7345_v29  ;;  %v5784_v21 = vadd.f32 %v1738_v25, %v9016_v48  ;;  %7380 = vtanh.f32 %v5783_v6 }
 0x295   :  { %v7357_v52 = vpop.eup %7356  ;;  %v9507_v30 = vpack.c.bf16 %v7355_v3, %v7347_v55  ;;  %v5912_v53 = vadd.f32 %v2444_v38, %v9020_v49  ;;  %7382 = vtanh.f32 %v5911_v39  ;;  %v1742_v61 = vpop.f32.mrb[64].mxu0  ;;  %v7116_v38 = vld [vmem:[%s10296_s3 + $0x3a4] ss:$16 sps:$4 sm:$0xff]  }
 0x296   :  { %v7359_v0 = vpop.eup %7358  ;;  %v2448_v24 = vpop.f32.mrb[64].mxu1  ;;  %7384 = vtanh.f32 %v5784_v21  ;;  %v5785_v33 = vadd.f32 %v1742_v61, %v9008_v46  ;;  %4160 = vmatprep.subr.bf16.mxu0 %v7116_v38 }
 0x297   :  { %v7361_v29 = vpop.eup %7360  ;;  %v5913_v55 = vadd.f32 %v2448_v24, %v9012_v47  ;;  %v1744_v9 = vpop.f32.mrb[65].mxu0  ;;  %7386 = vtanh.f32 %v5912_v53  ;;  %v7114_v53 = vld [vmem:[%s10296_s3 + $0x3a0] ss:$16 sps:$4 sm:$0xff]   ;;  %v7119_v24 = vld [vmem:[%s10296_s3 + $0x3ac] ss:$16 sps:$4 sm:$0xff]  }
 0x298   :  { %v7363_v13 = vpop.eup %7362  ;;  %v2450_v26 = vpop.f32.mrb[65].mxu1  ;;  %v5786_v60 = vadd.f32 %v1744_v9, %v9016_v48  ;;  %7388 = vtanh.f32 %v5785_v33  ;;  %v7117_v33 = vld [vmem:[%s10296_s3 + $0x3a8] ss:$16 sps:$4 sm:$0xff]   ;;  %4866 = vmatprep.subr.bf16.mxu1 %v7119_v24  ;;  %4161 = vmatpush1.bf16.msra.mxu0 %v7114_v53 }
 0x299   :  { %v7365_v11 = vpop.eup %7364  ;;  %v5914_v7 = vadd.f32 %v2450_v26, %v9020_v49  ;;  %v1746_v31 = vpop.f32.mrb[66].mxu0  ;;  %7390 = vtanh.f32 %v5913_v55  ;;  %4867 = vmatpush1.bf16.msra.mxu1 %v7117_v33 }
 0x29a   :  { %v7367_v59 = vpop.eup %7366  ;;  %v2452_v6 = vpop.f32.mrb[66].mxu1  ;;  %v9516_v25 = vpack.c.bf16 %v7365_v11, %v7357_v52  ;;  %v5787_v39 = vadd.f32 %v1746_v31, %v9008_v46  ;;  %7392 = vtanh.f32 %v5786_v60  ;;  %3924 = vmatmul.mubr.bf16.gmra.mrb[172].mxu0 %v9444_v50  ;;  %4630 = vmatmul.mubr.bf16.gmra.mrb[172].mxu1 %v9444_v50 }
 0x29b   :  { %v7369_v3 = vpop.eup %7368  ;;  %v1748_v21 = vpop.f32.mrb[67].mxu0  ;;  %v9528_v52 = vpack.c.bf16 %v7367_v59, %v7359_v0  ;;  %v5915_v9 = vadd.f32 %v2452_v6, %v9012_v47  ;;  %7394 = vtanh.f32 %v5914_v7  ;;  %3933 = vmatprep.mubr.bf16.mxu0 %v9479_v54  ;;  %4639 = vmatprep.mubr.bf16.mxu1 %v9479_v54 }
 0x29c   :  { %v2454_v61 = vpop.f32.mrb[67].mxu1  ;;  %v7371_v11 = vpop.eup %7370  ;;  %v9531_v26 = vpack.c.bf16 %v7369_v3, %v7361_v29  ;;  %v5788_v44 = vadd.f32 %v1748_v21, %v9016_v48  ;;  %7396 = vtanh.f32 %v5787_v39 }
 0x29d   :  { %v7373_v31 = vpop.eup %7372  ;;  %v9539_v0 = vpack.c.bf16 %v7371_v11, %v7363_v13  ;;  %v5916_v29 = vadd.f32 %v2454_v61, %v9020_v49  ;;  %7398 = vtanh.f32 %v5915_v9  ;;  %v1752_v6 = vpop.f32.mrb[68].mxu0 }
 0x29e   :  { %v7375_v55 = vpop.eup %7374  ;;  %v2458_v38 = vpop.f32.mrb[68].mxu1  ;;  %7400 = vtanh.f32 %v5788_v44  ;;  %v5789_v13 = vadd.f32 %v1752_v6, %v9008_v46 }
 0x29f   :  { %v7377_v59 = vpop.eup %7376  ;;  %v5917_v7 = vadd.f32 %v2458_v38, %v9012_v47  ;;  %v1754_v3 = vpop.f32.mrb[69].mxu0  ;;  %7402 = vtanh.f32 %v5916_v29 }
 0x2a0   :  { %v7379_v60 = vpop.eup %7378  ;;  %v2460_v21 = vpop.f32.mrb[69].mxu1  ;;  %v5790_v54 = vadd.f32 %v1754_v3, %v9016_v48  ;;  %7404 = vtanh.f32 %v5789_v13 }
 0x2a1   :  { %v7381_v50 = vpop.eup %7380  ;;  %v5918_v39 = vadd.f32 %v2460_v21, %v9020_v49  ;;  %v1756_v53 = vpop.f32.mrb[70].mxu0  ;;  %7406 = vtanh.f32 %v5917_v7 }
 0x2a2   :  { %v7383_v61 = vpop.eup %7382  ;;  %v2462_v24 = vpop.f32.mrb[70].mxu1  ;;  %v9548_v11 = vpack.c.bf16 %v7381_v50, %v7373_v31  ;;  %v5791_v44 = vadd.f32 %v1756_v53, %v9008_v46  ;;  %7408 = vtanh.f32 %v5790_v54  ;;  %3934 = vmatmul.mubr.bf16.gmra.mrb[176].mxu0 %v9464_v56  ;;  %4640 = vmatmul.mubr.bf16.gmra.mrb[176].mxu1 %v9464_v56  ;;  %v7120_v31 = vld [vmem:[%s10296_s3 + $0x3c0] ss:$16 sps:$4 sm:$0xff]   ;;  %v7125_v56 = vld [vmem:[%s10296_s3 + $0x3cc] ss:$16 sps:$4 sm:$0xff]  }
 0x2a3   :  { %v7385_v9 = vpop.eup %7384  ;;  %v1758_v33 = vpop.f32.mrb[71].mxu0  ;;  %v9551_v43 = vpack.c.bf16 %v7383_v61, %v7375_v55  ;;  %v5919_v29 = vadd.f32 %v2462_v24, %v9012_v47  ;;  %v7122_v55 = vld [vmem:[%s10296_s3 + $0x3c4] ss:$16 sps:$4 sm:$0xff]   ;;  %7410 = vtanh.f32 %v5918_v39  ;;  %3943 = vmatprep.mubr.bf16.mxu0 %v9502_v20  ;;  %4649 = vmatprep.mubr.bf16.mxu1 %v9502_v20 }
 0x2a4   :  { %v2464_v6 = vpop.f32.mrb[71].mxu1  ;;  %v7387_v38 = vpop.eup %7386  ;;  %v9554_v41 = vpack.c.bf16 %v7385_v9, %v7377_v59  ;;  %v5792_v21 = vadd.f32 %v1758_v33, %v9016_v48  ;;  %v7123_v59 = vld [vmem:[%s10296_s3 + $0x3c8] ss:$16 sps:$4 sm:$0xff]   ;;  %7412 = vtanh.f32 %v5791_v44  ;;  %4162 = vmatprep.subr.bf16.mxu0 %v7122_v55  ;;  %4868 = vmatprep.subr.bf16.mxu1 %v7125_v56 }
 0x2a5   :  { %10333 = vst [vmem:[#allocation6_spill] sm:$0xff] %v9551_v43  ;;  %v7389_v3 = vpop.eup %7388  ;;  %v9568_v50 = vpack.c.bf16 %v7387_v38, %v7379_v60  ;;  %v5920_v7 = vadd.f32 %v2464_v6, %v9020_v49  ;;  %7414 = vtanh.f32 %v5919_v29  ;;  %v1762_v53 = vpop.f32.mrb[72].mxu0  ;;  %4163 = vmatpush1.bf16.msra.mxu0 %v7120_v31  ;;  %4869 = vmatpush1.bf16.msra.mxu1 %v7123_v59 }
 0x2a6   :  { %v7391_v13 = vpop.eup %7390  ;;  %v2468_v60 = vpop.f32.mrb[72].mxu1  ;;  %7416 = vtanh.f32 %v5792_v21  ;;  %v5793_v24 = vadd.f32 %v1762_v53, %v9008_v46 }
 0x2a7   :  { %v7393_v61 = vpop.eup %7392  ;;  %v5921_v9 = vadd.f32 %v2468_v60, %v9012_v47  ;;  %v1764_v20 = vpop.f32.mrb[73].mxu0  ;;  %7418 = vtanh.f32 %v5920_v7 }
 0x2a8   :  { %v7395_v54 = vpop.eup %7394  ;;  %v2470_v33 = vpop.f32.mrb[73].mxu1  ;;  %v5794_v44 = vadd.f32 %v1764_v20, %v9016_v48  ;;  %7420 = vtanh.f32 %v5793_v24 }
 0x2a9   :  { %v7397_v39 = vpop.eup %7396  ;;  %v5922_v38 = vadd.f32 %v2470_v33, %v9020_v49  ;;  %v1766_v29 = vpop.f32.mrb[74].mxu0  ;;  %7422 = vtanh.f32 %v5921_v9 }
 0x2aa   :  { %v7399_v6 = vpop.eup %7398  ;;  %v2472_v55 = vpop.f32.mrb[74].mxu1  ;;  %v9580_v40 = vpack.c.bf16 %v7397_v39, %v7389_v3  ;;  %v5795_v21 = vadd.f32 %v1766_v29, %v9008_v46  ;;  %7424 = vtanh.f32 %v5794_v44  ;;  %3944 = vmatmul.mubr.bf16.gmra.mrb[180].mxu0 %v9496_v62  ;;  %4650 = vmatmul.mubr.bf16.gmra.mrb[180].mxu1 %v9496_v62 }
 0x2ab   :  { %v7401_v31 = vpop.eup %7400  ;;  %v1768_v56 = vpop.f32.mrb[75].mxu0  ;;  %v9583_v60 = vpack.c.bf16 %v7399_v6, %v7391_v13  ;;  %v5923_v59 = vadd.f32 %v2472_v55, %v9012_v47  ;;  %7426 = vtanh.f32 %v5922_v38  ;;  %3953 = vmatprep.mubr.bf16.mxu0 %v9531_v26  ;;  %4659 = vmatprep.mubr.bf16.mxu1 %v9531_v26 }
 0x2ac   :  { %v2474_v53 = vpop.f32.mrb[75].mxu1  ;;  %v7403_v34 = vpop.eup %7402  ;;  %v9586_v7 = vpack.c.bf16 %v7401_v31, %v7393_v61  ;;  %v5796_v33 = vadd.f32 %v1768_v56, %v9016_v48  ;;  %7428 = vtanh.f32 %v5795_v21 }
 0x2ad   :  { %10334 = vst [vmem:[#allocation7_spill] sm:$0xff] %v9583_v60  ;;  %v7405_v20 = vpop.eup %7404  ;;  %v9591_v3 = vpack.c.bf16 %v7403_v34, %v7395_v54  ;;  %v5924_v13 = vadd.f32 %v2474_v53, %v9020_v49  ;;  %7430 = vtanh.f32 %v5923_v59  ;;  %v1772_v9 = vpop.f32.mrb[76].mxu0 }
 0x2ae   :  { %v7407_v39 = vpop.eup %7406  ;;  %v2478_v6 = vpop.f32.mrb[76].mxu1  ;;  %7432 = vtanh.f32 %v5796_v33  ;;  %v5797_v62 = vadd.f32 %v1772_v9, %v9008_v46 }
 0x2af   :  { %10335 = vst [vmem:[#allocation8_spill] sm:$0xff] %v9591_v3  ;;  %v7409_v61 = vpop.eup %7408  ;;  %v5925_v34 = vadd.f32 %v2478_v6, %v9012_v47  ;;  %v1774_v54 = vpop.f32.mrb[77].mxu0  ;;  %7434 = vtanh.f32 %v5924_v13 }
 0x2b0   :  { %v7411_v24 = vpop.eup %7410  ;;  %v2480_v38 = vpop.f32.mrb[77].mxu1  ;;  %v5798_v55 = vadd.f32 %v1774_v54, %v9016_v48  ;;  %7436 = vtanh.f32 %v5797_v62 }
 0x2b1   :  { %v7413_v44 = vpop.eup %7412  ;;  %v5926_v26 = vadd.f32 %v2480_v38, %v9020_v49  ;;  %v1776_v31 = vpop.f32.mrb[78].mxu0  ;;  %7438 = vtanh.f32 %v5925_v34 }
 0x2b2   :  { %v7415_v29 = vpop.eup %7414  ;;  %v2482_v21 = vpop.f32.mrb[78].mxu1  ;;  %v9600_v56 = vpack.c.bf16 %v7413_v44, %v7405_v20  ;;  %v5799_v59 = vadd.f32 %v1776_v31, %v9008_v46  ;;  %7440 = vtanh.f32 %v5798_v55  ;;  %3954 = vmatmul.mubr.bf16.gmra.mrb[184].mxu0 %v9516_v25  ;;  %4660 = vmatmul.mubr.bf16.gmra.mrb[184].mxu1 %v9516_v25  ;;  %v7126_v20 = vld [vmem:[%s10296_s3 + $0x3e0] ss:$16 sps:$4 sm:$0xff]   ;;  %v7131_v25 = vld [vmem:[%s10296_s3 + $0x3ec] ss:$16 sps:$4 sm:$0xff]  }
 0x2b3   :  { %v7417_v53 = vpop.eup %7416  ;;  %v1778_v33 = vpop.f32.mrb[79].mxu0  ;;  %v9603_v60 = vpack.c.bf16 %v7415_v29, %v7407_v39  ;;  %v5927_v13 = vadd.f32 %v2482_v21, %v9012_v47  ;;  %v7128_v39 = vld [vmem:[%s10296_s3 + $0x3e4] ss:$16 sps:$4 sm:$0xff]   ;;  %7442 = vtanh.f32 %v5926_v26  ;;  %3963 = vmatprep.mubr.bf16.mxu0 %v9554_v41  ;;  %4669 = vmatprep.mubr.bf16.mxu1 %v9554_v41 }
 0x2b4   :  { %v2484_v9 = vpop.f32.mrb[79].mxu1  ;;  %v7419_v6 = vpop.eup %7418  ;;  %v9606_v3 = vpack.c.bf16 %v7417_v53, %v7409_v61  ;;  %v5800_v38 = vadd.f32 %v1778_v33, %v9016_v48  ;;  %v7129_v61 = vld [vmem:[%s10296_s3 + $0x3e8] ss:$16 sps:$4 sm:$0xff]   ;;  %7444 = vtanh.f32 %v5799_v59  ;;  %4164 = vmatprep.subr.bf16.mxu0 %v7128_v39  ;;  %4870 = vmatprep.subr.bf16.mxu1 %v7131_v25 }
 0x2b5   :  { %10336 = vst [vmem:[#allocation9_spill] sm:$0xff] %v9603_v60  ;;  %v7421_v54 = vpop.eup %7420  ;;  %v9620_v44 = vpack.c.bf16 %v7419_v6, %v7411_v24  ;;  %v5928_v34 = vadd.f32 %v2484_v9, %v9020_v49  ;;  %7446 = vtanh.f32 %v5927_v13  ;;  %v1782_v31 = vpop.f32.mrb[80].mxu0  ;;  %4165 = vmatpush1.bf16.msra.mxu0 %v7126_v20  ;;  %4871 = vmatpush1.bf16.msra.mxu1 %v7129_v61 }
 0x2b6   :  { %v7423_v62 = vpop.eup %7422  ;;  %v2488_v24 = vpop.f32.mrb[80].mxu1  ;;  %7448 = vtanh.f32 %v5800_v38  ;;  %v5801_v21 = vadd.f32 %v1782_v31, %v9008_v46 }
 0x2b7   :  { %10337 = vst [vmem:[#allocation10_spill] sm:$0xff] %v9620_v44  ;;  %v7425_v29 = vpop.eup %7424  ;;  %v5929_v53 = vadd.f32 %v2488_v24, %v9012_v47  ;;  %v1784_v41 = vpop.f32.mrb[81].mxu0  ;;  %7450 = vtanh.f32 %v5928_v34 }
 0x2b8   :  { %v7427_v55 = vpop.eup %7426  ;;  %v2490_v33 = vpop.f32.mrb[81].mxu1  ;;  %v5802_v59 = vadd.f32 %v1784_v41, %v9016_v48  ;;  %7452 = vtanh.f32 %v5801_v21 }
 0x2b9   :  { %v7429_v26 = vpop.eup %7428  ;;  %v5930_v6 = vadd.f32 %v2490_v33, %v9020_v49  ;;  %v1786_v13 = vpop.f32.mrb[82].mxu0  ;;  %7454 = vtanh.f32 %v5929_v53 }
 0x2ba   :  { %v7431_v9 = vpop.eup %7430  ;;  %v2492_v39 = vpop.f32.mrb[82].mxu1  ;;  %v9632_v60 = vpack.c.bf16 %v7429_v26, %v7421_v54  ;;  %v5803_v38 = vadd.f32 %v1786_v13, %v9008_v46  ;;  %7456 = vtanh.f32 %v5802_v59  ;;  %3964 = vmatmul.mubr.bf16.gmra.mrb[188].mxu0 %v9548_v11  ;;  %4670 = vmatmul.mubr.bf16.gmra.mrb[188].mxu1 %v9548_v11 }
 0x2bb   :  { %v7433_v20 = vpop.eup %7432  ;;  %v1788_v25 = vpop.f32.mrb[83].mxu0  ;;  %v9635_v24 = vpack.c.bf16 %v7431_v9, %v7423_v62  ;;  %v5931_v61 = vadd.f32 %v2492_v39, %v9012_v47  ;;  %7458 = vtanh.f32 %v5930_v6  ;;  %3973 = vmatprep.mubr.bf16.mxu0 %v9586_v7  ;;  %4679 = vmatprep.mubr.bf16.mxu1 %v9586_v7 }
 0x2bc   :  { %v2494_v31 = vpop.f32.mrb[83].mxu1  ;;  %v7435_v44 = vpop.eup %7434  ;;  %v9638_v34 = vpack.c.bf16 %v7433_v20, %v7425_v29  ;;  %v5804_v33 = vadd.f32 %v1788_v25, %v9016_v48  ;;  %7460 = vtanh.f32 %v5803_v38 }
 0x2bd   :  { %10338 = vst [vmem:[#allocation11_spill] sm:$0xff] %v9635_v24  ;;  %v7437_v41 = vpop.eup %7436  ;;  %v9643_v54 = vpack.c.bf16 %v7435_v44, %v7427_v55  ;;  %v5932_v62 = vadd.f32 %v2494_v31, %v9020_v49  ;;  %7462 = vtanh.f32 %v5931_v61  ;;  %v1792_v53 = vpop.f32.mrb[84].mxu0 }
 0x2be   :  { %v7439_v26 = vpop.eup %7438  ;;  %v2498_v9 = vpop.f32.mrb[84].mxu1  ;;  %7464 = vtanh.f32 %v5804_v33  ;;  %v5805_v11 = vadd.f32 %v1792_v53, %v9008_v46 }
 0x2bf   :  { %10339 = vst [vmem:[#allocation12_spill] sm:$0xff] %v9643_v54  ;;  %v7441_v29 = vpop.eup %7440  ;;  %v5933_v44 = vadd.f32 %v2498_v9, %v9012_v47  ;;  %v1794_v55 = vpop.f32.mrb[85].mxu0  ;;  %7466 = vtanh.f32 %v5932_v62 }
 0x2c0   :  { %v7443_v21 = vpop.eup %7442  ;;  %v2500_v6 = vpop.f32.mrb[85].mxu1  ;;  %v5806_v39 = vadd.f32 %v1794_v55, %v9016_v48  ;;  %7468 = vtanh.f32 %v5805_v11 }
 0x2c1   :  { %v7445_v59 = vpop.eup %7444  ;;  %v5934_v7 = vadd.f32 %v2500_v6, %v9020_v49  ;;  %v1796_v20 = vpop.f32.mrb[86].mxu0  ;;  %7470 = vtanh.f32 %v5933_v44 }
 0x2c2   :  { %v7447_v13 = vpop.eup %7446  ;;  %v2502_v38 = vpop.f32.mrb[86].mxu1  ;;  %v9652_v25 = vpack.c.bf16 %v7445_v59, %v7437_v41  ;;  %v5807_v61 = vadd.f32 %v1796_v20, %v9008_v46  ;;  %7472 = vtanh.f32 %v5806_v39  ;;  %3974 = vmatmul.mubr.bf16.gmra.mrb[192].mxu0 %v9580_v40  ;;  %4680 = vmatmul.mubr.bf16.gmra.mrb[192].mxu1 %v9580_v40 }
 0x2c3   :  { %v7449_v31 = vpop.eup %7448  ;;  %v1798_v33 = vpop.f32.mrb[87].mxu0  ;;  %v9655_v24 = vpack.c.bf16 %v7447_v13, %v7439_v26  ;;  %v5935_v62 = vadd.f32 %v2502_v38, %v9012_v47  ;;  %7474 = vtanh.f32 %v5934_v7  ;;  %3983 = vmatprep.mubr.bf16.mxu0 %v9606_v3  ;;  %4689 = vmatprep.mubr.bf16.mxu1 %v9606_v3 }
 0x2c4   :  { %v2504_v53 = vpop.f32.mrb[87].mxu1  ;;  %v7451_v9 = vpop.eup %7450  ;;  %v9658_v54 = vpack.c.bf16 %v7449_v31, %v7441_v29  ;;  %v5808_v6 = vadd.f32 %v1798_v33, %v9016_v48  ;;  %7476 = vtanh.f32 %v5807_v61 }
 0x2c5   :  { %10340 = vst [vmem:[#allocation13_spill] sm:$0xff] %v9655_v24  ;;  %v7453_v55 = vpop.eup %7452  ;;  %v9663_v41 = vpack.c.bf16 %v7451_v9, %v7443_v21  ;;  %v5936_v26 = vadd.f32 %v2504_v53, %v9020_v49  ;;  %7478 = vtanh.f32 %v5935_v62  ;;  %v1802_v44 = vpop.f32.mrb[88].mxu0 }
 0x2c6   :  { %v7455_v59 = vpop.eup %7454  ;;  %v2508_v13 = vpop.f32.mrb[88].mxu1  ;;  %7480 = vtanh.f32 %v5808_v6  ;;  %v5809_v40 = vadd.f32 %v1802_v44, %v9008_v46 }
 0x2c7   :  { %10341 = vst [vmem:[#allocation14_spill] sm:$0xff] %v9663_v41  ;;  %v7457_v29 = vpop.eup %7456  ;;  %v5937_v21 = vadd.f32 %v2508_v13, %v9012_v47  ;;  %v1804_v20 = vpop.f32.mrb[89].mxu0  ;;  %7482 = vtanh.f32 %v5936_v26 }
 0x2c8   :  { %v7459_v11 = vpop.eup %7458  ;;  %v2510_v7 = vpop.f32.mrb[89].mxu1  ;;  %v5810_v31 = vadd.f32 %v1804_v20, %v9016_v48  ;;  %7484 = vtanh.f32 %v5809_v40 }
 0x2c9   :  { %v7461_v39 = vpop.eup %7460  ;;  %v5938_v3 = vadd.f32 %v2510_v7, %v9020_v49  ;;  %v1806_v33 = vpop.f32.mrb[90].mxu0  ;;  %7486 = vtanh.f32 %v5937_v21 }
 0x2ca   :  { %v7463_v38 = vpop.eup %7462  ;;  %v2512_v61 = vpop.f32.mrb[90].mxu1  ;;  %v9672_v53 = vpack.c.bf16 %v7461_v39, %v7453_v55  ;;  %v5811_v62 = vadd.f32 %v1806_v33, %v9008_v46  ;;  %7488 = vtanh.f32 %v5810_v31  ;;  %3984 = vmatmul.mubr.bf16.gmra.mrb[196].mxu0 %v9600_v56  ;;  %4690 = vmatmul.mubr.bf16.gmra.mrb[196].mxu1 %v9600_v56 }
 0x2cb   :  { %v7465_v9 = vpop.eup %7464  ;;  %v1808_v6 = vpop.f32.mrb[91].mxu0  ;;  %v9675_v24 = vpack.c.bf16 %v7463_v38, %v7455_v59  ;;  %v5939_v26 = vadd.f32 %v2512_v61, %v9012_v47  ;;  %7490 = vtanh.f32 %v5938_v3  ;;  %3993 = vmatprep.mubr.bf16.mxu0 %v9638_v34  ;;  %4699 = vmatprep.mubr.bf16.mxu1 %v9638_v34 }
 0x2cc   :  { %v2514_v44 = vpop.f32.mrb[91].mxu1  ;;  %v7467_v13 = vpop.eup %7466  ;;  %v9678_v41 = vpack.c.bf16 %v7465_v9, %v7457_v29  ;;  %v5812_v7 = vadd.f32 %v1808_v6, %v9016_v48  ;;  %7492 = vtanh.f32 %v5811_v62 }
 0x2cd   :  { %10342 = vst [vmem:[#allocation15_spill] sm:$0xff] %v9675_v24  ;;  %v7469_v20 = vpop.eup %7468  ;;  %v9683_v55 = vpack.c.bf16 %v7467_v13, %v7459_v11  ;;  %v5940_v59 = vadd.f32 %v2514_v44, %v9020_v49  ;;  %7494 = vtanh.f32 %v5939_v26  ;;  %v1812_v21 = vpop.f32.mrb[92].mxu0 }
 0x2ce   :  { %v7471_v39 = vpop.eup %7470  ;;  %v2518_v38 = vpop.f32.mrb[92].mxu1  ;;  %7496 = vtanh.f32 %v5812_v7  ;;  %v5813_v56 = vadd.f32 %v1812_v21, %v9008_v46 }
 0x2cf   :  { %10343 = vst [vmem:[#allocation16_spill] sm:$0xff] %v9683_v55  ;;  %v7473_v29 = vpop.eup %7472  ;;  %v5941_v11 = vadd.f32 %v2518_v38, %v9012_v47  ;;  %v1814_v33 = vpop.f32.mrb[93].mxu0  ;;  %7498 = vtanh.f32 %v5940_v59 }
 0x2d0   :  { %v7475_v40 = vpop.eup %7474  ;;  %v2520_v3 = vpop.f32.mrb[93].mxu1  ;;  %v5814_v9 = vadd.f32 %v1814_v33, %v9016_v48  ;;  %7500 = vtanh.f32 %v5813_v56 }
 0x2d1   :  { %v7477_v31 = vpop.eup %7476  ;;  %v5942_v34 = vadd.f32 %v2520_v3, %v9020_v49  ;;  %v1816_v6 = vpop.f32.mrb[94].mxu0  ;;  %7502 = vtanh.f32 %v5941_v11 }
 0x2d2   :  { %v7479_v61 = vpop.eup %7478  ;;  %v2522_v62 = vpop.f32.mrb[94].mxu1  ;;  %v9692_v44 = vpack.c.bf16 %v7477_v31, %v7469_v20  ;;  %v5815_v26 = vadd.f32 %v1816_v6, %v9008_v46  ;;  %7504 = vtanh.f32 %v5814_v9  ;;  %3994 = vmatmul.mubr.bf16.gmra.mrb[200].mxu0 %v9632_v60  ;;  %4700 = vmatmul.mubr.bf16.gmra.mrb[200].mxu1 %v9632_v60 }
 0x2d3   :  { %v7481_v13 = vpop.eup %7480  ;;  %v1818_v7 = vpop.f32.mrb[95].mxu0  ;;  %v9695_v24 = vpack.c.bf16 %v7479_v61, %v7471_v39  ;;  %v5943_v59 = vadd.f32 %v2522_v62, %v9012_v47  ;;  %7506 = vtanh.f32 %v5942_v34  ;;  %4003 = vmatprep.mubr.bf16.mxu0 %v9658_v54  ;;  %4709 = vmatprep.mubr.bf16.mxu1 %v9658_v54 }
 0x2d4   :  { %v2524_v21 = vpop.f32.mrb[95].mxu1  ;;  %v7483_v38 = vpop.eup %7482  ;;  %v9698_v55 = vpack.c.bf16 %v7481_v13, %v7473_v29  ;;  %v5816_v3 = vadd.f32 %v1818_v7, %v9016_v48  ;;  %7508 = vtanh.f32 %v5815_v26 }
 0x2d5   :  { %10344 = vst [vmem:[#allocation17_spill] sm:$0xff] %v9695_v24  ;;  %v7485_v33 = vpop.eup %7484  ;;  %v9703_v20 = vpack.c.bf16 %v7483_v38, %v7475_v40  ;;  %v5944_v39 = vadd.f32 %v2524_v21, %v9020_v49  ;;  %7510 = vtanh.f32 %v5943_v59  ;;  %v1822_v11 = vpop.f32.mrb[96].mxu0 }
 0x2d6   :  { %v7487_v31 = vpop.eup %7486  ;;  %v2528_v61 = vpop.f32.mrb[96].mxu1  ;;  %7512 = vtanh.f32 %v5816_v3  ;;  %v5817_v60 = vadd.f32 %v1822_v11, %v9008_v46 }
 0x2d7   :  { %10345 = vst [vmem:[#allocation18_spill] sm:$0xff] %v9703_v20  ;;  %v7489_v29 = vpop.eup %7488  ;;  %v5945_v40 = vadd.f32 %v2528_v61, %v9012_v47  ;;  %v1824_v6 = vpop.f32.mrb[97].mxu0  ;;  %7514 = vtanh.f32 %v5944_v39 }
 0x2d8   :  { %v7491_v56 = vpop.eup %7490  ;;  %v2530_v34 = vpop.f32.mrb[97].mxu1  ;;  %v5818_v13 = vadd.f32 %v1824_v6, %v9016_v48  ;;  %7516 = vtanh.f32 %v5817_v60 }
 0x2d9   :  { %v7493_v9 = vpop.eup %7492  ;;  %v5946_v54 = vadd.f32 %v2530_v34, %v9020_v49  ;;  %v1826_v7 = vpop.f32.mrb[98].mxu0  ;;  %7518 = vtanh.f32 %v5945_v40 }
 0x2da   :  { %v7495_v62 = vpop.eup %7494  ;;  %v2532_v26 = vpop.f32.mrb[98].mxu1  ;;  %v9712_v21 = vpack.c.bf16 %v7493_v9, %v7485_v33  ;;  %v5819_v59 = vadd.f32 %v1826_v7, %v9008_v46  ;;  %7520 = vtanh.f32 %v5818_v13  ;;  %4004 = vmatmul.mubr.bf16.gmra.mrb[204].mxu0 %v9652_v25  ;;  %4710 = vmatmul.mubr.bf16.gmra.mrb[204].mxu1 %v9652_v25 }
 0x2db   :  { %v7497_v38 = vpop.eup %7496  ;;  %v1828_v3 = vpop.f32.mrb[99].mxu0  ;;  %v9715_v24 = vpack.c.bf16 %v7495_v62, %v7487_v31  ;;  %v5947_v39 = vadd.f32 %v2532_v26, %v9012_v47  ;;  %7522 = vtanh.f32 %v5946_v54  ;;  %4013 = vmatprep.mubr.bf16.mxu0 %v9678_v41  ;;  %4719 = vmatprep.mubr.bf16.mxu1 %v9678_v41 }
 0x2dc   :  { %v2534_v11 = vpop.f32.mrb[99].mxu1  ;;  %v7499_v61 = vpop.eup %7498  ;;  %v9718_v20 = vpack.c.bf16 %v7497_v38, %v7489_v29  ;;  %v5820_v34 = vadd.f32 %v1828_v3, %v9016_v48  ;;  %7524 = vtanh.f32 %v5819_v59 }
 0x2dd   :  { %10346 = vst [vmem:[#allocation19_spill] sm:$0xff] %v9715_v24  ;;  %v7501_v6 = vpop.eup %7500  ;;  %v9723_v33 = vpack.c.bf16 %v7499_v61, %v7491_v56  ;;  %v5948_v31 = vadd.f32 %v2534_v11, %v9020_v49  ;;  %7526 = vtanh.f32 %v5947_v39  ;;  %v1832_v40 = vpop.f32.mrb[100].mxu0 }
 0x2de   :  { %v7503_v9 = vpop.eup %7502  ;;  %v2538_v62 = vpop.f32.mrb[100].mxu1  ;;  %7528 = vtanh.f32 %v5820_v34  ;;  %v5821_v25 = vadd.f32 %v1832_v40, %v9008_v46 }
 0x2df   :  { %10347 = vst [vmem:[#allocation20_spill] sm:$0xff] %v9723_v33  ;;  %v7505_v29 = vpop.eup %7504  ;;  %v5949_v56 = vadd.f32 %v2538_v62, %v9012_v47  ;;  %v1834_v7 = vpop.f32.mrb[101].mxu0  ;;  %7530 = vtanh.f32 %v5948_v31 }
 0x2e0   :  { %v7507_v60 = vpop.eup %7506  ;;  %v2540_v54 = vpop.f32.mrb[101].mxu1  ;;  %v5822_v38 = vadd.f32 %v1834_v7, %v9016_v48  ;;  %7532 = vtanh.f32 %v5821_v25 }
 0x2e1   :  { %v7509_v13 = vpop.eup %7508  ;;  %v5950_v41 = vadd.f32 %v2540_v54, %v9020_v49  ;;  %v1836_v3 = vpop.f32.mrb[102].mxu0  ;;  %7534 = vtanh.f32 %v5949_v56 }
 0x2e2   :  { %v7511_v26 = vpop.eup %7510  ;;  %v2542_v59 = vpop.f32.mrb[102].mxu1  ;;  %v9732_v11 = vpack.c.bf16 %v7509_v13, %v7501_v6  ;;  %v5823_v39 = vadd.f32 %v1836_v3, %v9008_v46  ;;  %7536 = vtanh.f32 %v5822_v38  ;;  %4014 = vmatmul.mubr.bf16.gmra.mrb[208].mxu0 %v9672_v53  ;;  %4720 = vmatmul.mubr.bf16.gmra.mrb[208].mxu1 %v9672_v53 }
 0x2e3   :  { %v7513_v61 = vpop.eup %7512  ;;  %v1838_v34 = vpop.f32.mrb[103].mxu0  ;;  %v9735_v24 = vpack.c.bf16 %v7511_v26, %v7503_v9  ;;  %v5951_v31 = vadd.f32 %v2542_v59, %v9012_v47  ;;  %7538 = vtanh.f32 %v5950_v41  ;;  %4023 = vmatprep.mubr.bf16.mxu0 %v9698_v55  ;;  %4729 = vmatprep.mubr.bf16.mxu1 %v9698_v55 }
 0x2e4   :  { %v2544_v40 = vpop.f32.mrb[103].mxu1  ;;  %v7515_v62 = vpop.eup %7514  ;;  %v9738_v33 = vpack.c.bf16 %v7513_v61, %v7505_v29  ;;  %v5824_v54 = vadd.f32 %v1838_v34, %v9016_v48  ;;  %7540 = vtanh.f32 %v5823_v39 }
 0x2e5   :  { %10348 = vst [vmem:[#allocation21_spill] sm:$0xff] %v9735_v24  ;;  %v7517_v7 = vpop.eup %7516  ;;  %v9743_v6 = vpack.c.bf16 %v7515_v62, %v7507_v60  ;;  %v5952_v9 = vadd.f32 %v2544_v40, %v9020_v49  ;;  %7542 = vtanh.f32 %v5951_v31  ;;  %v1842_v56 = vpop.f32.mrb[104].mxu0 }
 0x2e6   :  { %v7519_v13 = vpop.eup %7518  ;;  %v2548_v26 = vpop.f32.mrb[104].mxu1  ;;  %7544 = vtanh.f32 %v5824_v54  ;;  %v5825_v53 = vadd.f32 %v1842_v56, %v9008_v46 }
 0x2e7   :  { %10349 = vst [vmem:[#allocation22_spill] sm:$0xff] %v9743_v6  ;;  %v7521_v29 = vpop.eup %7520  ;;  %v5953_v60 = vadd.f32 %v2548_v26, %v9012_v47  ;;  %v1844_v3 = vpop.f32.mrb[105].mxu0  ;;  %7546 = vtanh.f32 %v5952_v9 }
 0x2e8   :  { %v7523_v25 = vpop.eup %7522  ;;  %v2550_v41 = vpop.f32.mrb[105].mxu1  ;;  %v5826_v61 = vadd.f32 %v1844_v3, %v9016_v48  ;;  %7548 = vtanh.f32 %v5825_v53 }
 0x2e9   :  { %v7525_v38 = vpop.eup %7524  ;;  %v5954_v55 = vadd.f32 %v2550_v41, %v9020_v49  ;;  %v1846_v34 = vpop.f32.mrb[106].mxu0  ;;  %7550 = vtanh.f32 %v5953_v60 }
 0x2ea   :  { %v7527_v59 = vpop.eup %7526  ;;  %v2552_v39 = vpop.f32.mrb[106].mxu1  ;;  %v9752_v40 = vpack.c.bf16 %v7525_v38, %v7517_v7  ;;  %v5827_v31 = vadd.f32 %v1846_v34, %v9008_v46  ;;  %7552 = vtanh.f32 %v5826_v61  ;;  %4024 = vmatmul.mubr.bf16.gmra.mrb[212].mxu0 %v9692_v44  ;;  %4730 = vmatmul.mubr.bf16.gmra.mrb[212].mxu1 %v9692_v44 }
 0x2eb   :  { %v7529_v62 = vpop.eup %7528  ;;  %v1848_v54 = vpop.f32.mrb[107].mxu0  ;;  %v9755_v24 = vpack.c.bf16 %v7527_v59, %v7519_v13  ;;  %v5955_v9 = vadd.f32 %v2552_v39, %v9012_v47  ;;  %7554 = vtanh.f32 %v5954_v55  ;;  %4033 = vmatprep.mubr.bf16.mxu0 %v9718_v20  ;;  %4739 = vmatprep.mubr.bf16.mxu1 %v9718_v20 }
 0x2ec   :  { %v2554_v56 = vpop.f32.mrb[107].mxu1  ;;  %v7531_v26 = vpop.eup %7530  ;;  %v9758_v6 = vpack.c.bf16 %v7529_v62, %v7521_v29  ;;  %v5828_v41 = vadd.f32 %v1848_v54, %v9016_v48  ;;  %7556 = vtanh.f32 %v5827_v31 }
 0x2ed   :  { %10350 = vst [vmem:[#allocation23_spill] sm:$0xff] %v9755_v24  ;;  %v7533_v3 = vpop.eup %7532  ;;  %v9763_v7 = vpack.c.bf16 %v7531_v26, %v7523_v25  ;;  %v5956_v13 = vadd.f32 %v2554_v56, %v9020_v49  ;;  %7558 = vtanh.f32 %v5955_v9  ;;  %v1852_v60 = vpop.f32.mrb[108].mxu0 }
 0x2ee   :  { %v7535_v38 = vpop.eup %7534  ;;  %v2558_v59 = vpop.f32.mrb[108].mxu1  ;;  %7560 = vtanh.f32 %v5828_v41  ;;  %v5829_v44 = vadd.f32 %v1852_v60, %v9008_v46 }
 0x2ef   :  { %10351 = vst [vmem:[#allocation24_spill] sm:$0xff] %v9763_v7  ;;  %v7537_v29 = vpop.eup %7536  ;;  %v5957_v25 = vadd.f32 %v2558_v59, %v9012_v47  ;;  %v1854_v34 = vpop.f32.mrb[109].mxu0  ;;  %7562 = vtanh.f32 %v5956_v13 }
 0x2f0   :  { %v7539_v53 = vpop.eup %7538  ;;  %v2560_v55 = vpop.f32.mrb[109].mxu1  ;;  %v5830_v62 = vadd.f32 %v1854_v34, %v9016_v48  ;;  %7564 = vtanh.f32 %v5829_v44 }
 0x2f1   :  { %v7541_v61 = vpop.eup %7540  ;;  %v5958_v20 = vadd.f32 %v2560_v55, %v9020_v49  ;;  %v1856_v54 = vpop.f32.mrb[110].mxu0  ;;  %7566 = vtanh.f32 %v5957_v25 }
 0x2f2   :  { %v7543_v39 = vpop.eup %7542  ;;  %v2562_v31 = vpop.f32.mrb[110].mxu1  ;;  %v9772_v56 = vpack.c.bf16 %v7541_v61, %v7533_v3  ;;  %v5831_v9 = vadd.f32 %v1856_v54, %v9008_v46  ;;  %7568 = vtanh.f32 %v5830_v62  ;;  %4034 = vmatmul.mubr.bf16.gmra.mrb[216].mxu0 %v9712_v21  ;;  %4740 = vmatmul.mubr.bf16.gmra.mrb[216].mxu1 %v9712_v21 }
 0x2f3   :  { %v7545_v26 = vpop.eup %7544  ;;  %v1858_v41 = vpop.f32.mrb[111].mxu0  ;;  %v9775_v24 = vpack.c.bf16 %v7543_v39, %v7535_v38  ;;  %v5959_v13 = vadd.f32 %v2562_v31, %v9012_v47  ;;  %7570 = vtanh.f32 %v5958_v20  ;;  %4043 = vmatprep.mubr.bf16.mxu0 %v9738_v33  ;;  %4749 = vmatprep.mubr.bf16.mxu1 %v9738_v33 }
 0x2f4   :  { %v2564_v60 = vpop.f32.mrb[111].mxu1  ;;  %v7547_v59 = vpop.eup %7546  ;;  %v9778_v7 = vpack.c.bf16 %v7545_v26, %v7537_v29  ;;  %v5832_v55 = vadd.f32 %v1858_v41, %v9016_v48  ;;  %7572 = vtanh.f32 %v5831_v9 }
 0x2f5   :  { %10352 = vst [vmem:[#allocation25_spill] sm:$0xff] %v9775_v24  ;;  %v7549_v34 = vpop.eup %7548  ;;  %v9783_v3 = vpack.c.bf16 %v7547_v59, %v7539_v53  ;;  %v5960_v38 = vadd.f32 %v2564_v60, %v9020_v49  ;;  %7574 = vtanh.f32 %v5959_v13  ;;  %v1862_v25 = vpop.f32.mrb[112].mxu0 }
 0x2f6   :  { %v7551_v61 = vpop.eup %7550  ;;  %v2568_v39 = vpop.f32.mrb[112].mxu1  ;;  %7576 = vtanh.f32 %v5832_v55  ;;  %v5833_v21 = vadd.f32 %v1862_v25, %v9008_v46 }
 0x2f7   :  { %10353 = vst [vmem:[#allocation26_spill] sm:$0xff] %v9783_v3  ;;  %v7553_v29 = vpop.eup %7552  ;;  %v5961_v53 = vadd.f32 %v2568_v39, %v9012_v47  ;;  %v1864_v54 = vpop.f32.mrb[113].mxu0  ;;  %7578 = vtanh.f32 %v5960_v38 }
 0x2f8   :  { %v7555_v44 = vpop.eup %7554  ;;  %v2570_v20 = vpop.f32.mrb[113].mxu1  ;;  %v5834_v26 = vadd.f32 %v1864_v54, %v9016_v48  ;;  %7580 = vtanh.f32 %v5833_v21 }
 0x2f9   :  { %v7557_v62 = vpop.eup %7556  ;;  %v5962_v33 = vadd.f32 %v2570_v20, %v9020_v49  ;;  %v1866_v41 = vpop.f32.mrb[114].mxu0  ;;  %7582 = vtanh.f32 %v5961_v53 }
 0x2fa   :  { %v7559_v31 = vpop.eup %7558  ;;  %v2572_v9 = vpop.f32.mrb[114].mxu1  ;;  %v9792_v60 = vpack.c.bf16 %v7557_v62, %v7549_v34  ;;  %v5835_v13 = vadd.f32 %v1866_v41, %v9008_v46  ;;  %7584 = vtanh.f32 %v5834_v26  ;;  %4044 = vmatmul.mubr.bf16.gmra.mrb[220].mxu0 %v9732_v11  ;;  %4750 = vmatmul.mubr.bf16.gmra.mrb[220].mxu1 %v9732_v11 }
 0x2fb   :  { %v7561_v59 = vpop.eup %7560  ;;  %v1868_v55 = vpop.f32.mrb[115].mxu0  ;;  %v9795_v24 = vpack.c.bf16 %v7559_v31, %v7551_v61  ;;  %v5963_v38 = vadd.f32 %v2572_v9, %v9012_v47  ;;  %7586 = vtanh.f32 %v5962_v33  ;;  %4053 = vmatprep.mubr.bf16.mxu0 %v9758_v6  ;;  %4759 = vmatprep.mubr.bf16.mxu1 %v9758_v6 }
 0x2fc   :  { %v2574_v25 = vpop.f32.mrb[115].mxu1  ;;  %v7563_v39 = vpop.eup %7562  ;;  %v9798_v3 = vpack.c.bf16 %v7561_v59, %v7553_v29  ;;  %v5836_v20 = vadd.f32 %v1868_v55, %v9016_v48  ;;  %7588 = vtanh.f32 %v5835_v13 }
 0x2fd   :  { %10354 = vst [vmem:[#allocation27_spill] sm:$0xff] %v9795_v24  ;;  %v7565_v54 = vpop.eup %7564  ;;  %v9803_v34 = vpack.c.bf16 %v7563_v39, %v7555_v44  ;;  %v5964_v61 = vadd.f32 %v2574_v25, %v9020_v49  ;;  %7590 = vtanh.f32 %v5963_v38  ;;  %v1872_v53 = vpop.f32.mrb[116].mxu0 }
 0x2fe   :  { %v7567_v62 = vpop.eup %7566  ;;  %v2578_v31 = vpop.f32.mrb[116].mxu1  ;;  %7592 = vtanh.f32 %v5836_v20  ;;  %v5837_v11 = vadd.f32 %v1872_v53, %v9008_v46 }
 0x2ff   :  { %10355 = vst [vmem:[#allocation28_spill] sm:$0xff] %v9803_v34  ;;  %v7569_v29 = vpop.eup %7568  ;;  %v5965_v44 = vadd.f32 %v2578_v31, %v9012_v47  ;;  %v1874_v41 = vpop.f32.mrb[117].mxu0  ;;  %7594 = vtanh.f32 %v5964_v61 }
 0x300   :  { %v7571_v21 = vpop.eup %7570  ;;  %v2580_v33 = vpop.f32.mrb[117].mxu1  ;;  %v5838_v59 = vadd.f32 %v1874_v41, %v9016_v48  ;;  %7596 = vtanh.f32 %v5837_v11 }
 0x301   :  { %v7573_v26 = vpop.eup %7572  ;;  %v5966_v6 = vadd.f32 %v2580_v33, %v9020_v49  ;;  %v1876_v55 = vpop.f32.mrb[118].mxu0  ;;  %7598 = vtanh.f32 %v5965_v44 }
 0x302   :  { %v7575_v9 = vpop.eup %7574  ;;  %v2582_v13 = vpop.f32.mrb[118].mxu1  ;;  %v9812_v25 = vpack.c.bf16 %v7573_v26, %v7565_v54  ;;  %v5839_v38 = vadd.f32 %v1876_v55, %v9008_v46  ;;  %7600 = vtanh.f32 %v5838_v59  ;;  %4054 = vmatmul.mubr.bf16.gmra.mrb[224].mxu0 %v9752_v40  ;;  %4760 = vmatmul.mubr.bf16.gmra.mrb[224].mxu1 %v9752_v40 }
 0x303   :  { %v7577_v39 = vpop.eup %7576  ;;  %v1878_v20 = vpop.f32.mrb[119].mxu0  ;;  %v9815_v24 = vpack.c.bf16 %v7575_v9, %v7567_v62  ;;  %v5967_v61 = vadd.f32 %v2582_v13, %v9012_v47  ;;  %7602 = vtanh.f32 %v5966_v6  ;;  %4063 = vmatprep.mubr.bf16.mxu0 %v9778_v7  ;;  %4769 = vmatprep.mubr.bf16.mxu1 %v9778_v7 }
 0x304   :  { %v2584_v53 = vpop.f32.mrb[119].mxu1  ;;  %v7579_v31 = vpop.eup %7578  ;;  %v9818_v34 = vpack.c.bf16 %v7577_v39, %v7569_v29  ;;  %v5840_v33 = vadd.f32 %v1878_v20, %v9016_v48  ;;  %7604 = vtanh.f32 %v5839_v38 }
 0x305   :  { %10356 = vst [vmem:[#allocation29_spill] sm:$0xff] %v9815_v24  ;;  %v7581_v41 = vpop.eup %7580  ;;  %v9823_v54 = vpack.c.bf16 %v7579_v31, %v7571_v21  ;;  %v5968_v62 = vadd.f32 %v2584_v53, %v9020_v49  ;;  %7606 = vtanh.f32 %v5967_v61  ;;  %v1882_v44 = vpop.f32.mrb[120].mxu0 }
 0x306   :  { %v7583_v26 = vpop.eup %7582  ;;  %v2588_v9 = vpop.f32.mrb[120].mxu1  ;;  %7608 = vtanh.f32 %v5840_v33  ;;  %v5841_v40 = vadd.f32 %v1882_v44, %v9008_v46 }
 0x307   :  { %10357 = vst [vmem:[#allocation30_spill] sm:$0xff] %v9823_v54  ;;  %v7585_v29 = vpop.eup %7584  ;;  %v5969_v21 = vadd.f32 %v2588_v9, %v9012_v47  ;;  %v1884_v55 = vpop.f32.mrb[121].mxu0  ;;  %7610 = vtanh.f32 %v5968_v62 }
 0x308   :  { %v7587_v11 = vpop.eup %7586  ;;  %v2590_v6 = vpop.f32.mrb[121].mxu1  ;;  %v5842_v39 = vadd.f32 %v1884_v55, %v9016_v48  ;;  %7612 = vtanh.f32 %v5841_v40 }
 0x309   :  { %v7589_v59 = vpop.eup %7588  ;;  %v5970_v7 = vadd.f32 %v2590_v6, %v9020_v49  ;;  %v1886_v20 = vpop.f32.mrb[122].mxu0  ;;  %7614 = vtanh.f32 %v5969_v21 }
 0x30a   :  { %v7591_v13 = vpop.eup %7590  ;;  %v2592_v38 = vpop.f32.mrb[122].mxu1  ;;  %v9832_v53 = vpack.c.bf16 %v7589_v59, %v7581_v41  ;;  %v5843_v61 = vadd.f32 %v1886_v20, %v9008_v46  ;;  %7616 = vtanh.f32 %v5842_v39  ;;  %4064 = vmatmul.mubr.bf16.gmra.mrb[228].mxu0 %v9772_v56  ;;  %4770 = vmatmul.mubr.bf16.gmra.mrb[228].mxu1 %v9772_v56 }
 0x30b   :  { %v7593_v31 = vpop.eup %7592  ;;  %v1888_v33 = vpop.f32.mrb[123].mxu0  ;;  %v9835_v24 = vpack.c.bf16 %v7591_v13, %v7583_v26  ;;  %v5971_v62 = vadd.f32 %v2592_v38, %v9012_v47  ;;  %7618 = vtanh.f32 %v5970_v7  ;;  %4073 = vmatprep.mubr.bf16.mxu0 %v9798_v3  ;;  %4779 = vmatprep.mubr.bf16.mxu1 %v9798_v3 }
 0x30c   :  { %v2594_v44 = vpop.f32.mrb[123].mxu1  ;;  %v7595_v9 = vpop.eup %7594  ;;  %v9838_v54 = vpack.c.bf16 %v7593_v31, %v7585_v29  ;;  %v5844_v6 = vadd.f32 %v1888_v33, %v9016_v48  ;;  %7620 = vtanh.f32 %v5843_v61 }
 0x30d   :  { %10358 = vst [vmem:[#allocation31_spill] sm:$0xff] %v9835_v24  ;;  %v7597_v55 = vpop.eup %7596  ;;  %v9843_v41 = vpack.c.bf16 %v7595_v9, %v7587_v11  ;;  %v5972_v26 = vadd.f32 %v2594_v44, %v9020_v49  ;;  %7622 = vtanh.f32 %v5971_v62  ;;  %v1892_v21 = vpop.f32.mrb[124].mxu0 }
 0x30e   :  { %v7599_v59 = vpop.eup %7598  ;;  %v2598_v13 = vpop.f32.mrb[124].mxu1  ;;  %7624 = vtanh.f32 %v5844_v6  ;;  %v5845_v56 = vadd.f32 %v1892_v21, %v9008_v46 }
 0x30f   :  { %10359 = vst [vmem:[#allocation32_spill] sm:$0xff] %v9843_v41  ;;  %v7601_v29 = vpop.eup %7600  ;;  %v5973_v11 = vadd.f32 %v2598_v13, %v9012_v47  ;;  %v1894_v20 = vpop.f32.mrb[125].mxu0  ;;  %7626 = vtanh.f32 %v5972_v26 }
 0x310   :  { %v7603_v40 = vpop.eup %7602  ;;  %v2600_v7 = vpop.f32.mrb[125].mxu1  ;;  %v5846_v31 = vadd.f32 %v1894_v20, %v9016_v48  ;;  %7628 = vtanh.f32 %v5845_v56 }
 0x311   :  { %v7605_v39 = vpop.eup %7604  ;;  %v5974_v3 = vadd.f32 %v2600_v7, %v9020_v49  ;;  %v1896_v33 = vpop.f32.mrb[126].mxu0  ;;  %7630 = vtanh.f32 %v5973_v11 }
 0x312   :  { %v7607_v38 = vpop.eup %7606  ;;  %v2602_v61 = vpop.f32.mrb[126].mxu1  ;;  %v2979_v44 = vpack.c.bf16 %v7605_v39, %v7597_v55  ;;  %v5847_v62 = vadd.f32 %v1896_v33, %v9008_v46  ;;  %7632 = vtanh.f32 %v5846_v31  ;;  %4074 = vmatmul.mubr.bf16.gmra.mrb[232].mxu0 %v9792_v60  ;;  %4780 = vmatmul.mubr.bf16.gmra.mrb[232].mxu1 %v9792_v60 }
 0x313   :  { %v7609_v9 = vpop.eup %7608  ;;  %v1898_v6 = vpop.f32.mrb[127].mxu0  ;;  %v9853_v21 = vpack.c.bf16 %v7607_v38, %v7599_v59  ;;  %v5975_v41 = vadd.f32 %v2602_v61, %v9012_v47  ;;  %7634 = vtanh.f32 %v5974_v3  ;;  %4083 = vmatprep.mubr.bf16.mxu0 %v9818_v34  ;;  %4789 = vmatprep.mubr.bf16.mxu1 %v9818_v34 }
 0x314   :  { %v2604_v24 = vpop.f32.mrb[127].mxu1  ;;  %v7611_v13 = vpop.eup %7610  ;;  %v2980_v26 = vpack.c.bf16 %v7609_v9, %v7601_v29  ;;  %v5848_v20 = vadd.f32 %v1898_v6, %v9016_v48  ;;  %7636 = vtanh.f32 %v5847_v62 }
 0x315   :  { %v7613_v43 = vpop.eup %7612  ;;  %v9859_v55 = vpack.c.bf16 %v7611_v13, %v7603_v40  ;;  %v5976_v59 = vadd.f32 %v2604_v24, %v9020_v49  ;;  %7638 = vtanh.f32 %v5975_v41 }
 0x316   :  { %v7615_v46 = vpop.eup %7614  ;;  %7640 = vtanh.f32 %v5848_v20 }
 0x317   :  { %v7617_v47 = vpop.eup %7616  ;;  %7642 = vtanh.f32 %v5976_v59 }
 0x318   :  { %v7619_v29 = vpop.eup %7618 }
 0x319   :  { %v7621_v39 = vpop.eup %7620 }
 0x31a   :  { %v7623_v48 = vpop.eup %7622  ;;  %v2983_v56 = vpack.c.bf16 %v7621_v39, %v7613_v43  ;;  %4084 = vmatmul.mubr.bf16.gmra.mrb[236].mxu0 %v9812_v25  ;;  %4790 = vmatmul.mubr.bf16.gmra.mrb[236].mxu1 %v9812_v25 }
 0x31b   :  { %v7625_v60 = vpop.eup %7624  ;;  %v9864_v40 = vpack.c.bf16 %v7623_v48, %v7615_v46  ;;  %4093 = vmatprep.mubr.bf16.mxu0 %v9838_v54  ;;  %4799 = vmatprep.mubr.bf16.mxu1 %v9838_v54 }
 0x31c   :  { %v7627_v11 = vpop.eup %7626  ;;  %v2984_v7 = vpack.c.bf16 %v7625_v60, %v7617_v47 }
 0x31d   :  { %v7629_v38 = vpop.eup %7628  ;;  %v9868_v49 = vpack.c.bf16 %v7627_v11, %v7619_v29 }
 0x31e   :  { %v7631_v24 = vpop.eup %7630 }
 0x31f   :  { %v7633_v34 = vpop.eup %7632 }
 0x320   :  { %v7635_v41 = vpop.eup %7634 }
 0x321   :  { %v7637_v43 = vpop.eup %7636 }
 0x322   :  { %v7639_v31 = vpop.eup %7638  ;;  %v2987_v3 = vpack.c.bf16 %v7637_v43, %v7629_v38  ;;  %4094 = vmatmul.mubr.bf16.gmra.mrb[240].mxu0 %v9832_v53  ;;  %4800 = vmatmul.mubr.bf16.gmra.mrb[240].mxu1 %v9832_v53 }
 0x323   :  { %v7641_v33 = vpop.eup %7640  ;;  %v9872_v61 = vpack.c.bf16 %v7639_v31, %v7631_v24  ;;  %4103 = vmatprep.mubr.bf16.mxu0 %v2980_v26  ;;  %4809 = vmatprep.mubr.bf16.mxu1 %v2980_v26 }
 0x324   :  { %v7643_v9 = vpop.eup %7642  ;;  %v2988_v62 = vpack.c.bf16 %v7641_v33, %v7633_v34  ;;  %v10389_v34 = vld [vmem:[#allocation29_spill] sm:$0xff] }
 0x325   :  { %v9876_v25 = vpack.c.bf16 %v7643_v9, %v7635_v41  ;;  %v10390_v41 = vld [vmem:[#allocation32_spill] sm:$0xff] }
 0x32a   :  { %4104 = vmatmul.mubr.bf16.gmra.mrb[244].mxu0 %v2979_v44  ;;  %4810 = vmatmul.mubr.bf16.gmra.mrb[244].mxu1 %v2979_v44 }
 0x32b   :  { %4113 = vmatprep.mubr.bf16.mxu0 %v2984_v7  ;;  %4819 = vmatprep.mubr.bf16.mxu1 %v2984_v7 }
 0x332   :  { %4114 = vmatmul.mubr.bf16.gmra.mrb[248].mxu0 %v2983_v56  ;;  %4820 = vmatmul.mubr.bf16.gmra.mrb[248].mxu1 %v2983_v56 }
 0x333   :  { %4123 = vmatprep.mubr.bf16.mxu0 %v2988_v62  ;;  %4829 = vmatprep.mubr.bf16.mxu1 %v2988_v62 }
 0x33a   :  { %4124 = vmatmul.mubr.bf16.gmra.mrb[252].mxu0 %v2987_v3  ;;  %4830 = vmatmul.mubr.bf16.gmra.mrb[252].mxu1 %v2987_v3 }
 0x33b   :  { %4166 = vmatprep.mubr.bf16.mxu0 %v9093_v10  ;;  %4872 = vmatprep.mubr.bf16.mxu1 %v9093_v10  ;;  %v10361_v10 = vld [vmem:[#allocation8_spill] sm:$0xff] }
 0x342   :  { %4167 = vmatmul.mubr.bf16.vlgmr.msra.gmra.mrb[128].mxu0 %v9081_v2  ;;  %4873 = vmatmul.mubr.bf16.vlgmr.msra.gmra.mrb[128].mxu1 %v9081_v2  ;;  %v10360_v2 = vld [vmem:[#allocation6_spill] sm:$0xff] }
 0x343   :  { %4176 = vmatprep.mubr.bf16.mxu0 %v9115_v51  ;;  %4882 = vmatprep.mubr.bf16.mxu1 %v9115_v51  ;;  %v10363_v51 = vld [vmem:[#allocation10_spill] sm:$0xff] }
 0x34a   :  { %4177 = vmatmul.mubr.bf16.gmra.mrb[132].mxu0 %v9109_v37  ;;  %4883 = vmatmul.mubr.bf16.gmra.mrb[132].mxu1 %v9109_v37  ;;  %v10362_v37 = vld [vmem:[#allocation7_spill] sm:$0xff] }
 0x34b   :  { %4186 = vmatprep.mubr.bf16.mxu0 %v9137_v22  ;;  %4892 = vmatprep.mubr.bf16.mxu1 %v9137_v22  ;;  %v10365_v22 = vld [vmem:[#allocation12_spill] sm:$0xff] }
 0x352   :  { %4187 = vmatmul.mubr.bf16.gmra.mrb[136].mxu0 %v9131_v16  ;;  %4893 = vmatmul.mubr.bf16.gmra.mrb[136].mxu1 %v9131_v16  ;;  %v10364_v16 = vld [vmem:[#allocation9_spill] sm:$0xff] }
 0x353   :  { %4196 = vmatprep.mubr.bf16.mxu0 %v9169_v4  ;;  %4902 = vmatprep.mubr.bf16.mxu1 %v9169_v4  ;;  %v10367_v4 = vld [vmem:[#allocation14_spill] sm:$0xff] }
 0x35a   :  { %4197 = vmatmul.mubr.bf16.gmra.mrb[140].mxu0 %v9155_v58  ;;  %4903 = vmatmul.mubr.bf16.gmra.mrb[140].mxu1 %v9155_v58  ;;  %v10366_v58 = vld [vmem:[#allocation11_spill] sm:$0xff] }
 0x35b   :  { %4206 = vmatprep.mubr.bf16.mxu0 %v9213_v57  ;;  %4912 = vmatprep.mubr.bf16.mxu1 %v9213_v57  ;;  %v10369_v57 = vld [vmem:[#allocation16_spill] sm:$0xff] }
 0x362   :  { %4207 = vmatmul.mubr.bf16.gmra.mrb[144].mxu0 %v9199_v5  ;;  %4913 = vmatmul.mubr.bf16.gmra.mrb[144].mxu1 %v9199_v5  ;;  %v10368_v5 = vld [vmem:[#allocation13_spill] sm:$0xff] }
 0x363   :  { %4216 = vmatprep.mubr.bf16.mxu0 %v9257_v45  ;;  %4922 = vmatprep.mubr.bf16.mxu1 %v9257_v45  ;;  %v10371_v45 = vld [vmem:[#allocation18_spill] sm:$0xff] }
 0x36a   :  { %4217 = vmatmul.mubr.bf16.gmra.mrb[148].mxu0 %v9243_v28  ;;  %4923 = vmatmul.mubr.bf16.gmra.mrb[148].mxu1 %v9243_v28  ;;  %v10370_v28 = vld [vmem:[#allocation15_spill] sm:$0xff] }
 0x36b   :  { %4226 = vmatprep.mubr.bf16.mxu0 %v9301_v36  ;;  %4932 = vmatprep.mubr.bf16.mxu1 %v9301_v36  ;;  %v10373_v36 = vld [vmem:[#allocation20_spill] sm:$0xff] }
 0x372   :  { %4227 = vmatmul.mubr.bf16.gmra.mrb[152].mxu0 %v9287_v23  ;;  %4933 = vmatmul.mubr.bf16.gmra.mrb[152].mxu1 %v9287_v23  ;;  %v10372_v23 = vld [vmem:[#allocation17_spill] sm:$0xff] }
 0x373   :  { %4236 = vmatprep.mubr.bf16.mxu0 %v9345_v35  ;;  %4942 = vmatprep.mubr.bf16.mxu1 %v9345_v35  ;;  %v10375_v35 = vld [vmem:[#allocation22_spill] sm:$0xff] }
 0x37a   :  { %4237 = vmatmul.mubr.bf16.gmra.mrb[156].mxu0 %v9331_v42  ;;  %4943 = vmatmul.mubr.bf16.gmra.mrb[156].mxu1 %v9331_v42  ;;  %v10374_v42 = vld [vmem:[#allocation19_spill] sm:$0xff] }
 0x37b   :  { %4246 = vmatprep.mubr.bf16.mxu0 %v9383_v32  ;;  %4952 = vmatprep.mubr.bf16.mxu1 %v9383_v32  ;;  %v10377_v32 = vld [vmem:[#allocation24_spill] sm:$0xff] }
 0x382   :  { %4247 = vmatmul.mubr.bf16.gmra.mrb[160].mxu0 %v9372_v15  ;;  %4953 = vmatmul.mubr.bf16.gmra.mrb[160].mxu1 %v9372_v15  ;;  %v10376_v15 = vld [vmem:[#allocation21_spill] sm:$0xff] }
 0x383   :  { %4256 = vmatprep.mubr.bf16.mxu0 %v9403_v17  ;;  %4962 = vmatprep.mubr.bf16.mxu1 %v9403_v17  ;;  %v10379_v17 = vld [vmem:[#allocation26_spill] sm:$0xff] }
 0x38a   :  { %4257 = vmatmul.mubr.bf16.gmra.mrb[164].mxu0 %v9395_v19  ;;  %4963 = vmatmul.mubr.bf16.gmra.mrb[164].mxu1 %v9395_v19  ;;  %v10378_v19 = vld [vmem:[#allocation23_spill] sm:$0xff] }
 0x38b   :  { %4266 = vmatprep.mubr.bf16.mxu0 %v9435_v18  ;;  %4972 = vmatprep.mubr.bf16.mxu1 %v9435_v18  ;;  %v10381_v18 = vld [vmem:[#allocation28_spill] sm:$0xff] }
 0x392   :  { %4267 = vmatmul.mubr.bf16.gmra.mrb[168].mxu0 %v9424_v1  ;;  %4973 = vmatmul.mubr.bf16.gmra.mrb[168].mxu1 %v9424_v1  ;;  %v10380_v1 = vld [vmem:[#allocation25_spill] sm:$0xff] }
 0x393   :  { %4276 = vmatprep.mubr.bf16.mxu0 %v9455_v14  ;;  %4982 = vmatprep.mubr.bf16.mxu1 %v9455_v14  ;;  %v10382_v14 = vld [vmem:[#allocation27_spill] sm:$0xff] }
 0x39a   :  { %4277 = vmatmul.mubr.bf16.gmra.mrb[172].mxu0 %v9447_v63  ;;  %4983 = vmatmul.mubr.bf16.gmra.mrb[172].mxu1 %v9447_v63  ;;  %v3119_v63 = vld [vmem:[%s10297_s4] sm:$0xf]  ;;  %s7668_s4 = smov [#allocation2]  }
 0x39b   :  { %4286 = vmatprep.mubr.bf16.mxu0 %v9487_v27  ;;  %4992 = vmatprep.mubr.bf16.mxu1 %v9487_v27  ;;  %s5454_s9 = sshll.u32 %s7668_s4, 4  ;;  %s5455_s9 = int_to_ptr.vmem [resolvable:$true] %s5454_s9 }
 0x39c   :  { %s7644_s10 = scalar_lea.vmem %s5455_s9, 32768  ;;  %p7649_p1 = scmp.lt.s32.totalorder %s5455_s9, %s5455_s9 }
 0x39d   :  { %p7645_p0 = scmp.ne.s32.totalorder %s5455_s9, %s7644_s10  ;;  %p7650_p2 = scmp.lt.s32.totalorder %s7644_s10, %s7644_s10 }
 0x39f   :  { %p7651_p3 = por %p7650_p2, %p7649_p1 }
 0x3a1   :  { %p7652_p4 = pnand %p7651_p3, %p7645_p0 }
 0x3a2   :  { %4287 = vmatmul.mubr.bf16.gmra.mrb[176].mxu0 %v9476_v12  ;;  %4993 = vmatmul.mubr.bf16.gmra.mrb[176].mxu1 %v9476_v12  ;;  %v10383_v12 = vld [vmem:[#allocation5_spill] sm:$0xff] }
 0x3a3   :  { %4296 = vmatprep.mubr.bf16.mxu0 %v9507_v30  ;;  %5002 = vmatprep.mubr.bf16.mxu1 %v9507_v30  ;;  %v10384_v27 = vsub.s32 0, %v10383_v12  ;;  %v10385_v30 = vsub.s32 2, %v10383_v12  ;;  %v10388_v53 = vsub.s32 3, %v10383_v12 }
 0x3a5   :  { %v10005_v44 = vrot.slane %v3119_v63, %v10388_v53 }
 0x3aa   :  { %4297 = vmatmul.mubr.bf16.gmra.mrb[180].mxu0 %v9499_v8  ;;  %5003 = vmatmul.mubr.bf16.gmra.mrb[180].mxu1 %v9499_v8  ;;  %v9991_v8 = vrot.slane %v3119_v63, %v10384_v27 }
 0x3ab   :  { %4306 = vmatprep.mubr.bf16.mxu0 %v9539_v0  ;;  %5012 = vmatprep.mubr.bf16.mxu1 %v9539_v0  ;;  %v10386_v0 = vld [vmem:[#allocation30_spill] sm:$0xff] }
 0x3b2   :  { %4307 = vmatmul.mubr.bf16.gmra.mrb[184].mxu0 %v9528_v52  ;;  %5013 = vmatmul.mubr.bf16.gmra.mrb[184].mxu1 %v9528_v52  ;;  %v9995_v52 = vrot.slane %v3119_v63, %v10385_v30 }
 0x3b3   :  { %4316 = vmatprep.mubr.bf16.mxu0 %v9568_v50  ;;  %5022 = vmatprep.mubr.bf16.mxu1 %v9568_v50  ;;  %v10387_v50 = vsub.s32 1, %v10383_v12 }
 0x3b5   :  { %v10001_v54 = vrot.slane %v3119_v63, %v10387_v50 }
 0x3ba   :  { %4317 = vmatmul.mubr.bf16.gmra.mrb[188].mxu0 %v10360_v2  ;;  %5023 = vmatmul.mubr.bf16.gmra.mrb[188].mxu1 %v10360_v2 }
 0x3bb   :  { %4326 = vmatprep.mubr.bf16.mxu0 %v10361_v10  ;;  %5032 = vmatprep.mubr.bf16.mxu1 %v10361_v10 }
 0x3c2   :  { %4327 = vmatmul.mubr.bf16.gmra.mrb[192].mxu0 %v10362_v37  ;;  %5033 = vmatmul.mubr.bf16.gmra.mrb[192].mxu1 %v10362_v37 }
 0x3c3   :  { %4336 = vmatprep.mubr.bf16.mxu0 %v10363_v51  ;;  %5042 = vmatprep.mubr.bf16.mxu1 %v10363_v51 }
 0x3ca   :  { %4337 = vmatmul.mubr.bf16.gmra.mrb[196].mxu0 %v10364_v16  ;;  %5043 = vmatmul.mubr.bf16.gmra.mrb[196].mxu1 %v10364_v16 }
 0x3cb   :  { %4346 = vmatprep.mubr.bf16.mxu0 %v10365_v22  ;;  %5052 = vmatprep.mubr.bf16.mxu1 %v10365_v22 }
 0x3d2   :  { %4347 = vmatmul.mubr.bf16.gmra.mrb[200].mxu0 %v10366_v58  ;;  %5053 = vmatmul.mubr.bf16.gmra.mrb[200].mxu1 %v10366_v58 }
 0x3d3   :  { %4356 = vmatprep.mubr.bf16.mxu0 %v10367_v4  ;;  %5062 = vmatprep.mubr.bf16.mxu1 %v10367_v4 }
 0x3da   :  { %4357 = vmatmul.mubr.bf16.gmra.mrb[204].mxu0 %v10368_v5  ;;  %5063 = vmatmul.mubr.bf16.gmra.mrb[204].mxu1 %v10368_v5 }
 0x3db   :  { %4366 = vmatprep.mubr.bf16.mxu0 %v10369_v57  ;;  %5072 = vmatprep.mubr.bf16.mxu1 %v10369_v57 }
 0x3e2   :  { %4367 = vmatmul.mubr.bf16.gmra.mrb[208].mxu0 %v10370_v28  ;;  %5073 = vmatmul.mubr.bf16.gmra.mrb[208].mxu1 %v10370_v28  ;;  %v10391_v28 = vld [vmem:[#allocation31_spill] sm:$0xff] }
 0x3e3   :  { %4376 = vmatprep.mubr.bf16.mxu0 %v10371_v45  ;;  %5082 = vmatprep.mubr.bf16.mxu1 %v10371_v45 }
 0x3ea   :  { %4377 = vmatmul.mubr.bf16.gmra.mrb[212].mxu0 %v10372_v23  ;;  %5083 = vmatmul.mubr.bf16.gmra.mrb[212].mxu1 %v10372_v23 }
 0x3eb   :  { %4386 = vmatprep.mubr.bf16.mxu0 %v10373_v36  ;;  %5092 = vmatprep.mubr.bf16.mxu1 %v10373_v36 }
 0x3f2   :  { %4387 = vmatmul.mubr.bf16.gmra.mrb[216].mxu0 %v10374_v42  ;;  %5093 = vmatmul.mubr.bf16.gmra.mrb[216].mxu1 %v10374_v42 }
 0x3f3   :  { %4396 = vmatprep.mubr.bf16.mxu0 %v10375_v35  ;;  %5102 = vmatprep.mubr.bf16.mxu1 %v10375_v35 }
 0x3fa   :  { %4397 = vmatmul.mubr.bf16.gmra.mrb[220].mxu0 %v10376_v15  ;;  %5103 = vmatmul.mubr.bf16.gmra.mrb[220].mxu1 %v10376_v15 }
 0x3fb   :  { %4406 = vmatprep.mubr.bf16.mxu0 %v10377_v32  ;;  %5112 = vmatprep.mubr.bf16.mxu1 %v10377_v32 }
 0x402   :  { %4407 = vmatmul.mubr.bf16.gmra.mrb[224].mxu0 %v10378_v19  ;;  %5113 = vmatmul.mubr.bf16.gmra.mrb[224].mxu1 %v10378_v19 }
 0x403   :  { %4416 = vmatprep.mubr.bf16.mxu0 %v10379_v17  ;;  %5122 = vmatprep.mubr.bf16.mxu1 %v10379_v17 }
 0x40a   :  { %4417 = vmatmul.mubr.bf16.gmra.mrb[228].mxu0 %v10380_v1  ;;  %5123 = vmatmul.mubr.bf16.gmra.mrb[228].mxu1 %v10380_v1 }
 0x40b   :  { %4426 = vmatprep.mubr.bf16.mxu0 %v10381_v18  ;;  %5132 = vmatprep.mubr.bf16.mxu1 %v10381_v18 }
 0x412   :  { %4427 = vmatmul.mubr.bf16.gmra.mrb[232].mxu0 %v10382_v14  ;;  %5133 = vmatmul.mubr.bf16.gmra.mrb[232].mxu1 %v10382_v14 }
 0x413   :  { %4436 = vmatprep.mubr.bf16.mxu0 %v10386_v0  ;;  %5142 = vmatprep.mubr.bf16.mxu1 %v10386_v0 }
 0x415   :  { %v4168_v6 = vpop.f32.mrb[128].mxu0  ;;  %v4874_v13 = vpop.f32.mrb[128].mxu1 }
 0x416   :  { %v5977_v26 = vadd.f32 %v4168_v6, %v9991_v8  ;;  %v6105_v20 = vadd.f32 %v4874_v13, %v9995_v52  ;;  %v4170_v46 = vpop.f32.mrb[129].mxu0  ;;  %v4876_v59 = vpop.f32.mrb[129].mxu1 }
 0x417   :  { %v5978_v47 = vadd.f32 %v4170_v46, %v10001_v54  ;;  %v6106_v29 = vadd.f32 %v4876_v59, %v10005_v44  ;;  %v4172_v39 = vpop.f32.mrb[130].mxu0  ;;  %v4878_v48 = vpop.f32.mrb[130].mxu1 }
 0x418   :  { %5193 = vst [vmem:[#allocation2] sm:$0xff] %v5977_v26  ;;  %5195 = vst [vmem:[#allocation2 + $0x10] sm:$0xff] %v6105_v20  ;;  %v5979_v56 = vadd.f32 %v4172_v39, %v9991_v8  ;;  %v6107_v60 = vadd.f32 %v4878_v48, %v9995_v52  ;;  %v4174_v11 = vpop.f32.mrb[131].mxu0  ;;  %v4880_v7 = vpop.f32.mrb[131].mxu1 }
 0x419   :  { %5194 = vst [vmem:[#allocation2 + $0x8] sm:$0xff] %v5978_v47  ;;  %5196 = vst [vmem:[#allocation2 + $0x18] sm:$0xff] %v6106_v29  ;;  %v5980_v38 = vadd.f32 %v4174_v11, %v10001_v54  ;;  %v6108_v24 = vadd.f32 %v4880_v7, %v10005_v44 }
 0x41a   :  { %5197 = vst [vmem:[#allocation2 + $0x20] sm:$0xff] %v5979_v56  ;;  %5199 = vst [vmem:[#allocation2 + $0x30] sm:$0xff] %v6107_v60  ;;  %4437 = vmatmul.mubr.bf16.gmra.mrb[236].mxu0 %v10389_v34  ;;  %5143 = vmatmul.mubr.bf16.gmra.mrb[236].mxu1 %v10389_v34 }
 0x41b   :  { %5198 = vst [vmem:[#allocation2 + $0x28] sm:$0xff] %v5980_v38  ;;  %5200 = vst [vmem:[#allocation2 + $0x38] sm:$0xff] %v6108_v24  ;;  %4446 = vmatprep.mubr.bf16.mxu0 %v10390_v41  ;;  %5152 = vmatprep.mubr.bf16.mxu1 %v10390_v41 }
 0x41d   :  { %v4178_v43 = vpop.f32.mrb[132].mxu0  ;;  %v4884_v31 = vpop.f32.mrb[132].mxu1 }
 0x41e   :  { %v5981_v3 = vadd.f32 %v4178_v43, %v9991_v8  ;;  %v6109_v33 = vadd.f32 %v4884_v31, %v9995_v52  ;;  %v4180_v9 = vpop.f32.mrb[133].mxu0  ;;  %v4886_v62 = vpop.f32.mrb[133].mxu1 }
 0x41f   :  { %v5982_v2 = vadd.f32 %v4180_v9, %v10001_v54  ;;  %v6110_v10 = vadd.f32 %v4886_v62, %v10005_v44  ;;  %v4182_v37 = vpop.f32.mrb[134].mxu0  ;;  %v4888_v51 = vpop.f32.mrb[134].mxu1 }
 0x420   :  { %5201 = vst [vmem:[#allocation2 + $0x40] sm:$0xff] %v5981_v3  ;;  %5203 = vst [vmem:[#allocation2 + $0x50] sm:$0xff] %v6109_v33  ;;  %v5983_v16 = vadd.f32 %v4182_v37, %v9991_v8  ;;  %v6111_v22 = vadd.f32 %v4888_v51, %v9995_v52  ;;  %v4184_v58 = vpop.f32.mrb[135].mxu0  ;;  %v4890_v4 = vpop.f32.mrb[135].mxu1 }
 0x421   :  { %5202 = vst [vmem:[#allocation2 + $0x48] sm:$0xff] %v5982_v2  ;;  %5204 = vst [vmem:[#allocation2 + $0x58] sm:$0xff] %v6110_v10  ;;  %v5984_v5 = vadd.f32 %v4184_v58, %v10001_v54  ;;  %v6112_v57 = vadd.f32 %v4890_v4, %v10005_v44 }
 0x422   :  { %5205 = vst [vmem:[#allocation2 + $0x60] sm:$0xff] %v5983_v16  ;;  %5207 = vst [vmem:[#allocation2 + $0x70] sm:$0xff] %v6111_v22  ;;  %4447 = vmatmul.mubr.bf16.gmra.mrb[240].mxu0 %v10391_v28  ;;  %5153 = vmatmul.mubr.bf16.gmra.mrb[240].mxu1 %v10391_v28 }
 0x423   :  { %5206 = vst [vmem:[#allocation2 + $0x68] sm:$0xff] %v5984_v5  ;;  %5208 = vst [vmem:[#allocation2 + $0x78] sm:$0xff] %v6112_v57  ;;  %4456 = vmatprep.mubr.bf16.mxu0 %v9859_v55  ;;  %5162 = vmatprep.mubr.bf16.mxu1 %v9859_v55 }
 0x425   :  { %v4188_v45 = vpop.f32.mrb[136].mxu0  ;;  %v4894_v23 = vpop.f32.mrb[136].mxu1 }
 0x426   :  { %v5985_v36 = vadd.f32 %v4188_v45, %v9991_v8  ;;  %v6113_v42 = vadd.f32 %v4894_v23, %v9995_v52  ;;  %v4190_v35 = vpop.f32.mrb[137].mxu0  ;;  %v4896_v15 = vpop.f32.mrb[137].mxu1 }
 0x427   :  { %v5986_v32 = vadd.f32 %v4190_v35, %v10001_v54  ;;  %v6114_v19 = vadd.f32 %v4896_v15, %v10005_v44  ;;  %v4192_v17 = vpop.f32.mrb[138].mxu0  ;;  %v4898_v1 = vpop.f32.mrb[138].mxu1 }
 0x428   :  { %5209 = vst [vmem:[#allocation2 + $0x80] sm:$0xff] %v5985_v36  ;;  %5211 = vst [vmem:[#allocation2 + $0x90] sm:$0xff] %v6113_v42  ;;  %v5987_v18 = vadd.f32 %v4192_v17, %v9991_v8  ;;  %v6115_v55 = vadd.f32 %v4898_v1, %v9995_v52  ;;  %v4194_v63 = vpop.f32.mrb[139].mxu0  ;;  %v4900_v14 = vpop.f32.mrb[139].mxu1 }
 0x429   :  { %5210 = vst [vmem:[#allocation2 + $0x88] sm:$0xff] %v5986_v32  ;;  %5212 = vst [vmem:[#allocation2 + $0x98] sm:$0xff] %v6114_v19  ;;  %v5988_v12 = vadd.f32 %v4194_v63, %v10001_v54  ;;  %v6116_v27 = vadd.f32 %v4900_v14, %v10005_v44 }
 0x42a   :  { %5213 = vst [vmem:[#allocation2 + $0xa0] sm:$0xff] %v5987_v18  ;;  %5215 = vst [vmem:[#allocation2 + $0xb0] sm:$0xff] %v6115_v55  ;;  %4457 = vmatmul.mubr.bf16.gmra.mrb[244].mxu0 %v9853_v21  ;;  %5163 = vmatmul.mubr.bf16.gmra.mrb[244].mxu1 %v9853_v21 }
 0x42b   :  { %5214 = vst [vmem:[#allocation2 + $0xa8] sm:$0xff] %v5988_v12  ;;  %5216 = vst [vmem:[#allocation2 + $0xb8] sm:$0xff] %v6116_v27  ;;  %4466 = vmatprep.mubr.bf16.mxu0 %v9868_v49  ;;  %5172 = vmatprep.mubr.bf16.mxu1 %v9868_v49 }
 0x42d   :  { %v4198_v30 = vpop.f32.mrb[140].mxu0  ;;  %v4904_v0 = vpop.f32.mrb[140].mxu1 }
 0x42e   :  { %v5989_v50 = vadd.f32 %v4198_v30, %v9991_v8  ;;  %v6117_v53 = vadd.f32 %v4904_v0, %v9995_v52  ;;  %v4200_v6 = vpop.f32.mrb[141].mxu0  ;;  %v4906_v13 = vpop.f32.mrb[141].mxu1 }
 0x42f   :  { %v5990_v26 = vadd.f32 %v4200_v6, %v10001_v54  ;;  %v6118_v20 = vadd.f32 %v4906_v13, %v10005_v44  ;;  %v4202_v46 = vpop.f32.mrb[142].mxu0  ;;  %v4908_v21 = vpop.f32.mrb[142].mxu1 }
 0x430   :  { %5217 = vst [vmem:[#allocation2 + $0xc0] sm:$0xff] %v5989_v50  ;;  %5219 = vst [vmem:[#allocation2 + $0xd0] sm:$0xff] %v6117_v53  ;;  %v5991_v59 = vadd.f32 %v4202_v46, %v9991_v8  ;;  %v6119_v49 = vadd.f32 %v4908_v21, %v9995_v52  ;;  %v4204_v47 = vpop.f32.mrb[143].mxu0  ;;  %v4910_v29 = vpop.f32.mrb[143].mxu1 }
 0x431   :  { %5218 = vst [vmem:[#allocation2 + $0xc8] sm:$0xff] %v5990_v26  ;;  %5220 = vst [vmem:[#allocation2 + $0xd8] sm:$0xff] %v6118_v20  ;;  %v5992_v39 = vadd.f32 %v4204_v47, %v10001_v54  ;;  %v6120_v48 = vadd.f32 %v4910_v29, %v10005_v44 }
 0x432   :  { %5221 = vst [vmem:[#allocation2 + $0xe0] sm:$0xff] %v5991_v59  ;;  %5223 = vst [vmem:[#allocation2 + $0xf0] sm:$0xff] %v6119_v49  ;;  %4467 = vmatmul.mubr.bf16.gmra.mrb[248].mxu0 %v9864_v40  ;;  %5173 = vmatmul.mubr.bf16.gmra.mrb[248].mxu1 %v9864_v40 }
 0x433   :  { %5222 = vst [vmem:[#allocation2 + $0xe8] sm:$0xff] %v5992_v39  ;;  %5224 = vst [vmem:[#allocation2 + $0xf8] sm:$0xff] %v6120_v48  ;;  %4476 = vmatprep.mubr.bf16.mxu0 %v9876_v25  ;;  %5182 = vmatprep.mubr.bf16.mxu1 %v9876_v25 }
 0x435   :  { %v4208_v56 = vpop.f32.mrb[144].mxu0  ;;  %v4914_v60 = vpop.f32.mrb[144].mxu1 }
 0x436   :  { %v5993_v11 = vadd.f32 %v4208_v56, %v9991_v8  ;;  %v6121_v7 = vadd.f32 %v4914_v60, %v9995_v52  ;;  %v4210_v38 = vpop.f32.mrb[145].mxu0  ;;  %v4916_v24 = vpop.f32.mrb[145].mxu1 }
 0x437   :  { %v5994_v34 = vadd.f32 %v4210_v38, %v10001_v54  ;;  %v6122_v41 = vadd.f32 %v4916_v24, %v10005_v44  ;;  %v4212_v43 = vpop.f32.mrb[146].mxu0  ;;  %v4918_v40 = vpop.f32.mrb[146].mxu1 }
 0x438   :  { %5225 = vst [vmem:[#allocation2 + $0x100] sm:$0xff] %v5993_v11  ;;  %5227 = vst [vmem:[#allocation2 + $0x110] sm:$0xff] %v6121_v7  ;;  %v5995_v31 = vadd.f32 %v4212_v43, %v9991_v8  ;;  %v6123_v25 = vadd.f32 %v4918_v40, %v9995_v52  ;;  %v4214_v3 = vpop.f32.mrb[147].mxu0  ;;  %v4920_v33 = vpop.f32.mrb[147].mxu1 }
 0x439   :  { %5226 = vst [vmem:[#allocation2 + $0x108] sm:$0xff] %v5994_v34  ;;  %5228 = vst [vmem:[#allocation2 + $0x118] sm:$0xff] %v6122_v41  ;;  %v5996_v9 = vadd.f32 %v4214_v3, %v10001_v54  ;;  %v6124_v62 = vadd.f32 %v4920_v33, %v10005_v44 }
 0x43a   :  { %5229 = vst [vmem:[#allocation2 + $0x120] sm:$0xff] %v5995_v31  ;;  %5231 = vst [vmem:[#allocation2 + $0x130] sm:$0xff] %v6123_v25  ;;  %4477 = vmatmul.mubr.bf16.gmra.mrb[252].mxu0 %v9872_v61  ;;  %5183 = vmatmul.mubr.bf16.gmra.mrb[252].mxu1 %v9872_v61 }
 0x43b   :  { %5230 = vst [vmem:[#allocation2 + $0x128] sm:$0xff] %v5996_v9  ;;  %5232 = vst [vmem:[#allocation2 + $0x138] sm:$0xff] %v6124_v62 }
 0x43d   :  { %v4218_v2 = vpop.f32.mrb[148].mxu0  ;;  %v4924_v10 = vpop.f32.mrb[148].mxu1 }
 0x43e   :  { %v5997_v37 = vadd.f32 %v4218_v2, %v9991_v8  ;;  %v6125_v51 = vadd.f32 %v4924_v10, %v9995_v52  ;;  %v4220_v16 = vpop.f32.mrb[149].mxu0  ;;  %v4926_v22 = vpop.f32.mrb[149].mxu1 }
 0x43f   :  { %v5998_v58 = vadd.f32 %v4220_v16, %v10001_v54  ;;  %v6126_v4 = vadd.f32 %v4926_v22, %v10005_v44  ;;  %v4222_v5 = vpop.f32.mrb[150].mxu0  ;;  %v4928_v57 = vpop.f32.mrb[150].mxu1 }
 0x440   :  { %5233 = vst [vmem:[#allocation2 + $0x140] sm:$0xff] %v5997_v37  ;;  %5235 = vst [vmem:[#allocation2 + $0x150] sm:$0xff] %v6125_v51  ;;  %v5999_v61 = vadd.f32 %v4222_v5, %v9991_v8  ;;  %v6127_v28 = vadd.f32 %v4928_v57, %v9995_v52  ;;  %v4224_v45 = vpop.f32.mrb[151].mxu0  ;;  %v4930_v23 = vpop.f32.mrb[151].mxu1 }
 0x441   :  { %5234 = vst [vmem:[#allocation2 + $0x148] sm:$0xff] %v5998_v58  ;;  %5236 = vst [vmem:[#allocation2 + $0x158] sm:$0xff] %v6126_v4  ;;  %v6000_v36 = vadd.f32 %v4224_v45, %v10001_v54  ;;  %v6128_v42 = vadd.f32 %v4930_v23, %v10005_v44 }
 0x442   :  { %5237 = vst [vmem:[#allocation2 + $0x160] sm:$0xff] %v5999_v61  ;;  %5239 = vst [vmem:[#allocation2 + $0x170] sm:$0xff] %v6127_v28 }
 0x443   :  { %5238 = vst [vmem:[#allocation2 + $0x168] sm:$0xff] %v6000_v36  ;;  %5240 = vst [vmem:[#allocation2 + $0x178] sm:$0xff] %v6128_v42 }
 0x445   :  { %v4228_v35 = vpop.f32.mrb[152].mxu0  ;;  %v4934_v15 = vpop.f32.mrb[152].mxu1 }
 0x446   :  { %v6001_v32 = vadd.f32 %v4228_v35, %v9991_v8  ;;  %v6129_v19 = vadd.f32 %v4934_v15, %v9995_v52  ;;  %v4230_v17 = vpop.f32.mrb[153].mxu0  ;;  %v4936_v1 = vpop.f32.mrb[153].mxu1 }
 0x447   :  { %v6002_v18 = vadd.f32 %v4230_v17, %v10001_v54  ;;  %v6130_v55 = vadd.f32 %v4936_v1, %v10005_v44  ;;  %v4232_v63 = vpop.f32.mrb[154].mxu0  ;;  %v4938_v14 = vpop.f32.mrb[154].mxu1 }
 0x448   :  { %5241 = vst [vmem:[#allocation2 + $0x180] sm:$0xff] %v6001_v32  ;;  %5243 = vst [vmem:[#allocation2 + $0x190] sm:$0xff] %v6129_v19  ;;  %v6003_v12 = vadd.f32 %v4232_v63, %v9991_v8  ;;  %v6131_v27 = vadd.f32 %v4938_v14, %v9995_v52  ;;  %v4234_v30 = vpop.f32.mrb[155].mxu0  ;;  %v4940_v0 = vpop.f32.mrb[155].mxu1 }
 0x449   :  { %5242 = vst [vmem:[#allocation2 + $0x188] sm:$0xff] %v6002_v18  ;;  %5244 = vst [vmem:[#allocation2 + $0x198] sm:$0xff] %v6130_v55  ;;  %v6004_v50 = vadd.f32 %v4234_v30, %v10001_v54  ;;  %v6132_v53 = vadd.f32 %v4940_v0, %v10005_v44 }
 0x44a   :  { %5245 = vst [vmem:[#allocation2 + $0x1a0] sm:$0xff] %v6003_v12  ;;  %5247 = vst [vmem:[#allocation2 + $0x1b0] sm:$0xff] %v6131_v27 }
 0x44b   :  { %5246 = vst [vmem:[#allocation2 + $0x1a8] sm:$0xff] %v6004_v50  ;;  %5248 = vst [vmem:[#allocation2 + $0x1b8] sm:$0xff] %v6132_v53 }
 0x44d   :  { %v4238_v6 = vpop.f32.mrb[156].mxu0  ;;  %v4944_v13 = vpop.f32.mrb[156].mxu1 }
 0x44e   :  { %v6005_v26 = vadd.f32 %v4238_v6, %v9991_v8  ;;  %v6133_v20 = vadd.f32 %v4944_v13, %v9995_v52  ;;  %v4240_v46 = vpop.f32.mrb[157].mxu0  ;;  %v4946_v21 = vpop.f32.mrb[157].mxu1 }
 0x44f   :  { %v6006_v59 = vadd.f32 %v4240_v46, %v10001_v54  ;;  %v6134_v49 = vadd.f32 %v4946_v21, %v10005_v44  ;;  %v4242_v47 = vpop.f32.mrb[158].mxu0  ;;  %v4948_v29 = vpop.f32.mrb[158].mxu1 }
 0x450   :  { %5249 = vst [vmem:[#allocation2 + $0x1c0] sm:$0xff] %v6005_v26  ;;  %5251 = vst [vmem:[#allocation2 + $0x1d0] sm:$0xff] %v6133_v20  ;;  %v6007_v39 = vadd.f32 %v4242_v47, %v9991_v8  ;;  %v6135_v48 = vadd.f32 %v4948_v29, %v9995_v52  ;;  %v4244_v56 = vpop.f32.mrb[159].mxu0  ;;  %v4950_v60 = vpop.f32.mrb[159].mxu1 }
 0x451   :  { %5250 = vst [vmem:[#allocation2 + $0x1c8] sm:$0xff] %v6006_v59  ;;  %5252 = vst [vmem:[#allocation2 + $0x1d8] sm:$0xff] %v6134_v49  ;;  %v6008_v11 = vadd.f32 %v4244_v56, %v10001_v54  ;;  %v6136_v7 = vadd.f32 %v4950_v60, %v10005_v44 }
 0x452   :  { %5253 = vst [vmem:[#allocation2 + $0x1e0] sm:$0xff] %v6007_v39  ;;  %5255 = vst [vmem:[#allocation2 + $0x1f0] sm:$0xff] %v6135_v48 }
 0x453   :  { %5254 = vst [vmem:[#allocation2 + $0x1e8] sm:$0xff] %v6008_v11  ;;  %5256 = vst [vmem:[#allocation2 + $0x1f8] sm:$0xff] %v6136_v7 }
 0x455   :  { %v4248_v38 = vpop.f32.mrb[160].mxu0  ;;  %v4954_v24 = vpop.f32.mrb[160].mxu1 }
 0x456   :  { %v6009_v34 = vadd.f32 %v4248_v38, %v9991_v8  ;;  %v6137_v41 = vadd.f32 %v4954_v24, %v9995_v52  ;;  %v4250_v43 = vpop.f32.mrb[161].mxu0  ;;  %v4956_v40 = vpop.f32.mrb[161].mxu1 }
 0x457   :  { %v6010_v31 = vadd.f32 %v4250_v43, %v10001_v54  ;;  %v6138_v25 = vadd.f32 %v4956_v40, %v10005_v44  ;;  %v4252_v3 = vpop.f32.mrb[162].mxu0  ;;  %v4958_v33 = vpop.f32.mrb[162].mxu1 }
 0x458   :  { %5257 = vst [vmem:[#allocation2 + $0x200] sm:$0xff] %v6009_v34  ;;  %5259 = vst [vmem:[#allocation2 + $0x210] sm:$0xff] %v6137_v41  ;;  %v6011_v9 = vadd.f32 %v4252_v3, %v9991_v8  ;;  %v6139_v62 = vadd.f32 %v4958_v33, %v9995_v52  ;;  %v4254_v2 = vpop.f32.mrb[163].mxu0  ;;  %v4960_v10 = vpop.f32.mrb[163].mxu1 }
 0x459   :  { %5258 = vst [vmem:[#allocation2 + $0x208] sm:$0xff] %v6010_v31  ;;  %5260 = vst [vmem:[#allocation2 + $0x218] sm:$0xff] %v6138_v25  ;;  %v6012_v37 = vadd.f32 %v4254_v2, %v10001_v54  ;;  %v6140_v51 = vadd.f32 %v4960_v10, %v10005_v44 }
 0x45a   :  { %5261 = vst [vmem:[#allocation2 + $0x220] sm:$0xff] %v6011_v9  ;;  %5263 = vst [vmem:[#allocation2 + $0x230] sm:$0xff] %v6139_v62 }
 0x45b   :  { %5262 = vst [vmem:[#allocation2 + $0x228] sm:$0xff] %v6012_v37  ;;  %5264 = vst [vmem:[#allocation2 + $0x238] sm:$0xff] %v6140_v51 }
 0x45d   :  { %v4258_v16 = vpop.f32.mrb[164].mxu0  ;;  %v4964_v22 = vpop.f32.mrb[164].mxu1 }
 0x45e   :  { %v6013_v58 = vadd.f32 %v4258_v16, %v9991_v8  ;;  %v6141_v4 = vadd.f32 %v4964_v22, %v9995_v52  ;;  %v4260_v5 = vpop.f32.mrb[165].mxu0  ;;  %v4966_v57 = vpop.f32.mrb[165].mxu1 }
 0x45f   :  { %v6014_v61 = vadd.f32 %v4260_v5, %v10001_v54  ;;  %v6142_v28 = vadd.f32 %v4966_v57, %v10005_v44  ;;  %v4262_v45 = vpop.f32.mrb[166].mxu0  ;;  %v4968_v23 = vpop.f32.mrb[166].mxu1 }
 0x460   :  { %5265 = vst [vmem:[#allocation2 + $0x240] sm:$0xff] %v6013_v58  ;;  %5267 = vst [vmem:[#allocation2 + $0x250] sm:$0xff] %v6141_v4  ;;  %v6015_v36 = vadd.f32 %v4262_v45, %v9991_v8  ;;  %v6143_v42 = vadd.f32 %v4968_v23, %v9995_v52  ;;  %v4264_v35 = vpop.f32.mrb[167].mxu0  ;;  %v4970_v15 = vpop.f32.mrb[167].mxu1 }
 0x461   :  { %5266 = vst [vmem:[#allocation2 + $0x248] sm:$0xff] %v6014_v61  ;;  %5268 = vst [vmem:[#allocation2 + $0x258] sm:$0xff] %v6142_v28  ;;  %v6016_v32 = vadd.f32 %v4264_v35, %v10001_v54  ;;  %v6144_v19 = vadd.f32 %v4970_v15, %v10005_v44 }
 0x462   :  { %5269 = vst [vmem:[#allocation2 + $0x260] sm:$0xff] %v6015_v36  ;;  %5271 = vst [vmem:[#allocation2 + $0x270] sm:$0xff] %v6143_v42 }
 0x463   :  { %5270 = vst [vmem:[#allocation2 + $0x268] sm:$0xff] %v6016_v32  ;;  %5272 = vst [vmem:[#allocation2 + $0x278] sm:$0xff] %v6144_v19 }
 0x465   :  { %v4268_v17 = vpop.f32.mrb[168].mxu0  ;;  %v4974_v1 = vpop.f32.mrb[168].mxu1 }
 0x466   :  { %v6017_v18 = vadd.f32 %v4268_v17, %v9991_v8  ;;  %v6145_v55 = vadd.f32 %v4974_v1, %v9995_v52  ;;  %v4270_v63 = vpop.f32.mrb[169].mxu0  ;;  %v4976_v14 = vpop.f32.mrb[169].mxu1 }
 0x467   :  { %v6018_v12 = vadd.f32 %v4270_v63, %v10001_v54  ;;  %v6146_v27 = vadd.f32 %v4976_v14, %v10005_v44  ;;  %v4272_v30 = vpop.f32.mrb[170].mxu0  ;;  %v4978_v0 = vpop.f32.mrb[170].mxu1 }
 0x468   :  { %5273 = vst [vmem:[#allocation2 + $0x280] sm:$0xff] %v6017_v18  ;;  %5275 = vst [vmem:[#allocation2 + $0x290] sm:$0xff] %v6145_v55  ;;  %v6019_v50 = vadd.f32 %v4272_v30, %v9991_v8  ;;  %v6147_v53 = vadd.f32 %v4978_v0, %v9995_v52  ;;  %v4274_v6 = vpop.f32.mrb[171].mxu0  ;;  %v4980_v13 = vpop.f32.mrb[171].mxu1 }
 0x469   :  { %5274 = vst [vmem:[#allocation2 + $0x288] sm:$0xff] %v6018_v12  ;;  %5276 = vst [vmem:[#allocation2 + $0x298] sm:$0xff] %v6146_v27  ;;  %v6020_v26 = vadd.f32 %v4274_v6, %v10001_v54  ;;  %v6148_v20 = vadd.f32 %v4980_v13, %v10005_v44 }
 0x46a   :  { %5277 = vst [vmem:[#allocation2 + $0x2a0] sm:$0xff] %v6019_v50  ;;  %5279 = vst [vmem:[#allocation2 + $0x2b0] sm:$0xff] %v6147_v53 }
 0x46b   :  { %5278 = vst [vmem:[#allocation2 + $0x2a8] sm:$0xff] %v6020_v26  ;;  %5280 = vst [vmem:[#allocation2 + $0x2b8] sm:$0xff] %v6148_v20 }
 0x46d   :  { %v4278_v46 = vpop.f32.mrb[172].mxu0  ;;  %v4984_v21 = vpop.f32.mrb[172].mxu1 }
 0x46e   :  { %v6021_v59 = vadd.f32 %v4278_v46, %v9991_v8  ;;  %v6149_v49 = vadd.f32 %v4984_v21, %v9995_v52  ;;  %v4280_v47 = vpop.f32.mrb[173].mxu0  ;;  %v4986_v29 = vpop.f32.mrb[173].mxu1 }
 0x46f   :  { %v6022_v39 = vadd.f32 %v4280_v47, %v10001_v54  ;;  %v6150_v48 = vadd.f32 %v4986_v29, %v10005_v44  ;;  %v4282_v56 = vpop.f32.mrb[174].mxu0  ;;  %v4988_v60 = vpop.f32.mrb[174].mxu1 }
 0x470   :  { %5281 = vst [vmem:[#allocation2 + $0x2c0] sm:$0xff] %v6021_v59  ;;  %5283 = vst [vmem:[#allocation2 + $0x2d0] sm:$0xff] %v6149_v49  ;;  %v6023_v11 = vadd.f32 %v4282_v56, %v9991_v8  ;;  %v6151_v7 = vadd.f32 %v4988_v60, %v9995_v52  ;;  %v4284_v38 = vpop.f32.mrb[175].mxu0  ;;  %v4990_v24 = vpop.f32.mrb[175].mxu1 }
 0x471   :  { %5282 = vst [vmem:[#allocation2 + $0x2c8] sm:$0xff] %v6022_v39  ;;  %5284 = vst [vmem:[#allocation2 + $0x2d8] sm:$0xff] %v6150_v48  ;;  %v6024_v34 = vadd.f32 %v4284_v38, %v10001_v54  ;;  %v6152_v41 = vadd.f32 %v4990_v24, %v10005_v44 }
 0x472   :  { %5285 = vst [vmem:[#allocation2 + $0x2e0] sm:$0xff] %v6023_v11  ;;  %5287 = vst [vmem:[#allocation2 + $0x2f0] sm:$0xff] %v6151_v7 }
 0x473   :  { %5286 = vst [vmem:[#allocation2 + $0x2e8] sm:$0xff] %v6024_v34  ;;  %5288 = vst [vmem:[#allocation2 + $0x2f8] sm:$0xff] %v6152_v41 }
 0x475   :  { %v4288_v43 = vpop.f32.mrb[176].mxu0  ;;  %v4994_v40 = vpop.f32.mrb[176].mxu1 }
 0x476   :  { %v6025_v31 = vadd.f32 %v4288_v43, %v9991_v8  ;;  %v6153_v25 = vadd.f32 %v4994_v40, %v9995_v52  ;;  %v4290_v3 = vpop.f32.mrb[177].mxu0  ;;  %v4996_v33 = vpop.f32.mrb[177].mxu1 }
 0x477   :  { %v6026_v9 = vadd.f32 %v4290_v3, %v10001_v54  ;;  %v6154_v62 = vadd.f32 %v4996_v33, %v10005_v44  ;;  %v4292_v2 = vpop.f32.mrb[178].mxu0  ;;  %v4998_v10 = vpop.f32.mrb[178].mxu1 }
 0x478   :  { %5289 = vst [vmem:[#allocation2 + $0x300] sm:$0xff] %v6025_v31  ;;  %5291 = vst [vmem:[#allocation2 + $0x310] sm:$0xff] %v6153_v25  ;;  %v6027_v37 = vadd.f32 %v4292_v2, %v9991_v8  ;;  %v6155_v51 = vadd.f32 %v4998_v10, %v9995_v52  ;;  %v4294_v16 = vpop.f32.mrb[179].mxu0  ;;  %v5000_v22 = vpop.f32.mrb[179].mxu1 }
 0x479   :  { %5290 = vst [vmem:[#allocation2 + $0x308] sm:$0xff] %v6026_v9  ;;  %5292 = vst [vmem:[#allocation2 + $0x318] sm:$0xff] %v6154_v62  ;;  %v6028_v58 = vadd.f32 %v4294_v16, %v10001_v54  ;;  %v6156_v4 = vadd.f32 %v5000_v22, %v10005_v44 }
 0x47a   :  { %5293 = vst [vmem:[#allocation2 + $0x320] sm:$0xff] %v6027_v37  ;;  %5295 = vst [vmem:[#allocation2 + $0x330] sm:$0xff] %v6155_v51 }
 0x47b   :  { %5294 = vst [vmem:[#allocation2 + $0x328] sm:$0xff] %v6028_v58  ;;  %5296 = vst [vmem:[#allocation2 + $0x338] sm:$0xff] %v6156_v4 }
 0x47d   :  { %v4298_v5 = vpop.f32.mrb[180].mxu0  ;;  %v5004_v57 = vpop.f32.mrb[180].mxu1 }
 0x47e   :  { %v6029_v61 = vadd.f32 %v4298_v5, %v9991_v8  ;;  %v6157_v28 = vadd.f32 %v5004_v57, %v9995_v52  ;;  %v4300_v45 = vpop.f32.mrb[181].mxu0  ;;  %v5006_v23 = vpop.f32.mrb[181].mxu1 }
 0x47f   :  { %v6030_v36 = vadd.f32 %v4300_v45, %v10001_v54  ;;  %v6158_v42 = vadd.f32 %v5006_v23, %v10005_v44  ;;  %v4302_v35 = vpop.f32.mrb[182].mxu0  ;;  %v5008_v15 = vpop.f32.mrb[182].mxu1 }
 0x480   :  { %5297 = vst [vmem:[#allocation2 + $0x340] sm:$0xff] %v6029_v61  ;;  %5299 = vst [vmem:[#allocation2 + $0x350] sm:$0xff] %v6157_v28  ;;  %v6031_v32 = vadd.f32 %v4302_v35, %v9991_v8  ;;  %v6159_v19 = vadd.f32 %v5008_v15, %v9995_v52  ;;  %v4304_v17 = vpop.f32.mrb[183].mxu0  ;;  %v5010_v1 = vpop.f32.mrb[183].mxu1 }
 0x481   :  { %5298 = vst [vmem:[#allocation2 + $0x348] sm:$0xff] %v6030_v36  ;;  %5300 = vst [vmem:[#allocation2 + $0x358] sm:$0xff] %v6158_v42  ;;  %v6032_v18 = vadd.f32 %v4304_v17, %v10001_v54  ;;  %v6160_v55 = vadd.f32 %v5010_v1, %v10005_v44 }
 0x482   :  { %5301 = vst [vmem:[#allocation2 + $0x360] sm:$0xff] %v6031_v32  ;;  %5303 = vst [vmem:[#allocation2 + $0x370] sm:$0xff] %v6159_v19 }
 0x483   :  { %5302 = vst [vmem:[#allocation2 + $0x368] sm:$0xff] %v6032_v18  ;;  %5304 = vst [vmem:[#allocation2 + $0x378] sm:$0xff] %v6160_v55 }
 0x485   :  { %v4308_v63 = vpop.f32.mrb[184].mxu0  ;;  %v5014_v14 = vpop.f32.mrb[184].mxu1 }
 0x486   :  { %v6033_v12 = vadd.f32 %v4308_v63, %v9991_v8  ;;  %v6161_v27 = vadd.f32 %v5014_v14, %v9995_v52  ;;  %v4310_v30 = vpop.f32.mrb[185].mxu0  ;;  %v5016_v0 = vpop.f32.mrb[185].mxu1 }
 0x487   :  { %v6034_v50 = vadd.f32 %v4310_v30, %v10001_v54  ;;  %v6162_v53 = vadd.f32 %v5016_v0, %v10005_v44  ;;  %v4312_v6 = vpop.f32.mrb[186].mxu0  ;;  %v5018_v13 = vpop.f32.mrb[186].mxu1 }
 0x488   :  { %5305 = vst [vmem:[#allocation2 + $0x380] sm:$0xff] %v6033_v12  ;;  %5307 = vst [vmem:[#allocation2 + $0x390] sm:$0xff] %v6161_v27  ;;  %v6035_v26 = vadd.f32 %v4312_v6, %v9991_v8  ;;  %v6163_v20 = vadd.f32 %v5018_v13, %v9995_v52  ;;  %v4314_v46 = vpop.f32.mrb[187].mxu0  ;;  %v5020_v21 = vpop.f32.mrb[187].mxu1 }
 0x489   :  { %5306 = vst [vmem:[#allocation2 + $0x388] sm:$0xff] %v6034_v50  ;;  %5308 = vst [vmem:[#allocation2 + $0x398] sm:$0xff] %v6162_v53  ;;  %v6036_v59 = vadd.f32 %v4314_v46, %v10001_v54  ;;  %v6164_v49 = vadd.f32 %v5020_v21, %v10005_v44 }
 0x48a   :  { %5309 = vst [vmem:[#allocation2 + $0x3a0] sm:$0xff] %v6035_v26  ;;  %5311 = vst [vmem:[#allocation2 + $0x3b0] sm:$0xff] %v6163_v20 }
 0x48b   :  { %5310 = vst [vmem:[#allocation2 + $0x3a8] sm:$0xff] %v6036_v59  ;;  %5312 = vst [vmem:[#allocation2 + $0x3b8] sm:$0xff] %v6164_v49 }
 0x48d   :  { %v4318_v47 = vpop.f32.mrb[188].mxu0  ;;  %v5024_v29 = vpop.f32.mrb[188].mxu1 }
 0x48e   :  { %v6037_v39 = vadd.f32 %v4318_v47, %v9991_v8  ;;  %v6165_v48 = vadd.f32 %v5024_v29, %v9995_v52  ;;  %v4320_v56 = vpop.f32.mrb[189].mxu0  ;;  %v5026_v60 = vpop.f32.mrb[189].mxu1 }
 0x48f   :  { %v6038_v11 = vadd.f32 %v4320_v56, %v10001_v54  ;;  %v6166_v7 = vadd.f32 %v5026_v60, %v10005_v44  ;;  %v4322_v38 = vpop.f32.mrb[190].mxu0  ;;  %v5028_v24 = vpop.f32.mrb[190].mxu1 }
 0x490   :  { %5313 = vst [vmem:[#allocation2 + $0x3c0] sm:$0xff] %v6037_v39  ;;  %5315 = vst [vmem:[#allocation2 + $0x3d0] sm:$0xff] %v6165_v48  ;;  %v6039_v34 = vadd.f32 %v4322_v38, %v9991_v8  ;;  %v6167_v41 = vadd.f32 %v5028_v24, %v9995_v52  ;;  %v4324_v43 = vpop.f32.mrb[191].mxu0  ;;  %v5030_v40 = vpop.f32.mrb[191].mxu1 }
 0x491   :  { %5314 = vst [vmem:[#allocation2 + $0x3c8] sm:$0xff] %v6038_v11  ;;  %5316 = vst [vmem:[#allocation2 + $0x3d8] sm:$0xff] %v6166_v7  ;;  %v6040_v31 = vadd.f32 %v4324_v43, %v10001_v54  ;;  %v6168_v25 = vadd.f32 %v5030_v40, %v10005_v44 }
 0x492   :  { %5317 = vst [vmem:[#allocation2 + $0x3e0] sm:$0xff] %v6039_v34  ;;  %5319 = vst [vmem:[#allocation2 + $0x3f0] sm:$0xff] %v6167_v41 }
 0x493   :  { %5318 = vst [vmem:[#allocation2 + $0x3e8] sm:$0xff] %v6040_v31  ;;  %5320 = vst [vmem:[#allocation2 + $0x3f8] sm:$0xff] %v6168_v25 }
 0x495   :  { %v4328_v3 = vpop.f32.mrb[192].mxu0  ;;  %v5034_v33 = vpop.f32.mrb[192].mxu1 }
 0x496   :  { %v6041_v9 = vadd.f32 %v4328_v3, %v9991_v8  ;;  %v6169_v62 = vadd.f32 %v5034_v33, %v9995_v52  ;;  %v4330_v2 = vpop.f32.mrb[193].mxu0  ;;  %v5036_v10 = vpop.f32.mrb[193].mxu1 }
 0x497   :  { %v6042_v37 = vadd.f32 %v4330_v2, %v10001_v54  ;;  %v6170_v51 = vadd.f32 %v5036_v10, %v10005_v44  ;;  %v4332_v16 = vpop.f32.mrb[194].mxu0  ;;  %v5038_v22 = vpop.f32.mrb[194].mxu1 }
 0x498   :  { %5321 = vst [vmem:[#allocation2 + $0x400] sm:$0xff] %v6041_v9  ;;  %5323 = vst [vmem:[#allocation2 + $0x410] sm:$0xff] %v6169_v62  ;;  %v6043_v58 = vadd.f32 %v4332_v16, %v9991_v8  ;;  %v6171_v4 = vadd.f32 %v5038_v22, %v9995_v52  ;;  %v4334_v5 = vpop.f32.mrb[195].mxu0  ;;  %v5040_v57 = vpop.f32.mrb[195].mxu1 }
 0x499   :  { %5322 = vst [vmem:[#allocation2 + $0x408] sm:$0xff] %v6042_v37  ;;  %5324 = vst [vmem:[#allocation2 + $0x418] sm:$0xff] %v6170_v51  ;;  %v6044_v61 = vadd.f32 %v4334_v5, %v10001_v54  ;;  %v6172_v28 = vadd.f32 %v5040_v57, %v10005_v44 }
 0x49a   :  { %5325 = vst [vmem:[#allocation2 + $0x420] sm:$0xff] %v6043_v58  ;;  %5327 = vst [vmem:[#allocation2 + $0x430] sm:$0xff] %v6171_v4 }
 0x49b   :  { %5326 = vst [vmem:[#allocation2 + $0x428] sm:$0xff] %v6044_v61  ;;  %5328 = vst [vmem:[#allocation2 + $0x438] sm:$0xff] %v6172_v28 }
 0x49d   :  { %v4338_v45 = vpop.f32.mrb[196].mxu0  ;;  %v5044_v23 = vpop.f32.mrb[196].mxu1 }
 0x49e   :  { %v6045_v36 = vadd.f32 %v4338_v45, %v9991_v8  ;;  %v6173_v42 = vadd.f32 %v5044_v23, %v9995_v52  ;;  %v4340_v35 = vpop.f32.mrb[197].mxu0  ;;  %v5046_v15 = vpop.f32.mrb[197].mxu1 }
 0x49f   :  { %v6046_v32 = vadd.f32 %v4340_v35, %v10001_v54  ;;  %v6174_v19 = vadd.f32 %v5046_v15, %v10005_v44  ;;  %v4342_v17 = vpop.f32.mrb[198].mxu0  ;;  %v5048_v1 = vpop.f32.mrb[198].mxu1 }
 0x4a0   :  { %5329 = vst [vmem:[#allocation2 + $0x440] sm:$0xff] %v6045_v36  ;;  %5331 = vst [vmem:[#allocation2 + $0x450] sm:$0xff] %v6173_v42  ;;  %v6047_v18 = vadd.f32 %v4342_v17, %v9991_v8  ;;  %v6175_v55 = vadd.f32 %v5048_v1, %v9995_v52  ;;  %v4344_v63 = vpop.f32.mrb[199].mxu0  ;;  %v5050_v14 = vpop.f32.mrb[199].mxu1 }
 0x4a1   :  { %5330 = vst [vmem:[#allocation2 + $0x448] sm:$0xff] %v6046_v32  ;;  %5332 = vst [vmem:[#allocation2 + $0x458] sm:$0xff] %v6174_v19  ;;  %v6048_v12 = vadd.f32 %v4344_v63, %v10001_v54  ;;  %v6176_v27 = vadd.f32 %v5050_v14, %v10005_v44 }
 0x4a2   :  { %5333 = vst [vmem:[#allocation2 + $0x460] sm:$0xff] %v6047_v18  ;;  %5335 = vst [vmem:[#allocation2 + $0x470] sm:$0xff] %v6175_v55 }
 0x4a3   :  { %5334 = vst [vmem:[#allocation2 + $0x468] sm:$0xff] %v6048_v12  ;;  %5336 = vst [vmem:[#allocation2 + $0x478] sm:$0xff] %v6176_v27 }
 0x4a5   :  { %v4348_v30 = vpop.f32.mrb[200].mxu0  ;;  %v5054_v0 = vpop.f32.mrb[200].mxu1 }
 0x4a6   :  { %v6049_v50 = vadd.f32 %v4348_v30, %v9991_v8  ;;  %v6177_v53 = vadd.f32 %v5054_v0, %v9995_v52  ;;  %v4350_v6 = vpop.f32.mrb[201].mxu0  ;;  %v5056_v13 = vpop.f32.mrb[201].mxu1 }
 0x4a7   :  { %v6050_v26 = vadd.f32 %v4350_v6, %v10001_v54  ;;  %v6178_v20 = vadd.f32 %v5056_v13, %v10005_v44  ;;  %v4352_v46 = vpop.f32.mrb[202].mxu0  ;;  %v5058_v21 = vpop.f32.mrb[202].mxu1 }
 0x4a8   :  { %5337 = vst [vmem:[#allocation2 + $0x480] sm:$0xff] %v6049_v50  ;;  %5339 = vst [vmem:[#allocation2 + $0x490] sm:$0xff] %v6177_v53  ;;  %v6051_v59 = vadd.f32 %v4352_v46, %v9991_v8  ;;  %v6179_v49 = vadd.f32 %v5058_v21, %v9995_v52  ;;  %v4354_v47 = vpop.f32.mrb[203].mxu0  ;;  %v5060_v29 = vpop.f32.mrb[203].mxu1 }
 0x4a9   :  { %5338 = vst [vmem:[#allocation2 + $0x488] sm:$0xff] %v6050_v26  ;;  %5340 = vst [vmem:[#allocation2 + $0x498] sm:$0xff] %v6178_v20  ;;  %v6052_v39 = vadd.f32 %v4354_v47, %v10001_v54  ;;  %v6180_v48 = vadd.f32 %v5060_v29, %v10005_v44 }
 0x4aa   :  { %5341 = vst [vmem:[#allocation2 + $0x4a0] sm:$0xff] %v6051_v59  ;;  %5343 = vst [vmem:[#allocation2 + $0x4b0] sm:$0xff] %v6179_v49 }
 0x4ab   :  { %5342 = vst [vmem:[#allocation2 + $0x4a8] sm:$0xff] %v6052_v39  ;;  %5344 = vst [vmem:[#allocation2 + $0x4b8] sm:$0xff] %v6180_v48 }
 0x4ad   :  { %v4358_v56 = vpop.f32.mrb[204].mxu0  ;;  %v5064_v60 = vpop.f32.mrb[204].mxu1 }
 0x4ae   :  { %v6053_v11 = vadd.f32 %v4358_v56, %v9991_v8  ;;  %v6181_v7 = vadd.f32 %v5064_v60, %v9995_v52  ;;  %v4360_v38 = vpop.f32.mrb[205].mxu0  ;;  %v5066_v24 = vpop.f32.mrb[205].mxu1 }
 0x4af   :  { %v6054_v34 = vadd.f32 %v4360_v38, %v10001_v54  ;;  %v6182_v41 = vadd.f32 %v5066_v24, %v10005_v44  ;;  %v4362_v43 = vpop.f32.mrb[206].mxu0  ;;  %v5068_v40 = vpop.f32.mrb[206].mxu1 }
 0x4b0   :  { %5345 = vst [vmem:[#allocation2 + $0x4c0] sm:$0xff] %v6053_v11  ;;  %5347 = vst [vmem:[#allocation2 + $0x4d0] sm:$0xff] %v6181_v7  ;;  %v6055_v31 = vadd.f32 %v4362_v43, %v9991_v8  ;;  %v6183_v25 = vadd.f32 %v5068_v40, %v9995_v52  ;;  %v4364_v3 = vpop.f32.mrb[207].mxu0  ;;  %v5070_v33 = vpop.f32.mrb[207].mxu1 }
 0x4b1   :  { %5346 = vst [vmem:[#allocation2 + $0x4c8] sm:$0xff] %v6054_v34  ;;  %5348 = vst [vmem:[#allocation2 + $0x4d8] sm:$0xff] %v6182_v41  ;;  %v6056_v9 = vadd.f32 %v4364_v3, %v10001_v54  ;;  %v6184_v62 = vadd.f32 %v5070_v33, %v10005_v44 }
 0x4b2   :  { %5349 = vst [vmem:[#allocation2 + $0x4e0] sm:$0xff] %v6055_v31  ;;  %5351 = vst [vmem:[#allocation2 + $0x4f0] sm:$0xff] %v6183_v25 }
 0x4b3   :  { %5350 = vst [vmem:[#allocation2 + $0x4e8] sm:$0xff] %v6056_v9  ;;  %5352 = vst [vmem:[#allocation2 + $0x4f8] sm:$0xff] %v6184_v62 }
 0x4b5   :  { %v4368_v2 = vpop.f32.mrb[208].mxu0  ;;  %v5074_v10 = vpop.f32.mrb[208].mxu1 }
 0x4b6   :  { %v6057_v37 = vadd.f32 %v4368_v2, %v9991_v8  ;;  %v6185_v51 = vadd.f32 %v5074_v10, %v9995_v52  ;;  %v4370_v16 = vpop.f32.mrb[209].mxu0  ;;  %v5076_v22 = vpop.f32.mrb[209].mxu1 }
 0x4b7   :  { %v6058_v58 = vadd.f32 %v4370_v16, %v10001_v54  ;;  %v6186_v4 = vadd.f32 %v5076_v22, %v10005_v44  ;;  %v4372_v5 = vpop.f32.mrb[210].mxu0  ;;  %v5078_v57 = vpop.f32.mrb[210].mxu1 }
 0x4b8   :  { %5353 = vst [vmem:[#allocation2 + $0x500] sm:$0xff] %v6057_v37  ;;  %5355 = vst [vmem:[#allocation2 + $0x510] sm:$0xff] %v6185_v51  ;;  %v6059_v61 = vadd.f32 %v4372_v5, %v9991_v8  ;;  %v6187_v28 = vadd.f32 %v5078_v57, %v9995_v52  ;;  %v4374_v45 = vpop.f32.mrb[211].mxu0  ;;  %v5080_v23 = vpop.f32.mrb[211].mxu1 }
 0x4b9   :  { %5354 = vst [vmem:[#allocation2 + $0x508] sm:$0xff] %v6058_v58  ;;  %5356 = vst [vmem:[#allocation2 + $0x518] sm:$0xff] %v6186_v4  ;;  %v6060_v36 = vadd.f32 %v4374_v45, %v10001_v54  ;;  %v6188_v42 = vadd.f32 %v5080_v23, %v10005_v44 }
 0x4ba   :  { %5357 = vst [vmem:[#allocation2 + $0x520] sm:$0xff] %v6059_v61  ;;  %5359 = vst [vmem:[#allocation2 + $0x530] sm:$0xff] %v6187_v28 }
 0x4bb   :  { %5358 = vst [vmem:[#allocation2 + $0x528] sm:$0xff] %v6060_v36  ;;  %5360 = vst [vmem:[#allocation2 + $0x538] sm:$0xff] %v6188_v42 }
 0x4bd   :  { %v4378_v35 = vpop.f32.mrb[212].mxu0  ;;  %v5084_v15 = vpop.f32.mrb[212].mxu1 }
 0x4be   :  { %v6061_v32 = vadd.f32 %v4378_v35, %v9991_v8  ;;  %v6189_v19 = vadd.f32 %v5084_v15, %v9995_v52  ;;  %v4380_v17 = vpop.f32.mrb[213].mxu0  ;;  %v5086_v1 = vpop.f32.mrb[213].mxu1 }
 0x4bf   :  { %v6062_v18 = vadd.f32 %v4380_v17, %v10001_v54  ;;  %v6190_v55 = vadd.f32 %v5086_v1, %v10005_v44  ;;  %v4382_v63 = vpop.f32.mrb[214].mxu0  ;;  %v5088_v14 = vpop.f32.mrb[214].mxu1 }
 0x4c0   :  { %5361 = vst [vmem:[#allocation2 + $0x540] sm:$0xff] %v6061_v32  ;;  %5363 = vst [vmem:[#allocation2 + $0x550] sm:$0xff] %v6189_v19  ;;  %v6063_v12 = vadd.f32 %v4382_v63, %v9991_v8  ;;  %v6191_v27 = vadd.f32 %v5088_v14, %v9995_v52  ;;  %v4384_v30 = vpop.f32.mrb[215].mxu0  ;;  %v5090_v0 = vpop.f32.mrb[215].mxu1 }
 0x4c1   :  { %5362 = vst [vmem:[#allocation2 + $0x548] sm:$0xff] %v6062_v18  ;;  %5364 = vst [vmem:[#allocation2 + $0x558] sm:$0xff] %v6190_v55  ;;  %v6064_v50 = vadd.f32 %v4384_v30, %v10001_v54  ;;  %v6192_v53 = vadd.f32 %v5090_v0, %v10005_v44 }
 0x4c2   :  { %5365 = vst [vmem:[#allocation2 + $0x560] sm:$0xff] %v6063_v12  ;;  %5367 = vst [vmem:[#allocation2 + $0x570] sm:$0xff] %v6191_v27 }
 0x4c3   :  { %5366 = vst [vmem:[#allocation2 + $0x568] sm:$0xff] %v6064_v50  ;;  %5368 = vst [vmem:[#allocation2 + $0x578] sm:$0xff] %v6192_v53 }
 0x4c5   :  { %v4388_v6 = vpop.f32.mrb[216].mxu0  ;;  %v5094_v13 = vpop.f32.mrb[216].mxu1 }
 0x4c6   :  { %v6065_v26 = vadd.f32 %v4388_v6, %v9991_v8  ;;  %v6193_v20 = vadd.f32 %v5094_v13, %v9995_v52  ;;  %v4390_v46 = vpop.f32.mrb[217].mxu0  ;;  %v5096_v21 = vpop.f32.mrb[217].mxu1 }
 0x4c7   :  { %v6066_v59 = vadd.f32 %v4390_v46, %v10001_v54  ;;  %v6194_v49 = vadd.f32 %v5096_v21, %v10005_v44  ;;  %v4392_v47 = vpop.f32.mrb[218].mxu0  ;;  %v5098_v29 = vpop.f32.mrb[218].mxu1 }
 0x4c8   :  { %5369 = vst [vmem:[#allocation2 + $0x580] sm:$0xff] %v6065_v26  ;;  %5371 = vst [vmem:[#allocation2 + $0x590] sm:$0xff] %v6193_v20  ;;  %v6067_v39 = vadd.f32 %v4392_v47, %v9991_v8  ;;  %v6195_v48 = vadd.f32 %v5098_v29, %v9995_v52  ;;  %v4394_v56 = vpop.f32.mrb[219].mxu0  ;;  %v5100_v60 = vpop.f32.mrb[219].mxu1 }
 0x4c9   :  { %5370 = vst [vmem:[#allocation2 + $0x588] sm:$0xff] %v6066_v59  ;;  %5372 = vst [vmem:[#allocation2 + $0x598] sm:$0xff] %v6194_v49  ;;  %v6068_v11 = vadd.f32 %v4394_v56, %v10001_v54  ;;  %v6196_v7 = vadd.f32 %v5100_v60, %v10005_v44 }
 0x4ca   :  { %5373 = vst [vmem:[#allocation2 + $0x5a0] sm:$0xff] %v6067_v39  ;;  %5375 = vst [vmem:[#allocation2 + $0x5b0] sm:$0xff] %v6195_v48 }
 0x4cb   :  { %5374 = vst [vmem:[#allocation2 + $0x5a8] sm:$0xff] %v6068_v11  ;;  %5376 = vst [vmem:[#allocation2 + $0x5b8] sm:$0xff] %v6196_v7 }
 0x4cd   :  { %v4398_v38 = vpop.f32.mrb[220].mxu0  ;;  %v5104_v24 = vpop.f32.mrb[220].mxu1 }
 0x4ce   :  { %v6069_v34 = vadd.f32 %v4398_v38, %v9991_v8  ;;  %v6197_v41 = vadd.f32 %v5104_v24, %v9995_v52  ;;  %v4400_v43 = vpop.f32.mrb[221].mxu0  ;;  %v5106_v40 = vpop.f32.mrb[221].mxu1 }
 0x4cf   :  { %v6070_v31 = vadd.f32 %v4400_v43, %v10001_v54  ;;  %v6198_v25 = vadd.f32 %v5106_v40, %v10005_v44  ;;  %v4402_v3 = vpop.f32.mrb[222].mxu0  ;;  %v5108_v33 = vpop.f32.mrb[222].mxu1 }
 0x4d0   :  { %5377 = vst [vmem:[#allocation2 + $0x5c0] sm:$0xff] %v6069_v34  ;;  %5379 = vst [vmem:[#allocation2 + $0x5d0] sm:$0xff] %v6197_v41  ;;  %v6071_v9 = vadd.f32 %v4402_v3, %v9991_v8  ;;  %v6199_v62 = vadd.f32 %v5108_v33, %v9995_v52  ;;  %v4404_v2 = vpop.f32.mrb[223].mxu0  ;;  %v5110_v10 = vpop.f32.mrb[223].mxu1 }
 0x4d1   :  { %5378 = vst [vmem:[#allocation2 + $0x5c8] sm:$0xff] %v6070_v31  ;;  %5380 = vst [vmem:[#allocation2 + $0x5d8] sm:$0xff] %v6198_v25  ;;  %v6072_v37 = vadd.f32 %v4404_v2, %v10001_v54  ;;  %v6200_v51 = vadd.f32 %v5110_v10, %v10005_v44 }
 0x4d2   :  { %5381 = vst [vmem:[#allocation2 + $0x5e0] sm:$0xff] %v6071_v9  ;;  %5383 = vst [vmem:[#allocation2 + $0x5f0] sm:$0xff] %v6199_v62 }
 0x4d3   :  { %5382 = vst [vmem:[#allocation2 + $0x5e8] sm:$0xff] %v6072_v37  ;;  %5384 = vst [vmem:[#allocation2 + $0x5f8] sm:$0xff] %v6200_v51 }
 0x4d5   :  { %v4408_v16 = vpop.f32.mrb[224].mxu0  ;;  %v5114_v22 = vpop.f32.mrb[224].mxu1 }
 0x4d6   :  { %v6073_v58 = vadd.f32 %v4408_v16, %v9991_v8  ;;  %v6201_v4 = vadd.f32 %v5114_v22, %v9995_v52  ;;  %v4410_v5 = vpop.f32.mrb[225].mxu0  ;;  %v5116_v57 = vpop.f32.mrb[225].mxu1 }
 0x4d7   :  { %v6074_v61 = vadd.f32 %v4410_v5, %v10001_v54  ;;  %v6202_v28 = vadd.f32 %v5116_v57, %v10005_v44  ;;  %v4412_v45 = vpop.f32.mrb[226].mxu0  ;;  %v5118_v23 = vpop.f32.mrb[226].mxu1 }
 0x4d8   :  { %5385 = vst [vmem:[#allocation2 + $0x600] sm:$0xff] %v6073_v58  ;;  %5387 = vst [vmem:[#allocation2 + $0x610] sm:$0xff] %v6201_v4  ;;  %v6075_v36 = vadd.f32 %v4412_v45, %v9991_v8  ;;  %v6203_v42 = vadd.f32 %v5118_v23, %v9995_v52  ;;  %v4414_v35 = vpop.f32.mrb[227].mxu0  ;;  %v5120_v15 = vpop.f32.mrb[227].mxu1 }
 0x4d9   :  { %5386 = vst [vmem:[#allocation2 + $0x608] sm:$0xff] %v6074_v61  ;;  %5388 = vst [vmem:[#allocation2 + $0x618] sm:$0xff] %v6202_v28  ;;  %v6076_v32 = vadd.f32 %v4414_v35, %v10001_v54  ;;  %v6204_v19 = vadd.f32 %v5120_v15, %v10005_v44 }
 0x4da   :  { %5389 = vst [vmem:[#allocation2 + $0x620] sm:$0xff] %v6075_v36  ;;  %5391 = vst [vmem:[#allocation2 + $0x630] sm:$0xff] %v6203_v42 }
 0x4db   :  { %5390 = vst [vmem:[#allocation2 + $0x628] sm:$0xff] %v6076_v32  ;;  %5392 = vst [vmem:[#allocation2 + $0x638] sm:$0xff] %v6204_v19 }
 0x4dd   :  { %v4418_v17 = vpop.f32.mrb[228].mxu0  ;;  %v5124_v1 = vpop.f32.mrb[228].mxu1 }
 0x4de   :  { %v6077_v18 = vadd.f32 %v4418_v17, %v9991_v8  ;;  %v6205_v55 = vadd.f32 %v5124_v1, %v9995_v52  ;;  %v4420_v63 = vpop.f32.mrb[229].mxu0  ;;  %v5126_v14 = vpop.f32.mrb[229].mxu1 }
 0x4df   :  { %v6078_v12 = vadd.f32 %v4420_v63, %v10001_v54  ;;  %v6206_v27 = vadd.f32 %v5126_v14, %v10005_v44  ;;  %v4422_v30 = vpop.f32.mrb[230].mxu0  ;;  %v5128_v0 = vpop.f32.mrb[230].mxu1 }
 0x4e0   :  { %5393 = vst [vmem:[#allocation2 + $0x640] sm:$0xff] %v6077_v18  ;;  %5395 = vst [vmem:[#allocation2 + $0x650] sm:$0xff] %v6205_v55  ;;  %v6079_v50 = vadd.f32 %v4422_v30, %v9991_v8  ;;  %v6207_v53 = vadd.f32 %v5128_v0, %v9995_v52  ;;  %v4424_v6 = vpop.f32.mrb[231].mxu0  ;;  %v5130_v13 = vpop.f32.mrb[231].mxu1 }
 0x4e1   :  { %5394 = vst [vmem:[#allocation2 + $0x648] sm:$0xff] %v6078_v12  ;;  %5396 = vst [vmem:[#allocation2 + $0x658] sm:$0xff] %v6206_v27  ;;  %v6080_v26 = vadd.f32 %v4424_v6, %v10001_v54  ;;  %v6208_v20 = vadd.f32 %v5130_v13, %v10005_v44 }
 0x4e2   :  { %5397 = vst [vmem:[#allocation2 + $0x660] sm:$0xff] %v6079_v50  ;;  %5399 = vst [vmem:[#allocation2 + $0x670] sm:$0xff] %v6207_v53 }
 0x4e3   :  { %5398 = vst [vmem:[#allocation2 + $0x668] sm:$0xff] %v6080_v26  ;;  %5400 = vst [vmem:[#allocation2 + $0x678] sm:$0xff] %v6208_v20 }
 0x4e5   :  { %v4428_v46 = vpop.f32.mrb[232].mxu0  ;;  %v5134_v21 = vpop.f32.mrb[232].mxu1 }
 0x4e6   :  { %v6081_v59 = vadd.f32 %v4428_v46, %v9991_v8  ;;  %v6209_v49 = vadd.f32 %v5134_v21, %v9995_v52  ;;  %v4430_v47 = vpop.f32.mrb[233].mxu0  ;;  %v5136_v29 = vpop.f32.mrb[233].mxu1 }
 0x4e7   :  { %v6082_v39 = vadd.f32 %v4430_v47, %v10001_v54  ;;  %v6210_v48 = vadd.f32 %v5136_v29, %v10005_v44  ;;  %v4432_v56 = vpop.f32.mrb[234].mxu0  ;;  %v5138_v60 = vpop.f32.mrb[234].mxu1 }
 0x4e8   :  { %5401 = vst [vmem:[#allocation2 + $0x680] sm:$0xff] %v6081_v59  ;;  %5403 = vst [vmem:[#allocation2 + $0x690] sm:$0xff] %v6209_v49  ;;  %v6083_v11 = vadd.f32 %v4432_v56, %v9991_v8  ;;  %v6211_v7 = vadd.f32 %v5138_v60, %v9995_v52  ;;  %v4434_v38 = vpop.f32.mrb[235].mxu0  ;;  %v5140_v24 = vpop.f32.mrb[235].mxu1 }
 0x4e9   :  { %5402 = vst [vmem:[#allocation2 + $0x688] sm:$0xff] %v6082_v39  ;;  %5404 = vst [vmem:[#allocation2 + $0x698] sm:$0xff] %v6210_v48  ;;  %v6084_v34 = vadd.f32 %v4434_v38, %v10001_v54  ;;  %v6212_v41 = vadd.f32 %v5140_v24, %v10005_v44 }
 0x4ea   :  { %5405 = vst [vmem:[#allocation2 + $0x6a0] sm:$0xff] %v6083_v11  ;;  %5407 = vst [vmem:[#allocation2 + $0x6b0] sm:$0xff] %v6211_v7 }
 0x4eb   :  { %5406 = vst [vmem:[#allocation2 + $0x6a8] sm:$0xff] %v6084_v34  ;;  %5408 = vst [vmem:[#allocation2 + $0x6b8] sm:$0xff] %v6212_v41 }
 0x4ed   :  { %v4438_v43 = vpop.f32.mrb[236].mxu0  ;;  %v5144_v40 = vpop.f32.mrb[236].mxu1 }
 0x4ee   :  { %v6085_v31 = vadd.f32 %v4438_v43, %v9991_v8  ;;  %v6213_v25 = vadd.f32 %v5144_v40, %v9995_v52  ;;  %v4440_v3 = vpop.f32.mrb[237].mxu0  ;;  %v5146_v33 = vpop.f32.mrb[237].mxu1 }
 0x4ef   :  { %v6086_v9 = vadd.f32 %v4440_v3, %v10001_v54  ;;  %v6214_v62 = vadd.f32 %v5146_v33, %v10005_v44  ;;  %v4442_v2 = vpop.f32.mrb[238].mxu0  ;;  %v5148_v10 = vpop.f32.mrb[238].mxu1 }
 0x4f0   :  { %5409 = vst [vmem:[#allocation2 + $0x6c0] sm:$0xff] %v6085_v31  ;;  %5411 = vst [vmem:[#allocation2 + $0x6d0] sm:$0xff] %v6213_v25  ;;  %v6087_v37 = vadd.f32 %v4442_v2, %v9991_v8  ;;  %v6215_v51 = vadd.f32 %v5148_v10, %v9995_v52  ;;  %v4444_v16 = vpop.f32.mrb[239].mxu0  ;;  %v5150_v22 = vpop.f32.mrb[239].mxu1 }
 0x4f1   :  { %5410 = vst [vmem:[#allocation2 + $0x6c8] sm:$0xff] %v6086_v9  ;;  %5412 = vst [vmem:[#allocation2 + $0x6d8] sm:$0xff] %v6214_v62  ;;  %v6088_v58 = vadd.f32 %v4444_v16, %v10001_v54  ;;  %v6216_v4 = vadd.f32 %v5150_v22, %v10005_v44 }
 0x4f2   :  { %5413 = vst [vmem:[#allocation2 + $0x6e0] sm:$0xff] %v6087_v37  ;;  %5415 = vst [vmem:[#allocation2 + $0x6f0] sm:$0xff] %v6215_v51 }
 0x4f3   :  { %5414 = vst [vmem:[#allocation2 + $0x6e8] sm:$0xff] %v6088_v58  ;;  %5416 = vst [vmem:[#allocation2 + $0x6f8] sm:$0xff] %v6216_v4 }
 0x4f5   :  { %v4448_v5 = vpop.f32.mrb[240].mxu0  ;;  %v5154_v57 = vpop.f32.mrb[240].mxu1 }
 0x4f6   :  { %v6089_v61 = vadd.f32 %v4448_v5, %v9991_v8  ;;  %v6217_v28 = vadd.f32 %v5154_v57, %v9995_v52  ;;  %v4450_v45 = vpop.f32.mrb[241].mxu0  ;;  %v5156_v23 = vpop.f32.mrb[241].mxu1 }
 0x4f7   :  { %v6090_v36 = vadd.f32 %v4450_v45, %v10001_v54  ;;  %v6218_v42 = vadd.f32 %v5156_v23, %v10005_v44  ;;  %v4452_v35 = vpop.f32.mrb[242].mxu0  ;;  %v5158_v15 = vpop.f32.mrb[242].mxu1 }
 0x4f8   :  { %5417 = vst [vmem:[#allocation2 + $0x700] sm:$0xff] %v6089_v61  ;;  %5419 = vst [vmem:[#allocation2 + $0x710] sm:$0xff] %v6217_v28  ;;  %v6091_v32 = vadd.f32 %v4452_v35, %v9991_v8  ;;  %v6219_v19 = vadd.f32 %v5158_v15, %v9995_v52  ;;  %v4454_v17 = vpop.f32.mrb[243].mxu0  ;;  %v5160_v1 = vpop.f32.mrb[243].mxu1 }
 0x4f9   :  { %5418 = vst [vmem:[#allocation2 + $0x708] sm:$0xff] %v6090_v36  ;;  %5420 = vst [vmem:[#allocation2 + $0x718] sm:$0xff] %v6218_v42  ;;  %v6092_v18 = vadd.f32 %v4454_v17, %v10001_v54  ;;  %v6220_v55 = vadd.f32 %v5160_v1, %v10005_v44 }
 0x4fa   :  { %5421 = vst [vmem:[#allocation2 + $0x720] sm:$0xff] %v6091_v32  ;;  %5423 = vst [vmem:[#allocation2 + $0x730] sm:$0xff] %v6219_v19 }
 0x4fb   :  { %5422 = vst [vmem:[#allocation2 + $0x728] sm:$0xff] %v6092_v18  ;;  %5424 = vst [vmem:[#allocation2 + $0x738] sm:$0xff] %v6220_v55 }
 0x4fd   :  { %v4458_v63 = vpop.f32.mrb[244].mxu0  ;;  %v5164_v14 = vpop.f32.mrb[244].mxu1 }
 0x4fe   :  { %v6093_v12 = vadd.f32 %v4458_v63, %v9991_v8  ;;  %v6221_v27 = vadd.f32 %v5164_v14, %v9995_v52  ;;  %v4460_v30 = vpop.f32.mrb[245].mxu0  ;;  %v5166_v0 = vpop.f32.mrb[245].mxu1 }
 0x4ff   :  { %v6094_v50 = vadd.f32 %v4460_v30, %v10001_v54  ;;  %v6222_v53 = vadd.f32 %v5166_v0, %v10005_v44  ;;  %v4462_v6 = vpop.f32.mrb[246].mxu0  ;;  %v5168_v13 = vpop.f32.mrb[246].mxu1 }
 0x500   :  { %5425 = vst [vmem:[#allocation2 + $0x740] sm:$0xff] %v6093_v12  ;;  %5427 = vst [vmem:[#allocation2 + $0x750] sm:$0xff] %v6221_v27  ;;  %v6095_v26 = vadd.f32 %v4462_v6, %v9991_v8  ;;  %v6223_v20 = vadd.f32 %v5168_v13, %v9995_v52  ;;  %v4464_v46 = vpop.f32.mrb[247].mxu0  ;;  %v5170_v21 = vpop.f32.mrb[247].mxu1 }
 0x501   :  { %5426 = vst [vmem:[#allocation2 + $0x748] sm:$0xff] %v6094_v50  ;;  %5428 = vst [vmem:[#allocation2 + $0x758] sm:$0xff] %v6222_v53  ;;  %v6096_v59 = vadd.f32 %v4464_v46, %v10001_v54  ;;  %v6224_v49 = vadd.f32 %v5170_v21, %v10005_v44 }
 0x502   :  { %5429 = vst [vmem:[#allocation2 + $0x760] sm:$0xff] %v6095_v26  ;;  %5431 = vst [vmem:[#allocation2 + $0x770] sm:$0xff] %v6223_v20 }
 0x503   :  { %5430 = vst [vmem:[#allocation2 + $0x768] sm:$0xff] %v6096_v59  ;;  %5432 = vst [vmem:[#allocation2 + $0x778] sm:$0xff] %v6224_v49 }
 0x505   :  { %v4468_v47 = vpop.f32.mrb[248].mxu0  ;;  %v5174_v29 = vpop.f32.mrb[248].mxu1 }
 0x506   :  { %v6097_v39 = vadd.f32 %v4468_v47, %v9991_v8  ;;  %v6225_v48 = vadd.f32 %v5174_v29, %v9995_v52  ;;  %v4470_v56 = vpop.f32.mrb[249].mxu0  ;;  %v5176_v60 = vpop.f32.mrb[249].mxu1 }
 0x507   :  { %v6098_v11 = vadd.f32 %v4470_v56, %v10001_v54  ;;  %v6226_v7 = vadd.f32 %v5176_v60, %v10005_v44  ;;  %v4472_v38 = vpop.f32.mrb[250].mxu0  ;;  %v5178_v24 = vpop.f32.mrb[250].mxu1 }
 0x508   :  { %5433 = vst [vmem:[#allocation2 + $0x780] sm:$0xff] %v6097_v39  ;;  %5435 = vst [vmem:[#allocation2 + $0x790] sm:$0xff] %v6225_v48  ;;  %v6099_v34 = vadd.f32 %v4472_v38, %v9991_v8  ;;  %v6227_v41 = vadd.f32 %v5178_v24, %v9995_v52  ;;  %v4474_v43 = vpop.f32.mrb[251].mxu0  ;;  %v5180_v40 = vpop.f32.mrb[251].mxu1 }
 0x509   :  { %5434 = vst [vmem:[#allocation2 + $0x788] sm:$0xff] %v6098_v11  ;;  %5436 = vst [vmem:[#allocation2 + $0x798] sm:$0xff] %v6226_v7  ;;  %v6100_v31 = vadd.f32 %v4474_v43, %v10001_v54  ;;  %v6228_v25 = vadd.f32 %v5180_v40, %v10005_v44 }
 0x50a   :  { %5437 = vst [vmem:[#allocation2 + $0x7a0] sm:$0xff] %v6099_v34  ;;  %5439 = vst [vmem:[#allocation2 + $0x7b0] sm:$0xff] %v6227_v41 }
 0x50b   :  { %5438 = vst [vmem:[#allocation2 + $0x7a8] sm:$0xff] %v6100_v31  ;;  %5440 = vst [vmem:[#allocation2 + $0x7b8] sm:$0xff] %v6228_v25 }
 0x50d   :  { %v4478_v3 = vpop.f32.mrb[252].mxu0  ;;  %v5184_v33 = vpop.f32.mrb[252].mxu1 }
 0x50e   :  { %v6101_v9 = vadd.f32 %v4478_v3, %v9991_v8  ;;  %v6229_v62 = vadd.f32 %v5184_v33, %v9995_v52  ;;  %v4480_v2 = vpop.f32.mrb[253].mxu0  ;;  %v5186_v10 = vpop.f32.mrb[253].mxu1 }
 0x50f   :  { %v6102_v37 = vadd.f32 %v4480_v2, %v10001_v54  ;;  %v6230_v51 = vadd.f32 %v5186_v10, %v10005_v44  ;;  %v4482_v16 = vpop.f32.mrb[254].mxu0  ;;  %v5188_v22 = vpop.f32.mrb[254].mxu1 }
 0x510   :  { %5441 = vst [vmem:[#allocation2 + $0x7c0] sm:$0xff] %v6101_v9  ;;  %5443 = vst [vmem:[#allocation2 + $0x7d0] sm:$0xff] %v6229_v62  ;;  %v6103_v58 = vadd.f32 %v4482_v16, %v9991_v8  ;;  %v6231_v4 = vadd.f32 %v5188_v22, %v9995_v52  ;;  %v4484_v5 = vpop.f32.mrb[255].mxu0  ;;  %v5190_v57 = vpop.f32.mrb[255].mxu1 }
 0x511   :  { %5442 = vst [vmem:[#allocation2 + $0x7c8] sm:$0xff] %v6102_v37  ;;  %5444 = vst [vmem:[#allocation2 + $0x7d8] sm:$0xff] %v6230_v51  ;;  %v6104_v61 = vadd.f32 %v4484_v5, %v10001_v54  ;;  %v6232_v28 = vadd.f32 %v5190_v57, %v10005_v44 }
 0x512   :  { %5445 = vst [vmem:[#allocation2 + $0x7e0] sm:$0xff] %v6103_v58  ;;  %5447 = vst [vmem:[#allocation2 + $0x7f0] sm:$0xff] %v6231_v4 }
 0x513   :  { %5446 = vst [vmem:[#allocation2 + $0x7e8] sm:$0xff] %v6104_v61  ;;  %5448 = vst [vmem:[#allocation2 + $0x7f8] sm:$0xff] %v6232_v28 }
 0x514   :  { %7655 = shalt.err (!%p7652_p4)
}
 0x515   :  { %s7656_s13 = scalar_lea.hbm %s10298_s5, 32768 }
 0x516   :  { %p7657_p5 = scmp.ne.s32.totalorder %s10298_s5, %s7656_s13  ;;  %p7660_p6 = scmp.lt.u32.totalorder %s7656_s13, %s10298_s5 }
 0x518   :  { %p7662_p7 = pnand %p7660_p6, %p7657_p5 }
 0x51a   :  { %7665 = shalt.err (!%p7662_p7)
}
 0x51b   :  { %s7669_s17 = smov 512   ;;  %s7670_s18 = smov 32  }
 0x51c   :  { %5460 = dma.vmem_to_hbm [thread:$0]  %s5455_s9, 32768, %s10298_s5, [#allocation3], %s7669_s17, %s7669_s17, %s7670_s18  }
 0x51d   :  { %7666 = dma.done.wait [#allocation3], 32768  }
 0x51e   :  { %7667 = vsyncadd [#allocation3], 4294934528 }
 0x51f   :  { %5464 = vsyncpa [#allocation3], 1 }

</bundles_post_ra>
